<compile_context>
chip_gen: v7x
topology: tpu7x:2x2x1
jax: 0.10.0
libtpu: 0.0.40
codegen_flags: <defaults>
</compile_context>

<pallas_src>
import jax
import jax.numpy as jnp
from jax import lax
from jax.experimental import pallas as pl
from jax.experimental.pallas import tpu as pltpu


def _pad_to(x, shape):
    out = jnp.zeros(shape, x.dtype)
    return out.at[tuple(slice(0, s) for s in x.shape)].set(x)


# ---------------------------------------------------------------------------
# Fused forward kernel: [GraphConv + GraphNorm + ReLU (+res)] x L + pool + linear
# One grid step == one sub-batch of whole graphs (independent -> "parallel").
# ---------------------------------------------------------------------------
def _make_gcn_forward_kernel(num_conv_layers, d_hidden):
    f32 = jnp.float32
    bf16 = jnp.bfloat16
    D = d_hidden  # padded (lane-dense) hidden width

    def kernel(*refs):
        a_ref, h0_ref, mt_ref, icnt_ref = refs[:4]
        layer_refs = refs[4:4 + 5 * num_conv_layers]
        wp_ref, bp_ref, out_ref, stat2_ref, gstat_ref = refs[4 + 5 * num_conv_layers:]

        a = a_ref[...]              # (NB, NB) bf16, per-sub-batch D^-1/2 A D^-1/2
        mt = mt_ref[...]            # (GB, NB) bf16, one-hot graph <- node
        inv_cnt = icnt_ref[...]     # (GB, 1)  f32, 1 / nodes-per-graph

        def conv_norm_relu(h, w_ref, b_ref, gamma_ref, beta_ref, ms_ref, x_res):
            # --- GraphConv (norm='both', no self loops): A_hat @ (H @ W) + b ---
            hw = jnp.dot(h.astype(bf16), w_ref[...], preferred_element_type=f32)
            conv = jnp.dot(a, hw.astype(bf16), preferred_element_type=f32) + b_ref[...]

            # --- GraphNorm stats: ONE (GB, 2D) segment-sum matmul over a bf16
            #     scratch holding [x | x^2] (no concatenate copy) ---
            stat2_ref[:, :D] = conv.astype(bf16)
            stat2_ref[:, D:] = (conv * conv).astype(bf16)
            seg = jnp.dot(mt, stat2_ref[...], preferred_element_type=f32)   # (GB, 2D)
            mean = seg[:, :D] * inv_cnt                                     # E[x]
            meansq = seg[:, D:] * inv_cnt                                   # E[x^2]
            ms = ms_ref[...]                                                # (1, D)
            # Var[x - ms*mean] = E[x^2] - (2*ms - ms^2) * mean^2   (f32 VPU math)
            var = meansq - (2.0 * ms - ms * ms) * (mean * mean)
            inv_std = lax.rsqrt(jnp.maximum(var, 0.0) + 1e-6)               # EUP

            # --- broadcast per-graph (mean*mean_scale, inv_std) to nodes with ONE
            #     transposed-LHS matmul consuming mt directly (no separate m input) ---
            gstat_ref[:, :D] = (mean * ms).astype(bf16)
            gstat_ref[:, D:] = inv_std.astype(bf16)
            bcast = lax.dot_general(mt, gstat_ref[...],
                                    (((0,), (0,)), ((), ())),
                                    preferred_element_type=f32)             # (NB, 2D)
            normed = (gamma_ref[...] * (conv - bcast[:, :D]) * bcast[:, D:]
                      + beta_ref[...])

            # --- ReLU (+ residual for layers i != 0), kept f32 ---
            h_new = jnp.maximum(normed, 0.0)
            if x_res is not None:
                h_new = h_new + x_res
            return h_new

        h = h0_ref[...]
        for li in range(num_conv_layers):
            w_ref, b_ref, g_ref, bt_ref, ms_ref = layer_refs[5 * li:5 * li + 5]
            x_res = None if li == 0 else h
            h = conv_norm_relu(h, w_ref, b_ref, g_ref, bt_ref, ms_ref, x_res)

        # --- SumPooling + prediction Linear (Dropout = identity at inference) ---
        pooled = jnp.dot(mt, h.astype(bf16), preferred_element_type=f32)    # (GB, D)
        out_ref[...] = (jnp.dot(pooled.astype(bf16), wp_ref[...],
                                preferred_element_type=f32) + bp_ref[...])

    return kernel


def gcn_forward(a_norm, h0, mt, inv_cnt, layer_params, wp, bp):
    """a_norm: (S, NB, NB) bf16;  h0: (S, NB, DI) f32;  mt: (S, GB, NB) bf16;
       inv_cnt: (S, GB, 1) f32;  layer_params: list of (W, b, gamma, beta, mean_scale);
       wp: (DH, DO) bf16;  bp: (1, DO) f32.  Returns (S*GB, DO) f32 scores."""
    S, NB, _ = a_norm.shape
    GB = mt.shape[1]
    DH = layer_params[0][0].shape[1]
    DO = wp.shape[1]
    num_conv_layers = len(layer_params)
    flat_params = [p for lp in layer_params for p in lp]
    args = (a_norm, h0, mt, inv_cnt, *flat_params, wp, bp)

    def sub_spec(shape):
        # per-sub-batch block: leading grid axis picks the sub-batch, squeezed away
        nd = len(shape)
        return pl.BlockSpec((None,) + tuple(shape[1:]),
                            lambda i, _nd=nd: (i,) + (0,) * (_nd - 1))

    def shared_spec(shape):
        nd = len(shape)
        return pl.BlockSpec(tuple(shape), lambda i, _nd=nd: (0,) * _nd)

    in_specs = [sub_spec(a_norm.shape), sub_spec(h0.shape),
                sub_spec(mt.shape), sub_spec(inv_cnt.shape)]
    in_specs += [shared_spec(p.shape) for p in flat_params]
    in_specs += [shared_spec(wp.shape), shared_spec(bp.shape)]

    return pl.pallas_call(
        _make_gcn_forward_kernel(num_conv_layers, DH),
        out_shape=jax.ShapeDtypeStruct((S * GB, DO), jnp.float32),
        grid=(S,),
        in_specs=in_specs,
        out_specs=pl.BlockSpec((GB, DO), lambda i: (i, 0)),
        scratch_shapes=[pltpu.VMEM((NB, 2 * DH), jnp.bfloat16),   # [x | x^2]
                        pltpu.VMEM((GB, 2 * DH), jnp.bfloat16)],  # [mean*ms | inv_std]
        compiler_params=pltpu.CompilerParams(
            dimension_semantics=("parallel",)),
    )(*args)


# ---------------------------------------------------------------------------
# Driver
# ---------------------------------------------------------------------------
if __name__ == "__main__":
    key = jax.random.PRNGKey(0)

    # module hyper-params (num_layers=3 -> 2 GraphConv+GraphNorm layers)
    num_layers = 3
    input_dim, hidden_dim, output_dim = 16, 32, 8
    DI = DH = DO = 128                       # feature dims padded to 128 lanes

    # batched graphs: 64 ring graphs of 8 nodes, 2 sub-batches of 32 graphs
    # -> 256 node-rows per grid step (fills the MXU on all generations)
    nodes_per_graph = 8
    graphs_per_sub = 32
    num_sub = 2                              # "parallel" grid axis (one per v7x TC)
    num_graphs = graphs_per_sub * num_sub    # 64
    nb = graphs_per_sub * nodes_per_graph    # 256 nodes per sub-batch
    n = nb * num_sub                         # 512 nodes total

    def ring(k):
        a = jnp.zeros((k, k), jnp.float32)
        idx = jnp.arange(k)
        a = a.at[idx, (idx + 1) % k].set(1.0)
        a = a.at[idx, (idx - 1) % k].set(1.0)
        return a

    # per-sub-batch block-diagonal normalized adjacency D^-1/2 A D^-1/2
    a_sub = jax.scipy.linalg.block_diag(*([ring(nodes_per_graph)] * graphs_per_sub))
    deg = jnp.clip(a_sub.sum(axis=1), 1.0, None)
    dinv = 1.0 / jnp.sqrt(deg)
    a_sub_norm = a_sub * dinv[None, :] * dinv[:, None]
    a_norm = jnp.broadcast_to(a_sub_norm, (num_sub, nb, nb)).astype(jnp.bfloat16)

    # graph <- node one-hot membership per sub-batch (exact in bf16), 1/count per graph
    graph_id = jnp.repeat(jnp.arange(graphs_per_sub), nodes_per_graph)
    mt_sub = jax.nn.one_hot(graph_id, graphs_per_sub, dtype=jnp.float32).T   # (GB, NB)
    mt = jnp.broadcast_to(mt_sub, (num_sub, graphs_per_sub, nb)).astype(jnp.bfloat16)
    inv_cnt = jnp.full((num_sub, graphs_per_sub, 1),
                       1.0 / nodes_per_graph, jnp.float32)

    # deterministic inputs & parameters (zero-padded to lane-dense shapes)
    keys = jax.random.split(key, 4)
    h0 = _pad_to(jax.random.normal(keys[0], (n, input_dim), jnp.float32),
                 (n, DI)).reshape(num_sub, nb, DI)

    dims = [input_dim] + [hidden_dim] * (num_layers - 1)
    layer_params = []
    for i in range(num_layers - 1):
        kw = jax.random.fold_in(keys[1], i)
        w = (jax.random.normal(kw, (dims[i], hidden_dim), jnp.float32)
             * jnp.sqrt(2.0 / (dims[i] + hidden_dim)))                  # xavier-ish
        w_pad = _pad_to(w, (DI if i == 0 else DH, DH)).astype(jnp.bfloat16)
        b = jnp.zeros((1, DH), jnp.float32)                             # GraphConv bias
        gamma = _pad_to(jnp.ones((1, hidden_dim), jnp.float32), (1, DH))    # GN weight
        beta = jnp.zeros((1, DH), jnp.float32)                              # GN bias
        mscale = _pad_to(jnp.ones((1, hidden_dim), jnp.float32), (1, DH))   # GN mean_scale
        layer_params.append((w_pad, b, gamma, beta, mscale))

    wp = (jax.random.normal(keys[2], (hidden_dim, output_dim), jnp.float32)
          * jnp.sqrt(1.0 / hidden_dim))
    wp_pad = _pad_to(wp, (DH, DO)).astype(jnp.bfloat16)
    bp = jnp.zeros((1, DO), jnp.float32)

    # fused forward: both layers + GraphNorm + pooling + linear in one pallas_call
    score_pad = gcn_forward(a_norm, h0, mt, inv_cnt, layer_params, wp_pad, bp)
    score_over_layer = score_pad[:num_graphs, :output_dim]              # (64, output_dim)

    jax.block_until_ready(score_over_layer)
    print("KERNEL_OK")
</pallas_src>

<mosaic_0001>
module attributes {stable_mosaic.version = 11 : i64} {
  func.func @kernel(%arg0: i32, %arg1: memref<1x256x256xbf16, #tpu.memory_space<vmem>>, %arg2: memref<1x256x128xf32, #tpu.memory_space<vmem>>, %arg3: memref<1x32x256xbf16, #tpu.memory_space<vmem>>, %arg4: memref<1x32x1xf32, #tpu.memory_space<vmem>>, %arg5: memref<128x128xbf16, #tpu.memory_space<vmem>>, %arg6: memref<1x128xf32, #tpu.memory_space<vmem>>, %arg7: memref<1x128xf32, #tpu.memory_space<vmem>>, %arg8: memref<1x128xf32, #tpu.memory_space<vmem>>, %arg9: memref<1x128xf32, #tpu.memory_space<vmem>>, %arg10: memref<128x128xbf16, #tpu.memory_space<vmem>>, %arg11: memref<1x128xf32, #tpu.memory_space<vmem>>, %arg12: memref<1x128xf32, #tpu.memory_space<vmem>>, %arg13: memref<1x128xf32, #tpu.memory_space<vmem>>, %arg14: memref<1x128xf32, #tpu.memory_space<vmem>>, %arg15: memref<128x128xbf16, #tpu.memory_space<vmem>>, %arg16: memref<1x128xf32, #tpu.memory_space<vmem>>, %arg17: memref<32x128xf32, #tpu.memory_space<vmem>>, %arg18: memref<256x256xbf16, #tpu.memory_space<vmem>>, %arg19: memref<32x256xbf16, #tpu.memory_space<vmem>>) attributes {dimension_semantics = [#tpu.dimension_semantics<parallel>], iteration_bounds = array<i64: 2>, scalar_prefetch = 0 : i64, scratch_operands = 2 : i64, tpu.core_type = #tpu.core_type<tc>, window_params = [{transform_indices = @transform_0, window_bounds = array<i64: 1, 256, 256>}, {transform_indices = @transform_1, window_bounds = array<i64: 1, 256, 128>}, {transform_indices = @transform_2, window_bounds = array<i64: 1, 32, 256>}, {transform_indices = @transform_3, window_bounds = array<i64: 1, 32, 1>}, {pipeline_mode = #tpu.pipeline_mode<synchronous>, transform_indices = @transform_4, window_bounds = array<i64: 128, 128>}, {pipeline_mode = #tpu.pipeline_mode<synchronous>, transform_indices = @transform_5, window_bounds = array<i64: 1, 128>}, {pipeline_mode = #tpu.pipeline_mode<synchronous>, transform_indices = @transform_6, window_bounds = array<i64: 1, 128>}, {pipeline_mode = #tpu.pipeline_mode<synchronous>, transform_indices = @transform_7, window_bounds = array<i64: 1, 128>}, {pipeline_mode = #tpu.pipeline_mode<synchronous>, transform_indices = @transform_8, window_bounds = array<i64: 1, 128>}, {pipeline_mode = #tpu.pipeline_mode<synchronous>, transform_indices = @transform_9, window_bounds = array<i64: 128, 128>}, {pipeline_mode = #tpu.pipeline_mode<synchronous>, transform_indices = @transform_10, window_bounds = array<i64: 1, 128>}, {pipeline_mode = #tpu.pipeline_mode<synchronous>, transform_indices = @transform_11, window_bounds = array<i64: 1, 128>}, {pipeline_mode = #tpu.pipeline_mode<synchronous>, transform_indices = @transform_12, window_bounds = array<i64: 1, 128>}, {pipeline_mode = #tpu.pipeline_mode<synchronous>, transform_indices = @transform_13, window_bounds = array<i64: 1, 128>}, {pipeline_mode = #tpu.pipeline_mode<synchronous>, transform_indices = @transform_14, window_bounds = array<i64: 128, 128>}, {pipeline_mode = #tpu.pipeline_mode<synchronous>, transform_indices = @transform_15, window_bounds = array<i64: 1, 128>}, {transform_indices = @transform_16, window_bounds = array<i64: 32, 128>}]} {
    %c0 = arith.constant 0 : index
    %c0_0 = arith.constant 0 : index
    %c0_1 = arith.constant 0 : index
    %0 = vector.load %arg1[%c0, %c0_0, %c0_1] : memref<1x256x256xbf16, #tpu.memory_space<vmem>>, vector<1x256x256xbf16>
    %1 = vector.shape_cast %0 : vector<1x256x256xbf16> to vector<256x256xbf16>
    %c0_2 = arith.constant 0 : index
    %c0_3 = arith.constant 0 : index
    %c0_4 = arith.constant 0 : index
    %2 = vector.load %arg3[%c0_2, %c0_3, %c0_4] : memref<1x32x256xbf16, #tpu.memory_space<vmem>>, vector<1x32x256xbf16>
    %3 = vector.shape_cast %2 : vector<1x32x256xbf16> to vector<32x256xbf16>
    %c0_5 = arith.constant 0 : index
    %c0_6 = arith.constant 0 : index
    %c0_7 = arith.constant 0 : index
    %4 = vector.load %arg4[%c0_5, %c0_6, %c0_7] : memref<1x32x1xf32, #tpu.memory_space<vmem>>, vector<1x32x1xf32>
    %5 = vector.shape_cast %4 : vector<1x32x1xf32> to vector<32x1xf32>
    %c0_8 = arith.constant 0 : index
    %c0_9 = arith.constant 0 : index
    %c0_10 = arith.constant 0 : index
    %6 = vector.load %arg2[%c0_8, %c0_9, %c0_10] : memref<1x256x128xf32, #tpu.memory_space<vmem>>, vector<1x256x128xf32>
    %7 = vector.shape_cast %6 : vector<1x256x128xf32> to vector<256x128xf32>
    %8 = arith.truncf %7 : vector<256x128xf32> to vector<256x128xbf16>
    %c0_11 = arith.constant 0 : index
    %c0_12 = arith.constant 0 : index
    %9 = vector.load %arg5[%c0_11, %c0_12] : memref<128x128xbf16, #tpu.memory_space<vmem>>, vector<128x128xbf16>
    %cst = arith.constant dense<0.000000e+00> : vector<256x128xf32>
    %10 = tpu.matmul %8, %9, %cst {dimension_numbers = #tpu.dot_dimension_numbers<[1], [0], [0], [1], [0, 0, 1, 1], [], []>} : vector<256x128xbf16>, vector<128x128xbf16>, vector<256x128xf32> -> vector<256x128xf32>
    %11 = arith.truncf %10 : vector<256x128xf32> to vector<256x128xbf16>
    %cst_13 = arith.constant dense<0.000000e+00> : vector<256x128xf32>
    %12 = tpu.matmul %1, %11, %cst_13 {dimension_numbers = #tpu.dot_dimension_numbers<[1], [0], [0], [1], [0, 0, 1, 1], [], []>} : vector<256x256xbf16>, vector<256x128xbf16>, vector<256x128xf32> -> vector<256x128xf32>
    %c0_14 = arith.constant 0 : index
    %c0_15 = arith.constant 0 : index
    %13 = vector.load %arg6[%c0_14, %c0_15] : memref<1x128xf32, #tpu.memory_space<vmem>>, vector<1x128xf32>
    %14 = vector.broadcast %13 : vector<1x128xf32> to vector<256x128xf32>
    %15 = arith.addf %12, %14 : vector<256x128xf32>
    %16 = arith.truncf %15 : vector<256x128xf32> to vector<256x128xbf16>
    %c0_16 = arith.constant 0 : index
    %c0_17 = arith.constant 0 : index
    %17 = vector.load %arg18[%c0_16, %c0_17] : memref<256x256xbf16, #tpu.memory_space<vmem>>, vector<256x128xbf16>
    tpu.vector_store %arg18[%c0_16, %c0_17], %16 {strides = array<i32>} : memref<256x256xbf16, #tpu.memory_space<vmem>>, vector<256x128xbf16>,
    %18 = arith.mulf %15, %15 : vector<256x128xf32>
    %19 = arith.truncf %18 : vector<256x128xf32> to vector<256x128xbf16>
    %c0_18 = arith.constant 0 : index
    %c128 = arith.constant 128 : index
    %20 = vector.load %arg18[%c0_18, %c128] : memref<256x256xbf16, #tpu.memory_space<vmem>>, vector<256x128xbf16>
    tpu.vector_store %arg18[%c0_18, %c128], %19 {strides = array<i32>} : memref<256x256xbf16, #tpu.memory_space<vmem>>, vector<256x128xbf16>,
    %c0_19 = arith.constant 0 : index
    %c0_20 = arith.constant 0 : index
    %21 = vector.load %arg18[%c0_19, %c0_20] : memref<256x256xbf16, #tpu.memory_space<vmem>>, vector<256x256xbf16>
    %cst_21 = arith.constant dense<0.000000e+00> : vector<32x256xf32>
    %22 = tpu.matmul %3, %21, %cst_21 {dimension_numbers = #tpu.dot_dimension_numbers<[1], [0], [0], [1], [0, 0, 1, 1], [], []>} : vector<32x256xbf16>, vector<256x256xbf16>, vector<32x256xf32> -> vector<32x256xf32>
    %23 = vector.extract_strided_slice %22 {offsets = [0, 0], sizes = [32, 128], strides = [1, 1]} : vector<32x256xf32> to vector<32x128xf32>
    %24 = vector.broadcast %5 : vector<32x1xf32> to vector<32x128xf32>
    %25 = arith.mulf %23, %24 : vector<32x128xf32>
    %26 = vector.extract_strided_slice %22 {offsets = [0, 128], sizes = [32, 128], strides = [1, 1]} : vector<32x256xf32> to vector<32x128xf32>
    %27 = vector.broadcast %5 : vector<32x1xf32> to vector<32x128xf32>
    %28 = arith.mulf %26, %27 : vector<32x128xf32>
    %c0_22 = arith.constant 0 : index
    %c0_23 = arith.constant 0 : index
    %29 = vector.load %arg9[%c0_22, %c0_23] : memref<1x128xf32, #tpu.memory_space<vmem>>, vector<1x128xf32>
    %cst_24 = arith.constant 2.000000e+00 : f32
    %30 = vector.broadcast %cst_24 : f32 to vector<1x128xf32>
    %31 = arith.mulf %30, %29 : vector<1x128xf32>
    %32 = arith.mulf %29, %29 : vector<1x128xf32>
    %33 = arith.subf %31, %32 : vector<1x128xf32>
    %34 = arith.mulf %25, %25 : vector<32x128xf32>
    %35 = vector.broadcast %33 : vector<1x128xf32> to vector<32x128xf32>
    %36 = arith.mulf %35, %34 : vector<32x128xf32>
    %37 = arith.subf %28, %36 : vector<32x128xf32>
    %cst_25 = arith.constant 0.000000e+00 : f32
    %38 = vector.broadcast %cst_25 : f32 to vector<32x128xf32>
    %39 = arith.maximumf %37, %38 : vector<32x128xf32>
    %cst_26 = arith.constant 9.99999997E-7 : f32
    %40 = vector.broadcast %cst_26 : f32 to vector<32x128xf32>
    %41 = arith.addf %39, %40 : vector<32x128xf32>
    %42 = math.rsqrt %41 : vector<32x128xf32>
    %43 = vector.broadcast %29 : vector<1x128xf32> to vector<32x128xf32>
    %44 = arith.mulf %25, %43 : vector<32x128xf32>
    %45 = arith.truncf %44 : vector<32x128xf32> to vector<32x128xbf16>
    %c0_27 = arith.constant 0 : index
    %c0_28 = arith.constant 0 : index
    %46 = vector.load %arg19[%c0_27, %c0_28] : memref<32x256xbf16, #tpu.memory_space<vmem>>, vector<32x128xbf16>
    tpu.vector_store %arg19[%c0_27, %c0_28], %45 {strides = array<i32>} : memref<32x256xbf16, #tpu.memory_space<vmem>>, vector<32x128xbf16>,
    %47 = arith.truncf %42 : vector<32x128xf32> to vector<32x128xbf16>
    %c0_29 = arith.constant 0 : index
    %c128_30 = arith.constant 128 : index
    %48 = vector.load %arg19[%c0_29, %c128_30] : memref<32x256xbf16, #tpu.memory_space<vmem>>, vector<32x128xbf16>
    tpu.vector_store %arg19[%c0_29, %c128_30], %47 {strides = array<i32>} : memref<32x256xbf16, #tpu.memory_space<vmem>>, vector<32x128xbf16>,
    %c0_31 = arith.constant 0 : index
    %c0_32 = arith.constant 0 : index
    %49 = vector.load %arg19[%c0_31, %c0_32] : memref<32x256xbf16, #tpu.memory_space<vmem>>, vector<32x256xbf16>
    %cst_33 = arith.constant dense<0.000000e+00> : vector<256x256xf32>
    %50 = tpu.matmul %3, %49, %cst_33 {dimension_numbers = #tpu.dot_dimension_numbers<[0], [0], [1], [1], [0, 1, 1, 1], [], []>} : vector<32x256xbf16>, vector<32x256xbf16>, vector<256x256xf32> -> vector<256x256xf32>
    %c0_34 = arith.constant 0 : index
    %c0_35 = arith.constant 0 : index
    %51 = vector.load %arg7[%c0_34, %c0_35] : memref<1x128xf32, #tpu.memory_space<vmem>>, vector<1x128xf32>
    %52 = vector.extract_strided_slice %50 {offsets = [0, 0], sizes = [256, 128], strides = [1, 1]} : vector<256x256xf32> to vector<256x128xf32>
    %53 = arith.subf %15, %52 : vector<256x128xf32>
    %54 = vector.broadcast %51 : vector<1x128xf32> to vector<256x128xf32>
    %55 = arith.mulf %54, %53 : vector<256x128xf32>
    %56 = vector.extract_strided_slice %50 {offsets = [0, 128], sizes = [256, 128], strides = [1, 1]} : vector<256x256xf32> to vector<256x128xf32>
    %57 = arith.mulf %55, %56 : vector<256x128xf32>
    %c0_36 = arith.constant 0 : index
    %c0_37 = arith.constant 0 : index
    %58 = vector.load %arg8[%c0_36, %c0_37] : memref<1x128xf32, #tpu.memory_space<vmem>>, vector<1x128xf32>
    %59 = vector.broadcast %58 : vector<1x128xf32> to vector<256x128xf32>
    %60 = arith.addf %57, %59 : vector<256x128xf32>
    %cst_38 = arith.constant 0.000000e+00 : f32
    %61 = vector.broadcast %cst_38 : f32 to vector<256x128xf32>
    %62 = arith.maximumf %60, %61 : vector<256x128xf32>
    %63 = arith.truncf %62 : vector<256x128xf32> to vector<256x128xbf16>
    %c0_39 = arith.constant 0 : index
    %c0_40 = arith.constant 0 : index
    %64 = vector.load %arg10[%c0_39, %c0_40] : memref<128x128xbf16, #tpu.memory_space<vmem>>, vector<128x128xbf16>
    %cst_41 = arith.constant dense<0.000000e+00> : vector<256x128xf32>
    %65 = tpu.matmul %63, %64, %cst_41 {dimension_numbers = #tpu.dot_dimension_numbers<[1], [0], [0], [1], [0, 0, 1, 1], [], []>} : vector<256x128xbf16>, vector<128x128xbf16>, vector<256x128xf32> -> vector<256x128xf32>
    %66 = arith.truncf %65 : vector<256x128xf32> to vector<256x128xbf16>
    %cst_42 = arith.constant dense<0.000000e+00> : vector<256x128xf32>
    %67 = tpu.matmul %1, %66, %cst_42 {dimension_numbers = #tpu.dot_dimension_numbers<[1], [0], [0], [1], [0, 0, 1, 1], [], []>} : vector<256x256xbf16>, vector<256x128xbf16>, vector<256x128xf32> -> vector<256x128xf32>
    %c0_43 = arith.constant 0 : index
    %c0_44 = arith.constant 0 : index
    %68 = vector.load %arg11[%c0_43, %c0_44] : memref<1x128xf32, #tpu.memory_space<vmem>>, vector<1x128xf32>
    %69 = vector.broadcast %68 : vector<1x128xf32> to vector<256x128xf32>
    %70 = arith.addf %67, %69 : vector<256x128xf32>
    %71 = arith.truncf %70 : vector<256x128xf32> to vector<256x128xbf16>
    %c0_45 = arith.constant 0 : index
    %c0_46 = arith.constant 0 : index
    %72 = vector.load %arg18[%c0_45, %c0_46] : memref<256x256xbf16, #tpu.memory_space<vmem>>, vector<256x128xbf16>
    tpu.vector_store %arg18[%c0_45, %c0_46], %71 {strides = array<i32>} : memref<256x256xbf16, #tpu.memory_space<vmem>>, vector<256x128xbf16>,
    %73 = arith.mulf %70, %70 : vector<256x128xf32>
    %74 = arith.truncf %73 : vector<256x128xf32> to vector<256x128xbf16>
    %c0_47 = arith.constant 0 : index
    %c128_48 = arith.constant 128 : index
    %75 = vector.load %arg18[%c0_47, %c128_48] : memref<256x256xbf16, #tpu.memory_space<vmem>>, vector<256x128xbf16>
    tpu.vector_store %arg18[%c0_47, %c128_48], %74 {strides = array<i32>} : memref<256x256xbf16, #tpu.memory_space<vmem>>, vector<256x128xbf16>,
    %c0_49 = arith.constant 0 : index
    %c0_50 = arith.constant 0 : index
    %76 = vector.load %arg18[%c0_49, %c0_50] : memref<256x256xbf16, #tpu.memory_space<vmem>>, vector<256x256xbf16>
    %cst_51 = arith.constant dense<0.000000e+00> : vector<32x256xf32>
    %77 = tpu.matmul %3, %76, %cst_51 {dimension_numbers = #tpu.dot_dimension_numbers<[1], [0], [0], [1], [0, 0, 1, 1], [], []>} : vector<32x256xbf16>, vector<256x256xbf16>, vector<32x256xf32> -> vector<32x256xf32>
    %78 = vector.extract_strided_slice %77 {offsets = [0, 0], sizes = [32, 128], strides = [1, 1]} : vector<32x256xf32> to vector<32x128xf32>
    %79 = vector.broadcast %5 : vector<32x1xf32> to vector<32x128xf32>
    %80 = arith.mulf %78, %79 : vector<32x128xf32>
    %81 = vector.extract_strided_slice %77 {offsets = [0, 128], sizes = [32, 128], strides = [1, 1]} : vector<32x256xf32> to vector<32x128xf32>
    %82 = vector.broadcast %5 : vector<32x1xf32> to vector<32x128xf32>
    %83 = arith.mulf %81, %82 : vector<32x128xf32>
    %c0_52 = arith.constant 0 : index
    %c0_53 = arith.constant 0 : index
    %84 = vector.load %arg14[%c0_52, %c0_53] : memref<1x128xf32, #tpu.memory_space<vmem>>, vector<1x128xf32>
    %cst_54 = arith.constant 2.000000e+00 : f32
    %85 = vector.broadcast %cst_54 : f32 to vector<1x128xf32>
    %86 = arith.mulf %85, %84 : vector<1x128xf32>
    %87 = arith.mulf %84, %84 : vector<1x128xf32>
    %88 = arith.subf %86, %87 : vector<1x128xf32>
    %89 = arith.mulf %80, %80 : vector<32x128xf32>
    %90 = vector.broadcast %88 : vector<1x128xf32> to vector<32x128xf32>
    %91 = arith.mulf %90, %89 : vector<32x128xf32>
    %92 = arith.subf %83, %91 : vector<32x128xf32>
    %cst_55 = arith.constant 0.000000e+00 : f32
    %93 = vector.broadcast %cst_55 : f32 to vector<32x128xf32>
    %94 = arith.maximumf %92, %93 : vector<32x128xf32>
    %cst_56 = arith.constant 9.99999997E-7 : f32
    %95 = vector.broadcast %cst_56 : f32 to vector<32x128xf32>
    %96 = arith.addf %94, %95 : vector<32x128xf32>
    %97 = math.rsqrt %96 : vector<32x128xf32>
    %98 = vector.broadcast %84 : vector<1x128xf32> to vector<32x128xf32>
    %99 = arith.mulf %80, %98 : vector<32x128xf32>
    %100 = arith.truncf %99 : vector<32x128xf32> to vector<32x128xbf16>
    %c0_57 = arith.constant 0 : index
    %c0_58 = arith.constant 0 : index
    %101 = vector.load %arg19[%c0_57, %c0_58] : memref<32x256xbf16, #tpu.memory_space<vmem>>, vector<32x128xbf16>
    tpu.vector_store %arg19[%c0_57, %c0_58], %100 {strides = array<i32>} : memref<32x256xbf16, #tpu.memory_space<vmem>>, vector<32x128xbf16>,
    %102 = arith.truncf %97 : vector<32x128xf32> to vector<32x128xbf16>
    %c0_59 = arith.constant 0 : index
    %c128_60 = arith.constant 128 : index
    %103 = vector.load %arg19[%c0_59, %c128_60] : memref<32x256xbf16, #tpu.memory_space<vmem>>, vector<32x128xbf16>
    tpu.vector_store %arg19[%c0_59, %c128_60], %102 {strides = array<i32>} : memref<32x256xbf16, #tpu.memory_space<vmem>>, vector<32x128xbf16>,
    %c0_61 = arith.constant 0 : index
    %c0_62 = arith.constant 0 : index
    %104 = vector.load %arg19[%c0_61, %c0_62] : memref<32x256xbf16, #tpu.memory_space<vmem>>, vector<32x256xbf16>
    %cst_63 = arith.constant dense<0.000000e+00> : vector<256x256xf32>
    %105 = tpu.matmul %3, %104, %cst_63 {dimension_numbers = #tpu.dot_dimension_numbers<[0], [0], [1], [1], [0, 1, 1, 1], [], []>} : vector<32x256xbf16>, vector<32x256xbf16>, vector<256x256xf32> -> vector<256x256xf32>
    %c0_64 = arith.constant 0 : index
    %c0_65 = arith.constant 0 : index
    %106 = vector.load %arg12[%c0_64, %c0_65] : memref<1x128xf32, #tpu.memory_space<vmem>>, vector<1x128xf32>
    %107 = vector.extract_strided_slice %105 {offsets = [0, 0], sizes = [256, 128], strides = [1, 1]} : vector<256x256xf32> to vector<256x128xf32>
    %108 = arith.subf %70, %107 : vector<256x128xf32>
    %109 = vector.broadcast %106 : vector<1x128xf32> to vector<256x128xf32>
    %110 = arith.mulf %109, %108 : vector<256x128xf32>
    %111 = vector.extract_strided_slice %105 {offsets = [0, 128], sizes = [256, 128], strides = [1, 1]} : vector<256x256xf32> to vector<256x128xf32>
    %112 = arith.mulf %110, %111 : vector<256x128xf32>
    %c0_66 = arith.constant 0 : index
    %c0_67 = arith.constant 0 : index
    %113 = vector.load %arg13[%c0_66, %c0_67] : memref<1x128xf32, #tpu.memory_space<vmem>>, vector<1x128xf32>
    %114 = vector.broadcast %113 : vector<1x128xf32> to vector<256x128xf32>
    %115 = arith.addf %112, %114 : vector<256x128xf32>
    %cst_68 = arith.constant 0.000000e+00 : f32
    %116 = vector.broadcast %cst_68 : f32 to vector<256x128xf32>
    %117 = arith.maximumf %115, %116 : vector<256x128xf32>
    %118 = arith.addf %117, %62 : vector<256x128xf32>
    %119 = arith.truncf %118 : vector<256x128xf32> to vector<256x128xbf16>
    %cst_69 = arith.constant dense<0.000000e+00> : vector<32x128xf32>
    %120 = tpu.matmul %3, %119, %cst_69 {dimension_numbers = #tpu.dot_dimension_numbers<[1], [0], [0], [1], [0, 0, 1, 1], [], []>} : vector<32x256xbf16>, vector<256x128xbf16>, vector<32x128xf32> -> vector<32x128xf32>
    %121 = arith.truncf %120 : vector<32x128xf32> to vector<32x128xbf16>
    %c0_70 = arith.constant 0 : index
    %c0_71 = arith.constant 0 : index
    %122 = vector.load %arg15[%c0_70, %c0_71] : memref<128x128xbf16, #tpu.memory_space<vmem>>, vector<128x128xbf16>
    %cst_72 = arith.constant dense<0.000000e+00> : vector<32x128xf32>
    %123 = tpu.matmul %121, %122, %cst_72 {dimension_numbers = #tpu.dot_dimension_numbers<[1], [0], [0], [1], [0, 0, 1, 1], [], []>} : vector<32x128xbf16>, vector<128x128xbf16>, vector<32x128xf32> -> vector<32x128xf32>
    %c0_73 = arith.constant 0 : index
    %c0_74 = arith.constant 0 : index
    %124 = vector.load %arg16[%c0_73, %c0_74] : memref<1x128xf32, #tpu.memory_space<vmem>>, vector<1x128xf32>
    %125 = vector.broadcast %124 : vector<1x128xf32> to vector<32x128xf32>
    %126 = arith.addf %123, %125 : vector<32x128xf32>
    %c0_75 = arith.constant 0 : index
    %c0_76 = arith.constant 0 : index
    %127 = vector.load %arg17[%c0_75, %c0_76] : memref<32x128xf32, #tpu.memory_space<vmem>>, vector<32x128xf32>
    tpu.vector_store %arg17[%c0_75, %c0_76], %126 {strides = array<i32>} : memref<32x128xf32, #tpu.memory_space<vmem>>, vector<32x128xf32>,
    return
  }
  func.func @transform_0(%arg0: i32) -> (i32, i32, i32) {
    %c0_i32 = arith.constant 0 : i32
    %c0_i32_0 = arith.constant 0 : i32
    %c0_i32_1 = arith.constant 0 : i32
    return %arg0, %c0_i32, %c0_i32_0 : i32, i32, i32
  }
  func.func @transform_1(%arg0: i32) -> (i32, i32, i32) {
    %c0_i32 = arith.constant 0 : i32
    %c0_i32_0 = arith.constant 0 : i32
    %c0_i32_1 = arith.constant 0 : i32
    return %arg0, %c0_i32, %c0_i32_0 : i32, i32, i32
  }
  func.func @transform_2(%arg0: i32) -> (i32, i32, i32) {
    %c0_i32 = arith.constant 0 : i32
    %c0_i32_0 = arith.constant 0 : i32
    %c0_i32_1 = arith.constant 0 : i32
    return %arg0, %c0_i32, %c0_i32_0 : i32, i32, i32
  }
  func.func @transform_3(%arg0: i32) -> (i32, i32, i32) {
    %c0_i32 = arith.constant 0 : i32
    %c0_i32_0 = arith.constant 0 : i32
    %c0_i32_1 = arith.constant 0 : i32
    return %arg0, %c0_i32, %c0_i32_0 : i32, i32, i32
  }
  func.func @transform_4(%arg0: i32) -> (i32, i32) {
    %c0_i32 = arith.constant 0 : i32
    %c0_i32_0 = arith.constant 0 : i32
    %c0_i32_1 = arith.constant 0 : i32
    return %c0_i32, %c0_i32_0 : i32, i32
  }
  func.func @transform_5(%arg0: i32) -> (i32, i32) {
    %c0_i32 = arith.constant 0 : i32
    %c0_i32_0 = arith.constant 0 : i32
    %c0_i32_1 = arith.constant 0 : i32
    return %c0_i32, %c0_i32_0 : i32, i32
  }
  func.func @transform_6(%arg0: i32) -> (i32, i32) {
    %c0_i32 = arith.constant 0 : i32
    %c0_i32_0 = arith.constant 0 : i32
    %c0_i32_1 = arith.constant 0 : i32
    return %c0_i32, %c0_i32_0 : i32, i32
  }
  func.func @transform_7(%arg0: i32) -> (i32, i32) {
    %c0_i32 = arith.constant 0 : i32
    %c0_i32_0 = arith.constant 0 : i32
    %c0_i32_1 = arith.constant 0 : i32
    return %c0_i32, %c0_i32_0 : i32, i32
  }
  func.func @transform_8(%arg0: i32) -> (i32, i32) {
    %c0_i32 = arith.constant 0 : i32
    %c0_i32_0 = arith.constant 0 : i32
    %c0_i32_1 = arith.constant 0 : i32
    return %c0_i32, %c0_i32_0 : i32, i32
  }
  func.func @transform_9(%arg0: i32) -> (i32, i32) {
    %c0_i32 = arith.constant 0 : i32
    %c0_i32_0 = arith.constant 0 : i32
    %c0_i32_1 = arith.constant 0 : i32
    return %c0_i32, %c0_i32_0 : i32, i32
  }
  func.func @transform_10(%arg0: i32) -> (i32, i32) {
    %c0_i32 = arith.constant 0 : i32
    %c0_i32_0 = arith.constant 0 : i32
    %c0_i32_1 = arith.constant 0 : i32
    return %c0_i32, %c0_i32_0 : i32, i32
  }
  func.func @transform_11(%arg0: i32) -> (i32, i32) {
    %c0_i32 = arith.constant 0 : i32
    %c0_i32_0 = arith.constant 0 : i32
    %c0_i32_1 = arith.constant 0 : i32
    return %c0_i32, %c0_i32_0 : i32, i32
  }
  func.func @transform_12(%arg0: i32) -> (i32, i32) {
    %c0_i32 = arith.constant 0 : i32
    %c0_i32_0 = arith.constant 0 : i32
    %c0_i32_1 = arith.constant 0 : i32
    return %c0_i32, %c0_i32_0 : i32, i32
  }
  func.func @transform_13(%arg0: i32) -> (i32, i32) {
    %c0_i32 = arith.constant 0 : i32
    %c0_i32_0 = arith.constant 0 : i32
    %c0_i32_1 = arith.constant 0 : i32
    return %c0_i32, %c0_i32_0 : i32, i32
  }
  func.func @transform_14(%arg0: i32) -> (i32, i32) {
    %c0_i32 = arith.constant 0 : i32
    %c0_i32_0 = arith.constant 0 : i32
    %c0_i32_1 = arith.constant 0 : i32
    return %c0_i32, %c0_i32_0 : i32, i32
  }
  func.func @transform_15(%arg0: i32) -> (i32, i32) {
    %c0_i32 = arith.constant 0 : i32
    %c0_i32_0 = arith.constant 0 : i32
    %c0_i32_1 = arith.constant 0 : i32
    return %c0_i32, %c0_i32_0 : i32, i32
  }
  func.func @transform_16(%arg0: i32) -> (i32, i32) {
    %c0_i32 = arith.constant 0 : i32
    %c0_i32_0 = arith.constant 0 : i32
    return %arg0, %c0_i32 : i32, i32
  }
}

</mosaic_0001>

<bundles_post_ra>
// kernel: tpu_custom_call.1
= control target key start
LH: loop header
LB: loop body
LE: loop exit
PB: predicated region body
PF: predicated region fallthrough
CT: control target
= control target key end

     0   :  { %s6121_s0 = inlined_call_operand.hbm [shape: bf16[2,256,256], index: 0, kind: input, shape index: {}]   ;;  %s6122_s1 = inlined_call_operand.hbm [shape: f32[2,256,128], index: 1, kind: input, shape index: {}]   ;;  %s6123_s2 = inlined_call_operand.vmem [shape: bf16[2,32,256], index: 2, kind: input, shape index: {}]   ;;  %s6124_s3 = inlined_call_operand.vmem [shape: f32[2,32,1], index: 3, kind: input, shape index: {}]   ;;  %s6125_s4 = inlined_call_operand.hbm [shape: bf16[128,128], index: 4, kind: input, shape index: {}]   ;;  %s6126_s5 = inlined_call_operand.vmem [shape: f32[1,128], index: 5, kind: input, shape index: {}]   ;;  %s6127_s6 = inlined_call_operand.vmem [shape: f32[1,128], index: 6, kind: input, shape index: {}]   ;;  %s6128_s7 = inlined_call_operand.vmem [shape: f32[1,128], index: 7, kind: input, shape index: {}]   ;;  %s6129_s8 = inlined_call_operand.vmem [shape: f32[1,128], index: 8, kind: input, shape index: {}]   ;;  %s6130_s9 = inlined_call_operand.hbm [shape: bf16[128,128], index: 9, kind: input, shape index: {}]   ;;  %s6131_s10 = inlined_call_operand.vmem [shape: f32[1,128], index: 10, kind: input, shape index: {}]   ;;  %s6132_s11 = inlined_call_operand.vmem [shape: f32[1,128], index: 11, kind: input, shape index: {}]   ;;  %s6133_s12 = inlined_call_operand.vmem [shape: f32[1,128], index: 12, kind: input, shape index: {}]   ;;  %s6134_s13 = inlined_call_operand.vmem [shape: f32[1,128], index: 13, kind: input, shape index: {}]   ;;  %s6135_s14 = inlined_call_operand.hbm [shape: bf16[128,128], index: 14, kind: input, shape index: {}]   ;;  %s6136_s15 = inlined_call_operand.vmem [shape: f32[1,128], index: 15, kind: input, shape index: {}]   ;;  %s6137_s16 = inlined_call_operand.hbm [shape: f32[64,128], index: 16, kind: output, shape index: {}]  }
   0x1   :  { %6230 = sst [smem:[#allocation70_spill]] %s6121_s0 }
   0x2   :  { %6231 = sst [smem:[#allocation71_spill]] %s6125_s4 }
   0x3   :  { %6232 = sst [smem:[#allocation72_spill]] %s6128_s7 }
   0x4   :  { %6233 = sst [smem:[#allocation73_spill]] %s6130_s9 }
   0x5   :  { %6234 = sst [smem:[#allocation74_spill]] %s6131_s10 }
   0x6   :  { %6235 = sst [smem:[#allocation75_spill]] %s6132_s11 }
   0x7   :  { %6236 = sst [smem:[#allocation76_spill]] %s6133_s12 }
   0x8   :  { %6237 = sst [smem:[#allocation77_spill]] %s6134_s13 }
   0x9   :  { %6238 = sst [smem:[#allocation78_spill]] %s6135_s14 }
   0xa   :  { %6239 = sst [smem:[#allocation79_spill]] %s6136_s15 }
   0xb   :  { %6240 = sst [smem:[#allocation80_spill]] %s6137_s16 }
   0xc   :  { %21 = vsyncpa [#allocation5], 0 }
   0xd   :  { %23 = vsyncpa [#allocation5 + $0x1], 0 }
   0xe   :  { %24 = vsyncpa [#allocation8], 0 }
   0xf   :  { %26 = vsyncpa [#allocation8 + $0x1], 0 }
  0x10   :  { %27 = vsyncpa [#allocation11], 0 }
  0x11   :  { %28 = vsyncpa [#allocation6], 0 }
  0x12   :  { %30 = vsyncpa [#allocation6 + $0x1], 0  ;;  %s4578_s21 = smov 0   ;;  %s4580_s22 = smov 0  }
  0x13   :  { %s4582_s23 = smov 0   ;;  %s4584_s24 = smov 0  }
  0x14 LB: > { %6241 = sst [smem:[#allocation19_spill]] %s4466_s21  ;;  %s4599_s25 = sadd.s32 4294967295, %s4478_s24   ;;  %s4478_s24 = sphi %s4584_s24, %s6407_s24   ;;  %s4474_s23 = sphi %s4582_s23, %s6406_s23   ;;  %s4470_s22 = sphi %s4580_s22, %s6405_s22   ;;  %s4466_s21 = sphi %s4578_s21, %s6404_s21  }
  0x15   : > { %s3477_s26 = sadd.s32 4294967294, %s4478_s24   ;;  %p56_p0 = scmp.ne.s32.totalorder %s4470_s22, %s4466_s21 }
  0x16   : > { %p6142_p1 = scmp.eq.s32.totalorder %s4599_s25, 0  ;;  %p416_p3 = scmp.eq.s32.totalorder %s3477_s26, 1 }
  0x17   : > { %p3478_p5 = scmp.ge.s32.totalorder %s4478_s24, 1  ;;  %p423_p7 = scmp.lt.s32.totalorder %s4478_s24, 3 }
  0x18   : > { %p4608_p4 = por %p6142_p1, %p56_p0  ;;  %p4613_p6 = por %p416_p3, %p56_p0 }
  0x19   : > { %p4618_p8 = pnand %p3478_p5, %p423_p7  ;;  %s4480_s30 = smov [#allocation9]  }
  0x1a   : > { %s6242_s27 = scalar_select %p4608_p4, 1, 0 }
  0x1b   : > { %s6243_s28 = scalar_select %p4613_p6, 1, 0 }
  0x1c   : > { %s6245_s29 = scalar_select %p4618_p8, 1, 0 }
  0x1d   : > { %6244 = sst [smem:[#allocation20_spill]] %s6243_s28  ;;  %s435_s0 = sshll.u32 %s4480_s30, 4  ;;  %s4622_s0 = int_to_ptr.vmem [resolvable:$true] %s435_s0 }
  0x1e   : > { %p4053_p9 = pneg %p4618_p8  ;;  %s4481_s18 = smov [#allocation10]  }
  0x1f   : > { %s460_s19 = sshll.u32 %s4481_s18, 4  ;;  %s4482_s20 = smov [#allocation12]   ;;  %s4633_s19 = int_to_ptr.vmem [resolvable:$true] %s460_s19 }
  0x20   : > { %p4629_p11 = pnand %p4053_p9, %p6142_p1  ;;  %s4635_s26 = sshll.u32 %s4482_s20, 4  ;;  %s486_s26 = int_to_ptr.vmem [resolvable:$true] %s4635_s26 }
  0x21   : > { %s6247_s4 = sld [smem:[#allocation71_spill]] }
  0x22   : > { %p4645_p13 = pneg %p4629_p11 }
  0x27   : > { %s4256_s21 = scalar_lea.hbm %s6247_s4, 1024 }
  0x28   : > { %p4257_p12 = scmp.ne.s32.totalorder %s6247_s4, %s4256_s21  ;;  %p4263_p5 = scmp.lt.u32.totalorder %s4256_s21, %s6247_s4 }
  0x2a   : > { %p4259_p0 = pnand %p4645_p13, %p4257_p12 }
  0x2c   : > { %p4260_p3 = pneg %p4259_p0 }
  0x2e   : > { %p4265_p7 = pnand %p4263_p5, %p4260_p3 }
  0x30   : > { %4268 = shalt.err (!%p4265_p7)
}
  0x31   : > { %s4269_s15 = scalar_lea.vmem %s4622_s0, 1024  ;;  %p4277_p2 = scmp.lt.s32.totalorder %s4622_s0, %s4622_s0 }
  0x32   : > { %p4270_p9 = scmp.ne.s32.totalorder %s4622_s0, %s4269_s15  ;;  %p4278_p6 = scmp.lt.s32.totalorder %s4269_s15, %s4269_s15 }
  0x34   : > { %p4272_p10 = pnand %p4270_p9, %p4645_p13  ;;  %p4279_p12 = por %p4278_p6, %p4277_p2 }
  0x36   : > { %p4273_p1 = pneg %p4272_p10 }
  0x38   : > { %p4280_p0 = pnand %p4279_p12, %p4273_p1 }
  0x3a   : > { %4283 = shalt.err (!%p4280_p0)
}
  0x3b   : > { %s4483_s16 = smov 64   ;;  %s4484_s21 = smov 4  }
  0x3c   : > { %4056 = dma.hbm_to_vmem [thread:$0]  (!%p4629_p11), %s6247_s4, 1024, %s4622_s0, [#allocation8], %s4483_s16, %s4483_s16, %s4484_s21  }
  0x3d   : > { %s6249_s9 = sld [smem:[#allocation73_spill]] }
  0x43   : > { %s4284_s15 = scalar_lea.hbm %s6249_s9, 1024 }
  0x44   : > { %p4285_p1 = scmp.ne.s32.totalorder %s6249_s9, %s4284_s15  ;;  %p4291_p10 = scmp.lt.u32.totalorder %s4284_s15, %s6249_s9 }
  0x46   : > { %p4287_p2 = pnand %p4285_p1, %p4645_p13 }
  0x48   : > { %p4288_p6 = pneg %p4287_p2 }
  0x4a   : > { %p4293_p3 = pnand %p4291_p10, %p4288_p6 }
  0x4c   : > { %4296 = shalt.err (!%p4293_p3)
}
  0x4d   : > { %s4297_s0 = scalar_lea.vmem %s4633_s19, 1024  ;;  %p4305_p12 = scmp.lt.s32.totalorder %s4633_s19, %s4633_s19 }
  0x4e   : > { %p4298_p5 = scmp.ne.s32.totalorder %s4633_s19, %s4297_s0  ;;  %p4306_p0 = scmp.lt.s32.totalorder %s4297_s0, %s4297_s0 }
  0x50   : > { %p4300_p7 = pnand %p4298_p5, %p4645_p13  ;;  %p4307_p1 = por %p4306_p0, %p4305_p12 }
  0x52   : > { %p4301_p9 = pneg %p4300_p7 }
  0x54   : > { %p4308_p2 = pnand %p4307_p1, %p4301_p9 }
  0x56   : > { %4311 = shalt.err (!%p4308_p2)
}
  0x57   : > { %4059 = dma.hbm_to_vmem [thread:$0]  (!%p4629_p11), %s6249_s9, 1024, %s4633_s19, [#allocation11], %s4483_s16, %s4483_s16, %s4484_s21  }
  0x58   : > { %s6250_s14 = sld [smem:[#allocation78_spill]] }
  0x5e   : > { %s4312_s28 = scalar_lea.hbm %s6250_s14, 1024 }
  0x5f   : > { %p4313_p6 = scmp.ne.s32.totalorder %s6250_s14, %s4312_s28  ;;  %p4319_p5 = scmp.lt.u32.totalorder %s4312_s28, %s6250_s14 }
  0x61   : > { %p4315_p10 = pnand %p4313_p6, %p4645_p13 }
  0x63   : > { %p4316_p3 = pneg %p4315_p10 }
  0x65   : > { %p4321_p7 = pnand %p4319_p5, %p4316_p3 }
  0x67   : > { %4324 = shalt.err (!%p4321_p7)
}
  0x68   : > { %s4325_s0 = scalar_lea.vmem %s486_s26, 1024  ;;  %p4333_p1 = scmp.lt.s32.totalorder %s486_s26, %s486_s26 }
  0x69   : > { %p4326_p9 = scmp.ne.s32.totalorder %s486_s26, %s4325_s0  ;;  %p4334_p2 = scmp.lt.s32.totalorder %s4325_s0, %s4325_s0 }
  0x6b   : > { %p4328_p12 = pnand %p4326_p9, %p4645_p13  ;;  %p4335_p4 = por %p4334_p2, %p4333_p1 }
  0x6d   : > { %p4329_p0 = pneg %p4328_p12 }
  0x6f   : > { %p4336_p8 = pnand %p4335_p4, %p4329_p0 }
  0x71   : > { %4339 = shalt.err (!%p4336_p8)
}
  0x72   : > { %4062 = dma.hbm_to_vmem [thread:$0]  (!%p4629_p11), %s6250_s14, 1024, %s486_s26, [#allocation11], %s4483_s16, %s4483_s16, %s4484_s21  }
  0x73   : > { %s4718_s12 = sadd.s32 1, %s4478_s24   ;;  %s43_s10 = sadd.s32 1, %s4474_s23 }
  0x74   : > { %s40_s17 = ssub.s32 %s4478_s24, %s4718_s12  ;;  %p50_p8 = scmp.ne.s32.totalorder %s4474_s23, %s4470_s22 }
  0x75   : > { %p41_p4 = scmp.eq.s32.totalorder %s40_s17, 0  ;;  %p51_p13 = scmp.eq.s32.totalorder %s4478_s24, 0 }
  0x76   : > { %p4077_p6 = scmp.lt.s32.totalorder %s4478_s24, 2  ;;  %p6251_p3 = scmp.eq.s32.totalorder %s4599_s25, 1 }
  0x77   : > { %s4728_s11 = scalar_select %p41_p4, %s4474_s23, %s43_s10  }
  0x78   : > { %p52_p10 = por %p51_p13, %p50_p8  ;;  %p4732_p5 = por %p6251_p3, %p50_p8 }
  0x79   : > { %s502_s28 = sand.u32 1, %s4474_s23   ;;  %s6145_s30 = sshll.u32 %s4478_s24, 12 }
  0x7a   : > { %s4738_s26 = sshll.u32 %s502_s28, 8  ;;  %s6253_s18 = sld [smem:[#allocation70_spill]] }
  0x7b   : > { %s506_s15 = scalar_lea.vmem [#allocation4], %s4738_s26  ;;  %p4748_p11 = pnand %p4077_p6, %p52_p10 }
  0x7c   : > { %s513_s0 = sshll.u32 %s506_s15, 4  ;;  %s4754_s7 = scalar_lea.sflag [#allocation5], %s502_s28  ;;  %s4752_s0 = int_to_ptr.vmem [resolvable:$true] %s513_s0 }
  0x7d   : > { %p4342_p9 = pneg %p4748_p11 }
  0x80   : > { %s4745_s20 = scalar_lea.hbm %s6253_s18, %s6145_s30  ;;  %s4345_s21 = scalar_lea.hbm %s6253_s18, 8192 }
  0x81   : > { %s4340_s17 = scalar_lea.hbm %s4745_s20, 4096  ;;  %p4346_p1 = scmp.lt.u32.totalorder %s4745_s20, %s6253_s18 }
  0x82   : > { %p4341_p7 = scmp.ne.s32.totalorder %s4745_s20, %s4340_s17  ;;  %p4347_p2 = scmp.lt.u32.totalorder %s4345_s21, %s4340_s17 }
  0x83   : > { %p4349_p8 = scmp.lt.u32.totalorder %s4340_s17, %s4745_s20 }
  0x84   : > { %p4343_p12 = pnand %p4342_p9, %p4341_p7  ;;  %p4348_p4 = por %p4347_p2, %p4346_p1 }
  0x86   : > { %p4344_p0 = pneg %p4343_p12  ;;  %p4350_p13 = por %p4349_p8, %p4348_p4 }
  0x88   : > { %p4351_p6 = pnand %p4350_p13, %p4344_p0 }
  0x8a   : > { %4354 = shalt.err (!%p4351_p6)
}
  0x8b   : > { %s4355_s28 = scalar_lea.vmem %s4752_s0, 4096  ;;  %s4485_s10 = smov [#allocation4]  }
  0x8c   : > { %p4356_p10 = scmp.ne.s32.totalorder %s4752_s0, %s4355_s28  ;;  %s4360_s16 = sshll.u32 %s4485_s10, 4  ;;  %s4361_s16 = int_to_ptr.vmem [resolvable:$false] %s4360_s16 }
  0x8d   : > { %s4362_s30 = scalar_lea.vmem %s4361_s16, 8192  ;;  %p4363_p12 = scmp.lt.s32.totalorder %s4752_s0, %s4361_s16 }
  0x8e   : > { %p4358_p3 = pnand %p4356_p10, %p4342_p9  ;;  %p4364_p1 = scmp.lt.s32.totalorder %s4362_s30, %s4355_s28 }
  0x90   : > { %p4359_p7 = pneg %p4358_p3  ;;  %p4365_p2 = por %p4364_p1, %p4363_p12 }
  0x92   : > { %p4366_p4 = pnand %p4365_p2, %p4359_p7 }
  0x94   : > { %4369 = shalt.err (!%p4366_p4)
}
  0x95   : > { %s4486_s17 = smov 128   ;;  %s4487_s21 = smov 8  }
  0x96   : > { %4066 = dma.hbm_to_vmem [thread:$0]  (!%p4748_p11), %s4745_s20, 4096, %s4752_s0, %s4754_s7, %s4486_s17, %s4486_s17, %s4487_s21  }
  0x97   : > { %s6255_s15 = sshll.u32 %s4478_s24, 12  ;;  %s527_s30 = scalar_lea.vmem [#allocation7], %s4738_s26 }
  0x98   : > { %s4790_s16 = scalar_lea.hbm %s6122_s1, %s6255_s15  ;;  %s534_s4 = sshll.u32 %s527_s30, 4  ;;  %s4794_s4 = int_to_ptr.vmem [resolvable:$true] %s534_s4 }
  0x99   : > { %s523_s9 = sand.u32 1, %s4478_s24   ;;  %s4370_s18 = scalar_lea.hbm %s4790_s16, 4096 }
  0x9a   : > { %s4796_s14 = scalar_lea.sflag [#allocation8], %s523_s9  ;;  %p4371_p0 = scmp.ne.s32.totalorder %s4790_s16, %s4370_s18 }
  0x9b   : > { %s4375_s7 = scalar_lea.hbm %s6122_s1, 8192  ;;  %p4376_p6 = scmp.lt.u32.totalorder %s4790_s16, %s6122_s1 }
  0x9c   : > { %p4373_p8 = pnand %p4371_p0, %p4342_p9  ;;  %p4377_p10 = scmp.lt.u32.totalorder %s4375_s7, %s4370_s18 }
  0x9d   : > { %p4379_p7 = scmp.lt.u32.totalorder %s4370_s18, %s4790_s16 }
  0x9e   : > { %p4374_p13 = pneg %p4373_p8  ;;  %p4378_p3 = por %p4377_p10, %p4376_p6 }
  0xa0   : > { %p4380_p12 = por %p4379_p7, %p4378_p3 }
  0xa2   : > { %p4381_p1 = pnand %p4380_p12, %p4374_p13 }
  0xa4   : > { %4384 = shalt.err (!%p4381_p1)
}
  0xa5   : > { %s4385_s9 = scalar_lea.vmem %s4794_s4, 4096  ;;  %s4488_s26 = smov [#allocation7]  }
  0xa6   : > { %p4386_p2 = scmp.ne.s32.totalorder %s4794_s4, %s4385_s9  ;;  %s4390_s10 = sshll.u32 %s4488_s26, 4  ;;  %s4391_s10 = int_to_ptr.vmem [resolvable:$false] %s4390_s10 }
  0xa7   : > { %s4392_s30 = scalar_lea.vmem %s4391_s10, 8192  ;;  %p4393_p8 = scmp.lt.s32.totalorder %s4794_s4, %s4391_s10 }
  0xa8   : > { %p4388_p4 = pnand %p4386_p2, %p4342_p9  ;;  %p4394_p6 = scmp.lt.s32.totalorder %s4392_s30, %s4385_s9 }
  0xaa   : > { %p4389_p0 = pneg %p4388_p4  ;;  %p4395_p10 = por %p4394_p6, %p4393_p8 }
  0xac   : > { %p4396_p3 = pnand %p4395_p10, %p4389_p0 }
  0xae   : > { %4399 = shalt.err (!%p4396_p3)
}
  0xaf   : > { %4069 = dma.hbm_to_vmem [thread:$0]  (!%p4748_p11), %s4790_s16, 4096, %s4794_s4, %s4796_s14, %s4486_s17, %s4486_s17, %s4487_s21  }
  0xb0   : > { %p6256_p9 = scmp.ne.s32.totalorder %s6245_s29, 0 }
  0xb2   : > { %562 = sbr.rel (%p6256_p9) target bundleno = 3091 (0xc13), region = 84 }
  0xb9   : > { %s4828_s18 = sand.u32 1, %s4470_s22   ;;  %p6257_p13 = scmp.ne.s32.totalorder %s6242_s27, 0 }
  0xba   : > { %s3490_s20 = sshll.u32 %s4828_s18, 8  ;;  %s565_s0 = scalar_lea.sflag [#allocation5], %s4828_s18 }
  0xbb   : > { %s4832_s7 = scalar_lea.vmem [#allocation4], %s3490_s20 }
  0xbc   : > { %4445 = dma.done.wait (%p6257_p13), %s565_s0, 4096  }
  0xbd   : > { %4447 = vsyncadd (%p6257_p13), %s565_s0, 4294963200  ;;  %s573_s4 = sand.u32 1, %s4599_s25   ;;  %s4839_s29 = scalar_lea.vmem [#allocation7], %s3490_s20 }
  0xbe   : > { %s574_s14 = scalar_lea.sflag [#allocation8], %s573_s4 }
  0xbf   : > { %4449 = dma.done.wait (%p6257_p13), %s574_s14, 4096  }
  0xc0   : > { %4451 = vsyncadd (%p6257_p13), %s574_s14, 4294963200  ;;  %p6258_p11 = scmp.eq.s32.totalorder %s4599_s25, 0 }
  0xc2   : > { %4453 = dma.done.wait (%p6258_p11), [#allocation8], 1024   ;;  %p6259_p7 = pmov %p6258_p11 }
  0xc4   : > { %4455 = vsyncadd (%p6259_p7), [#allocation8], 4294966272  ;;  %p6260_p12 = pmov %p6259_p7 }
  0xc5   : > { %p6261_p1 = pmov %p6259_p7 }
  0xc6   : > { %4457 = dma.done.wait (%p6260_p12), [#allocation11], 2048  }
  0xc7   : > { %4459 = vsyncadd (%p6261_p1), [#allocation11], 4294965248  ;;  %v4126_v0 = vld [vmem:[#allocation9] sm:$0xff]   ;;  %v4127_v1 = vld [vmem:[#allocation9 + $0x8] sm:$0xff]   ;;  %p653_p2 = scmp.lt.s32.totalorder %s4599_s25, 1  ;;  %vm1639_vm0 = vcmask 261120  }
  0xc8   : > { %3919 = vmatprep.subr.bf16.mxu0 %v4126_v0  ;;  %v4128_v2 = vld [vmem:[#allocation9 + $0x10] sm:$0xff]   ;;  %v4129_v3 = vld [vmem:[#allocation9 + $0x18] sm:$0xff]   ;;  %v705_v4 = vld [vmem:[%s4839_s29] sm:$0xff]  ;;  %s6269_s27 = sld [smem:[#allocation72_spill]]  ;;  %s6314_s15 = sld [smem:[#allocation77_spill]] }
  0xc9   : > { %3920 = vmatpush3.bf16.msra.mxu0 %v4126_v0  ;;  %v706_v5 = vld [vmem:[%s4839_s29 + $0x8] sm:$0xff]  ;;  %v4130_v7 = vld [vmem:[#allocation9 + $0x20] sm:$0xff]   ;;  %v4132_v9 = vld [vmem:[#allocation9 + $0x30] sm:$0xff]   ;;  %s4924_s17 = scalar_select %p653_p2, %s4599_s25, 1 }
  0xca   : > { %3921 = vmatprep.subr.bf16.mxu0 %v4127_v1  ;;  %v737_v6 = vpack.c.bf16 %v706_v5, %v705_v4  ;;  %v4131_v8 = vld [vmem:[#allocation9 + $0x28] sm:$0xff]   ;;  %v4133_v10 = vld [vmem:[#allocation9 + $0x38] sm:$0xff]   ;;  %v707_v11 = vld [vmem:[%s4839_s29 + $0x10] sm:$0xff]  ;;  %s6321_s26 = sld [smem:[#allocation75_spill]]  ;;  %s6322_s20 = sld [smem:[#allocation76_spill]] }
  0xcb   : > { %v708_v12 = vld [vmem:[%s4839_s29 + $0x18] sm:$0xff]  ;;  %v709_v13 = vld [vmem:[%s4839_s29 + $0x20] sm:$0xff]  ;;  %v710_v14 = vld [vmem:[%s4839_s29 + $0x28] sm:$0xff]  ;;  %s3606_s21 = sshll.u32 %s4924_s17, 5  ;;  %s3495_s0 = sshll.u32 %s4828_s18, 5 }
  0xcc   : > { %3935 = vmatprep.mubr.bf16.mxu0 %v737_v6  ;;  %v738_v15 = vpack.c.bf16 %v708_v12, %v707_v11  ;;  %v739_v16 = vpack.c.bf16 %v710_v14, %v709_v13  ;;  %v711_v17 = vld [vmem:[%s4839_s29 + $0x30] sm:$0xff]  ;;  %v712_v18 = vld [vmem:[%s4839_s29 + $0x38] sm:$0xff]  ;;  %v713_v19 = vld [vmem:[%s4839_s29 + $0x40] sm:$0xff]  ;;  %s4933_s28 = scalar_lea.vmem %s6123_s2, %s3606_s21  ;;  %s662_s10 = scalar_lea.vmem %s6124_s3, %s3606_s21 }
  0xcd   : > { %3922 = vmatpush3.bf16.msra.mxu0 %v4127_v1  ;;  %v714_v20 = vld [vmem:[%s4839_s29 + $0x48] sm:$0xff]  ;;  %v740_v21 = vpack.c.bf16 %v712_v18, %v711_v17  ;;  %v715_v23 = vld [vmem:[%s4839_s29 + $0x50] sm:$0xff]  ;;  %v716_v24 = vld [vmem:[%s4839_s29 + $0x58] sm:$0xff]  ;;  %s6292_s21 = sld [smem:[#allocation74_spill]]  ;;  %s3608_s17 = sshll.u32 %s4599_s25, 9 }
  0xce   : > { %3923 = vmatprep.subr.bf16.mxu0 %v4128_v2  ;;  %v741_v22 = vpack.c.bf16 %v714_v20, %v713_v19  ;;  %v717_v25 = vld [vmem:[%s4839_s29 + $0x60] sm:$0xff]  ;;  %v718_v26 = vld [vmem:[%s4839_s29 + $0x68] sm:$0xff]  ;;  %v742_v27 = vpack.c.bf16 %v716_v24, %v715_v23  ;;  %v719_v29 = vld [vmem:[%s4839_s29 + $0x70] sm:$0xff]  ;;  %s6399_s16 = sld [smem:[#allocation80_spill]]  ;;  %s3316_s25 = scalar_lea.sflag [#allocation6], %s4828_s18 }
  0xcf   : > { %v743_v28 = vpack.c.bf16 %v718_v26, %v717_v25  ;;  %v720_v30 = vld [vmem:[%s4839_s29 + $0x78] sm:$0xff]  ;;  %v721_v31 = vld [vmem:[%s4839_s29 + $0x80] sm:$0xff]  ;;  %v722_v32 = vld [vmem:[%s4839_s29 + $0x88] sm:$0xff]  ;;  %s4490_s9 = smov [#allocation13]  }
  0xd0   : > { %v744_v33 = vpack.c.bf16 %v720_v30, %v719_v29  ;;  %v745_v34 = vpack.c.bf16 %v722_v32, %v721_v31  ;;  %v723_v35 = vld [vmem:[%s4839_s29 + $0x90] sm:$0xff]  ;;  %v724_v36 = vld [vmem:[%s4839_s29 + $0x98] sm:$0xff]  ;;  %v725_v37 = vld [vmem:[%s4839_s29 + $0xa0] sm:$0xff] }
  0xd1   : > { %3924 = vmatpush3.bf16.msra.mxu0 %v4128_v2  ;;  %v726_v38 = vld [vmem:[%s4839_s29 + $0xa8] sm:$0xff]  ;;  %v746_v39 = vpack.c.bf16 %v724_v36, %v723_v35  ;;  %v727_v41 = vld [vmem:[%s4839_s29 + $0xb0] sm:$0xff]  ;;  %v728_v42 = vld [vmem:[%s4839_s29 + $0xb8] sm:$0xff] }
  0xd2   : > { %3925 = vmatprep.subr.bf16.mxu0 %v4129_v3  ;;  %v747_v40 = vpack.c.bf16 %v726_v38, %v725_v37  ;;  %v729_v43 = vld [vmem:[%s4839_s29 + $0xc0] sm:$0xff]  ;;  %v730_v44 = vld [vmem:[%s4839_s29 + $0xc8] sm:$0xff]  ;;  %v748_v45 = vpack.c.bf16 %v728_v42, %v727_v41  ;;  %v731_v47 = vld [vmem:[%s4839_s29 + $0xd0] sm:$0xff] }
  0xd3   : > { %v749_v46 = vpack.c.bf16 %v730_v44, %v729_v43  ;;  %v732_v48 = vld [vmem:[%s4839_s29 + $0xd8] sm:$0xff]  ;;  %v733_v49 = vld [vmem:[%s4839_s29 + $0xe0] sm:$0xff]  ;;  %v734_v50 = vld [vmem:[%s4839_s29 + $0xe8] sm:$0xff] }
  0xd4   : > { %v750_v51 = vpack.c.bf16 %v732_v48, %v731_v47  ;;  %v751_v52 = vpack.c.bf16 %v734_v50, %v733_v49  ;;  %v735_v53 = vld [vmem:[%s4839_s29 + $0xf0] sm:$0xff]  ;;  %v736_v54 = vld [vmem:[%s4839_s29 + $0xf8] sm:$0xff]  ;;  %v4136_v56 = vld [vmem:[%s4832_s7 + $0x4] ss:$8 sps:$4 sm:$0xff]   ;;  %s6398_s29 = sld [smem:[#allocation79_spill]] }
  0xd5   : > { %3926 = vmatpush3.bf16.msra.mxu0 %v4129_v3  ;;  %v752_v55 = vpack.c.bf16 %v736_v54, %v735_v53  ;;  %1193 = vmatprep.mubr.bf16.mxu1 %v4136_v56  ;;  %v4134_v41 = vld [vmem:[%s4832_s7] ss:$8 sps:$4 sm:$0xff]   ;;  %v4137_v42 = vld [vmem:[%s4832_s7 + $0x14] ss:$8 sps:$4 sm:$0xff]   ;;  %v4139_v43 = vld [vmem:[%s4832_s7 + $0x10] ss:$8 sps:$4 sm:$0xff]  }
  0xd6   : > { %3927 = vmatprep.subr.bf16.mxu0 %v4130_v7  ;;  %v4140_v44 = vld [vmem:[%s4832_s7 + $0x24] ss:$8 sps:$4 sm:$0xff]   ;;  %v4145_v47 = vld [vmem:[%s4832_s7 + $0x30] ss:$8 sps:$4 sm:$0xff]   ;;  %v4148_v49 = vld [vmem:[%s4832_s7 + $0x40] ss:$8 sps:$4 sm:$0xff]  }
  0xd7   : > { %v4146_v48 = vld [vmem:[%s4832_s7 + $0x44] ss:$8 sps:$4 sm:$0xff]   ;;  %v4149_v50 = vld [vmem:[%s4832_s7 + $0x54] ss:$8 sps:$4 sm:$0xff]   ;;  %v4154_v53 = vld [vmem:[%s4832_s7 + $0x60] ss:$8 sps:$4 sm:$0xff]  }
  0xd8   : > { %v4155_v54 = vld [vmem:[%s4832_s7 + $0x74] ss:$8 sps:$4 sm:$0xff]   ;;  %v4158_v56 = vld [vmem:[%s4832_s7 + $0x84] ss:$8 sps:$4 sm:$0xff]  }
  0xd9   : > { %3928 = vmatpush3.bf16.msra.mxu0 %v4130_v7 }
  0xda   : > { %3929 = vmatprep.subr.bf16.mxu0 %v4131_v8 }
  0xdd   : > { %3930 = vmatpush3.bf16.msra.mxu0 %v4131_v8 }
  0xde   : > { %3931 = vmatprep.subr.bf16.mxu0 %v4132_v9 }
  0xe1   : > { %3932 = vmatpush3.bf16.msra.mxu0 %v4132_v9 }
  0xe2   : > { %3933 = vmatprep.subr.bf16.mxu0 %v4133_v10 }
  0xe5   : > { %3934 = vmatpush3.bf16.msra.mxu0 %v4133_v10 }
  0xe8   : > { %3936 = vmatmul.mubr.bf16.vlgmr.msra.gmra.mrb[0].mxu0 %v738_v15 }
  0xe9   : > { %3939 = vmatprep.mubr.bf16.mxu0 %v739_v16 }
  0xf0   : > { %3940 = vmatmul.mubr.bf16.gmra.mrb[4].mxu0 %v740_v21 }
  0xf1   : > { %3943 = vmatprep.mubr.bf16.mxu0 %v741_v22 }
  0xf8   : > { %3944 = vmatmul.mubr.bf16.gmra.mrb[8].mxu0 %v742_v27 }
  0xf9   : > { %3947 = vmatprep.mubr.bf16.mxu0 %v743_v28 }
 0x100   : > { %3948 = vmatmul.mubr.bf16.gmra.mrb[12].mxu0 %v744_v33 }
 0x101   : > { %3951 = vmatprep.mubr.bf16.mxu0 %v745_v34 }
 0x108   : > { %3952 = vmatmul.mubr.bf16.gmra.mrb[16].mxu0 %v746_v39 }
 0x109   : > { %3955 = vmatprep.mubr.bf16.mxu0 %v747_v40 }
 0x110   : > { %3956 = vmatmul.mubr.bf16.gmra.mrb[20].mxu0 %v748_v45  ;;  %v4142_v45 = vld [vmem:[%s4832_s7 + $0x20] ss:$8 sps:$4 sm:$0xff]  }
 0x111   : > { %3959 = vmatprep.mubr.bf16.mxu0 %v749_v46  ;;  %v4143_v46 = vld [vmem:[%s4832_s7 + $0x34] ss:$8 sps:$4 sm:$0xff]  }
 0x118   : > { %3960 = vmatmul.mubr.bf16.gmra.mrb[24].mxu0 %v750_v51  ;;  %v4151_v51 = vld [vmem:[%s4832_s7 + $0x50] ss:$8 sps:$4 sm:$0xff]  }
 0x119   : > { %3963 = vmatprep.mubr.bf16.mxu0 %v751_v52  ;;  %v4152_v52 = vld [vmem:[%s4832_s7 + $0x64] ss:$8 sps:$4 sm:$0xff]  }
 0x120   : > { %3964 = vmatmul.mubr.bf16.gmra.mrb[28].mxu0 %v752_v55  ;;  %v4157_v55 = vld [vmem:[%s4832_s7 + $0x70] ss:$8 sps:$4 sm:$0xff]  }
 0x1bb   : > { %v3937_v57 = vpop.f32.mrb[0].mxu0 }
 0x1bc   : > { %v851_v58 = vpop.f32.mrb[1].mxu0 }
 0x1bd   : > { %v3938_v59 = vpop.f32.mrb[2].mxu0 }
 0x1be   : > { %v979_v60 = vpack.c.bf16 %v3938_v59, %v3937_v57  ;;  %v854_v61 = vpop.f32.mrb[3].mxu0  ;;  %v4160_v57 = vld [vmem:[%s4832_s7 + $0x80] ss:$8 sps:$4 sm:$0xff]   ;;  %v4163_v59 = vld [vmem:[%s4832_s7 + $0x90] ss:$8 sps:$4 sm:$0xff]  }
 0x1bf   : > { %v978_v62 = vpack.c.bf16 %v854_v61, %v851_v58  ;;  %v4161_v58 = vld [vmem:[%s4832_s7 + $0x94] ss:$8 sps:$4 sm:$0xff]   ;;  %v4166_v61 = vld [vmem:[%s4832_s7 + $0xa0] ss:$8 sps:$4 sm:$0xff]  }
 0x1c3   : > { %v3941_v63 = vpop.f32.mrb[4].mxu0 }
 0x1c4   : > { %v867_v0 = vpop.f32.mrb[5].mxu0 }
 0x1c5   : > { %v3942_v1 = vpop.f32.mrb[6].mxu0 }
 0x1c6   : > { %v981_v2 = vpack.c.bf16 %v3942_v1, %v3941_v63  ;;  %v870_v3 = vpop.f32.mrb[7].mxu0  ;;  %v4169_v63 = vld [vmem:[%s4832_s7 + $0xb0] ss:$8 sps:$4 sm:$0xff]   ;;  %v4172_v1 = vld [vmem:[%s4832_s7 + $0xc0] ss:$8 sps:$4 sm:$0xff]  }
 0x1c7   : > { %v980_v4 = vpack.c.bf16 %v870_v3, %v867_v0  ;;  %v4170_v0 = vld [vmem:[%s4832_s7 + $0xc4] ss:$8 sps:$4 sm:$0xff]   ;;  %v4175_v3 = vld [vmem:[%s4832_s7 + $0xd0] ss:$8 sps:$4 sm:$0xff]  }
 0x1cb   : > { %v3945_v5 = vpop.f32.mrb[8].mxu0 }
 0x1cc   : > { %v883_v6 = vpop.f32.mrb[9].mxu0 }
 0x1cd   : > { %v3946_v7 = vpop.f32.mrb[10].mxu0 }
 0x1ce   : > { %v983_v8 = vpack.c.bf16 %v3946_v7, %v3945_v5  ;;  %v886_v9 = vpop.f32.mrb[11].mxu0  ;;  %v4178_v5 = vld [vmem:[%s4832_s7 + $0xe0] ss:$8 sps:$4 sm:$0xff]   ;;  %v4181_v7 = vld [vmem:[%s4832_s7 + $0xf0] ss:$8 sps:$4 sm:$0xff]  }
 0x1cf   : > { %v982_v10 = vpack.c.bf16 %v886_v9, %v883_v6  ;;  %v4179_v6 = vld [vmem:[%s4832_s7 + $0xf4] ss:$8 sps:$4 sm:$0xff]   ;;  %v4921_v9 = vld [vmem:[%s6126_s5] ss:$0 sm:$0xff] }
 0x1d3   : > { %v3949_v11 = vpop.f32.mrb[12].mxu0 }
 0x1d4   : > { %v899_v12 = vpop.f32.mrb[13].mxu0 }
 0x1d5   : > { %v3950_v13 = vpop.f32.mrb[14].mxu0 }
 0x1d6   : > { %v985_v14 = vpack.c.bf16 %v3950_v13, %v3949_v11  ;;  %v902_v15 = vpop.f32.mrb[15].mxu0 }
 0x1d7   : > { %v984_v16 = vpack.c.bf16 %v902_v15, %v899_v12 }
 0x1db   : > { %v3953_v17 = vpop.f32.mrb[16].mxu0 }
 0x1dc   : > { %v915_v18 = vpop.f32.mrb[17].mxu0 }
 0x1dd   : > { %v3954_v19 = vpop.f32.mrb[18].mxu0 }
 0x1de   : > { %v987_v20 = vpack.c.bf16 %v3954_v19, %v3953_v17  ;;  %v918_v21 = vpop.f32.mrb[19].mxu0  ;;  %v4939_v17 = vld [vmem:[%s4933_s28 + $0x4] ss:$8 sps:$4 sm:$0xff]  }
 0x1df   : > { %v986_v22 = vpack.c.bf16 %v918_v21, %v915_v18  ;;  %1502 = vmatprep.mubr.bf16.mxu0 %v4939_v17 }
 0x1e1   : > { %3633 = vmatprep.subr.bf16.mxu1 %v986_v22 }
 0x1e2   : > { %3634 = vmatpush3.bf16.msra.mxu1 %v978_v62  ;;  %v4167_v62 = vld [vmem:[%s4832_s7 + $0xb4] ss:$8 sps:$4 sm:$0xff]  }
 0x1e3   : > { %v3957_v23 = vpop.f32.mrb[20].mxu0  ;;  %3635 = vmatprep.subr.bf16.mxu1 %v987_v20 }
 0x1e4   : > { %v931_v24 = vpop.f32.mrb[21].mxu0 }
 0x1e5   : > { %v3958_v25 = vpop.f32.mrb[22].mxu0 }
 0x1e6   : > { %v989_v26 = vpack.c.bf16 %v3958_v25, %v3957_v23  ;;  %v934_v27 = vpop.f32.mrb[23].mxu0  ;;  %3636 = vmatpush3.bf16.msra.mxu1 %v979_v60  ;;  %v4164_v60 = vld [vmem:[%s4832_s7 + $0xa4] ss:$8 sps:$4 sm:$0xff]  }
 0x1e7   : > { %v988_v28 = vpack.c.bf16 %v934_v27, %v931_v24 }
 0x1e9   : > { %3637 = vmatprep.subr.bf16.mxu1 %v988_v28 }
 0x1ea   : > { %3638 = vmatpush3.bf16.msra.mxu1 %v980_v4  ;;  %v4176_v4 = vld [vmem:[%s4832_s7 + $0xe4] ss:$8 sps:$4 sm:$0xff]  }
 0x1eb   : > { %v3961_v29 = vpop.f32.mrb[24].mxu0  ;;  %3639 = vmatprep.subr.bf16.mxu1 %v989_v26 }
 0x1ec   : > { %v947_v30 = vpop.f32.mrb[25].mxu0 }
 0x1ed   : > { %v3962_v31 = vpop.f32.mrb[26].mxu0 }
 0x1ee   : > { %v991_v32 = vpack.c.bf16 %v3962_v31, %v3961_v29  ;;  %v950_v33 = vpop.f32.mrb[27].mxu0  ;;  %3640 = vmatpush3.bf16.msra.mxu1 %v981_v2  ;;  %v4173_v2 = vld [vmem:[%s4832_s7 + $0xd4] ss:$8 sps:$4 sm:$0xff]  }
 0x1ef   : > { %v990_v34 = vpack.c.bf16 %v950_v33, %v947_v30 }
 0x1f1   : > { %3641 = vmatprep.subr.bf16.mxu1 %v990_v34  ;;  %v6147_v34 = vmov 0  }
 0x1f2   : > { %3642 = vmatpush3.bf16.msra.mxu1 %v982_v10  ;;  %4124 = vset.pattern.permute.xlu0 %v6147_v34 }
 0x1f3   : > { %v3965_v35 = vpop.f32.mrb[28].mxu0  ;;  %3643 = vmatprep.subr.bf16.mxu1 %v991_v32  ;;  %4125 = vset.pattern.permute.xlu1 %v6147_v34 }
 0x1f4   : > { %v963_v36 = vpop.f32.mrb[29].mxu0 }
 0x1f5   : > { %v3966_v37 = vpop.f32.mrb[30].mxu0 }
 0x1f6   : > { %v993_v38 = vpack.c.bf16 %v3966_v37, %v3965_v35  ;;  %v966_v39 = vpop.f32.mrb[31].mxu0  ;;  %3644 = vmatpush3.bf16.msra.mxu1 %v983_v8  ;;  %v701_v35 = vld [vmem:[%s662_s10] sm:$0xff] }
 0x1f7   : > { %v992_v40 = vpack.c.bf16 %v966_v39, %v963_v36  ;;  %v703_v36 = vld [vmem:[%s662_s10 + $0x10] sm:$0xff]  ;;  %1525 = vperm.xlu0 %4124, %v701_v35  }
 0x1f8   : > { %1535 = vperm.xlu1 %4125, %v703_v36  }
 0x1f9   : > { %3645 = vmatprep.subr.bf16.mxu1 %v992_v40 }
 0x1fa   : > { %3646 = vmatpush3.bf16.msra.mxu1 %v984_v16 }
 0x1fb   : > { %3647 = vmatprep.subr.bf16.mxu1 %v993_v38 }
 0x1fe   : > { %3648 = vmatpush3.bf16.msra.mxu1 %v985_v14 }
 0x201   : > { %1194 = vmatmul.mubr.bf16.vlgmr.msra.gmra.mrb[0].mxu1 %v4134_v41 }
 0x202   : > { %1201 = vmatprep.mubr.bf16.mxu1 %v4137_v42  ;;  %v702_v42 = vld [vmem:[%s662_s10 + $0x8] sm:$0xff] }
 0x203   : > { %1530 = vperm.xlu0 %4124, %v702_v42  }
 0x209   : > { %1202 = vmatmul.mubr.bf16.gmra.mrb[4].mxu1 %v4139_v43  ;;  %v704_v43 = vld [vmem:[%s662_s10 + $0x18] sm:$0xff] }
 0x20a   : > { %1209 = vmatprep.mubr.bf16.mxu1 %v4140_v44  ;;  %1540 = vperm.xlu1 %4125, %v704_v43  }
 0x211   : > { %1210 = vmatmul.mubr.bf16.gmra.mrb[8].mxu1 %v4142_v45 }
 0x212   : > { %1217 = vmatprep.mubr.bf16.mxu1 %v4143_v46 }
 0x219   : > { %1218 = vmatmul.mubr.bf16.gmra.mrb[12].mxu1 %v4145_v47 }
 0x21a   : > { %1225 = vmatprep.mubr.bf16.mxu1 %v4146_v48 }
 0x221   : > { %1226 = vmatmul.mubr.bf16.gmra.mrb[16].mxu1 %v4148_v49 }
 0x222   : > { %1233 = vmatprep.mubr.bf16.mxu1 %v4149_v50 }
 0x229   : > { %1234 = vmatmul.mubr.bf16.gmra.mrb[20].mxu1 %v4151_v51 }
 0x22a   : > { %1241 = vmatprep.mubr.bf16.mxu1 %v4152_v52 }
 0x22d   : > { %1623 = vxpose.xlu1.c.b16.start [1/2] (short) %v4939_v17, 128 }
 0x231   : > { %1242 = vmatmul.mubr.bf16.gmra.mrb[24].mxu1 %v4154_v53 }
 0x232   : > { %1249 = vmatprep.mubr.bf16.mxu1 %v4155_v54 }
 0x239   : > { %1250 = vmatmul.mubr.bf16.gmra.mrb[28].mxu1 %v4157_v55 }
 0x23a   : > { %1257 = vmatprep.mubr.bf16.mxu1 %v4158_v56 }
 0x241   : > { %1258 = vmatmul.mubr.bf16.gmra.mrb[32].mxu1 %v4160_v57 }
 0x242   : > { %1265 = vmatprep.mubr.bf16.mxu1 %v4161_v58 }
 0x249   : > { %1266 = vmatmul.mubr.bf16.gmra.mrb[36].mxu1 %v4163_v59 }
 0x24a   : > { %1273 = vmatprep.mubr.bf16.mxu1 %v4164_v60 }
 0x251   : > { %1274 = vmatmul.mubr.bf16.gmra.mrb[40].mxu1 %v4166_v61 }
 0x252   : > { %1281 = vmatprep.mubr.bf16.mxu1 %v4167_v62 }
 0x259   : > { %1282 = vmatmul.mubr.bf16.gmra.mrb[44].mxu1 %v4169_v63 }
 0x25a   : > { %1289 = vmatprep.mubr.bf16.mxu1 %v4170_v0 }
 0x261   : > { %1290 = vmatmul.mubr.bf16.gmra.mrb[48].mxu1 %v4172_v1 }
 0x262   : > { %1297 = vmatprep.mubr.bf16.mxu1 %v4173_v2 }
 0x269   : > { %1298 = vmatmul.mubr.bf16.gmra.mrb[52].mxu1 %v4175_v3 }
 0x26a   : > { %1305 = vmatprep.mubr.bf16.mxu1 %v4176_v4 }
 0x271   : > { %1306 = vmatmul.mubr.bf16.gmra.mrb[56].mxu1 %v4178_v5 }
 0x272   : > { %1313 = vmatprep.mubr.bf16.mxu1 %v4179_v6 }
 0x279   : > { %1314 = vmatmul.mubr.bf16.gmra.mrb[60].mxu1 %v4181_v7 }
 0x2d4   : > { %v3649_v8 = vpop.f32.mrb[0].mxu1 }
 0x2d5   : > { %v3650_v10 = vpop.f32.mrb[1].mxu1 }
 0x2d6   : > { %v3651_v11 = vadd.f32 %v3650_v10, %v3649_v8  ;;  %v3652_v12 = vpop.f32.mrb[2].mxu1 }
 0x2d7   : > { %v3653_v13 = vpop.f32.mrb[3].mxu1 }
 0x2d8   : > { %v4928_v14 = vadd.f32 %v3651_v11, %v4921_v9  ;;  %v3654_v15 = vadd.f32 %v3653_v13, %v3652_v12 }
 0x2da   : > { %v4936_v16 = vadd.f32 %v3654_v15, %v4921_v9  ;;  %v1354_v19 = vmul.f32 %v4928_v14, %v4928_v14 }
 0x2dc   : > { %v3655_v18 = vpop.f32.mrb[4].mxu1  ;;  %v1355_v20 = vmul.f32 %v4936_v16, %v4936_v16  ;;  %v1322_v25 = vpack.c.bf16 %v4936_v16, %v4928_v14 }
 0x2dd   : > { %v3656_v21 = vpop.f32.mrb[5].mxu1 }
 0x2de   : > { %v3657_v22 = vadd.f32 %v3656_v21, %v3655_v18  ;;  %v3658_v23 = vpop.f32.mrb[6].mxu1  ;;  %v1386_v24 = vpack.c.bf16 %v1355_v20, %v1354_v19 }
 0x2df   : > { %v3659_v26 = vpop.f32.mrb[7].mxu1 }
 0x2e0   : > { %v4949_v27 = vadd.f32 %v3657_v22, %v4921_v9  ;;  %v3660_v28 = vadd.f32 %v3659_v26, %v3658_v23  ;;  %1470 = vmatprep.subr.bf16.mxu0 %v1386_v24 }
 0x2e1   : > { %1471 = vmatpush1.bf16.msra.mxu0 %v1322_v25 }
 0x2e2   : > { %v4952_v29 = vadd.f32 %v3660_v28, %v4921_v9  ;;  %v1356_v31 = vmul.f32 %v4949_v27, %v4949_v27 }
 0x2e4   : > { %v3661_v30 = vpop.f32.mrb[8].mxu1  ;;  %v1357_v32 = vmul.f32 %v4952_v29, %v4952_v29  ;;  %v1323_v40 = vpack.c.bf16 %v4952_v29, %v4949_v27 }
 0x2e5   : > { %v3662_v33 = vpop.f32.mrb[9].mxu1 }
 0x2e6   : > { %v3663_v37 = vadd.f32 %v3662_v33, %v3661_v30  ;;  %v3664_v38 = vpop.f32.mrb[10].mxu1  ;;  %v1387_v39 = vpack.c.bf16 %v1357_v32, %v1356_v31  ;;  %v5012_v32 = vld [vmem:[%s4933_s28] ss:$8 sps:$4 sm:$0xff]  }
 0x2e7   : > { %v3665_v41 = vpop.f32.mrb[11].mxu1  ;;  %1607 = vxpose.xlu0.c.b16.start [1/2] (short) %v5012_v32, 128 }
 0x2e8   : > { %v4966_v44 = vadd.f32 %v3663_v37, %v4921_v9  ;;  %v3666_v45 = vadd.f32 %v3665_v41, %v3664_v38  ;;  %1472 = vmatprep.subr.bf16.mxu0 %v1387_v39  ;;  %v5024_v39 = vld [vmem:[%s4933_s28 + $0x10] ss:$8 sps:$4 sm:$0xff]  }
 0x2e9   : > { %1473 = vmatpush1.bf16.msra.mxu0 %v1323_v40 }
 0x2ea   : > { %v4969_v46 = vadd.f32 %v3666_v45, %v4921_v9  ;;  %v1358_v48 = vmul.f32 %v4966_v44, %v4966_v44 }
 0x2eb   : > { %1608 = vxpose.xlu0.c.b16.end [2/2] (short) %v5024_v39, 128 }
 0x2ec   : > { %v3667_v47 = vpop.f32.mrb[12].mxu1  ;;  %v1359_v49 = vmul.f32 %v4969_v46, %v4969_v46  ;;  %v1324_v54 = vpack.c.bf16 %v4969_v46, %v4966_v44 }
 0x2ed   : > { %v3668_v50 = vpop.f32.mrb[13].mxu1 }
 0x2ee   : > { %v3669_v51 = vadd.f32 %v3668_v50, %v3667_v47  ;;  %v3670_v52 = vpop.f32.mrb[14].mxu1  ;;  %v1388_v53 = vpack.c.bf16 %v1359_v49, %v1358_v48 }
 0x2ef   : > { %v3671_v55 = vpop.f32.mrb[15].mxu1 }
 0x2f0   : > { %v4978_v56 = vadd.f32 %v3669_v51, %v4921_v9  ;;  %v3672_v57 = vadd.f32 %v3671_v55, %v3670_v52  ;;  %1474 = vmatprep.subr.bf16.mxu0 %v1388_v53  ;;  %v5035_v51 = vld [vmem:[%s4933_s28 + $0x14] ss:$8 sps:$4 sm:$0xff]  }
 0x2f1   : > { %1475 = vmatpush1.bf16.msra.mxu0 %v1324_v54  ;;  %1624 = vxpose.xlu1.c.b16.end [2/2] (short) %v5035_v51, 128 }
 0x2f2   : > { %v4981_v58 = vadd.f32 %v3672_v57, %v4921_v9  ;;  %v1360_v60 = vmul.f32 %v4978_v56, %v4978_v56 }
 0x2f4   : > { %v3673_v59 = vpop.f32.mrb[16].mxu1  ;;  %v1361_v61 = vmul.f32 %v4981_v58, %v4981_v58  ;;  %v1325_v2 = vpack.c.bf16 %v4981_v58, %v4978_v56 }
 0x2f5   : > { %v3674_v62 = vpop.f32.mrb[17].mxu1 }
 0x2f6   : > { %v3675_v63 = vadd.f32 %v3674_v62, %v3673_v59  ;;  %v3676_v0 = vpop.f32.mrb[18].mxu1  ;;  %v1389_v1 = vpack.c.bf16 %v1361_v61, %v1360_v60 }
 0x2f7   : > { %v3677_v3 = vpop.f32.mrb[19].mxu1 }
 0x2f8   : > { %v4990_v4 = vadd.f32 %v3675_v63, %v4921_v9  ;;  %v3678_v5 = vadd.f32 %v3677_v3, %v3676_v0  ;;  %1476 = vmatprep.subr.bf16.mxu0 %v1389_v1 }
 0x2f9   : > { %1477 = vmatpush1.bf16.msra.mxu0 %v1325_v2 }
 0x2fa   : > { %v4993_v6 = vadd.f32 %v3678_v5, %v4921_v9  ;;  %v1362_v8 = vmul.f32 %v4990_v4, %v4990_v4 }
 0x2fc   : > { %v3679_v7 = vpop.f32.mrb[20].mxu1  ;;  %v1363_v10 = vmul.f32 %v4993_v6, %v4993_v6  ;;  %v1326_v18 = vpack.c.bf16 %v4993_v6, %v4990_v4 }
 0x2fd   : > { %v3680_v11 = vpop.f32.mrb[21].mxu1 }
 0x2fe   : > { %v3681_v12 = vadd.f32 %v3680_v11, %v3679_v7  ;;  %v3682_v13 = vpop.f32.mrb[22].mxu1  ;;  %v1390_v15 = vpack.c.bf16 %v1363_v10, %v1362_v8 }
 0x2ff   : > { %v3683_v19 = vpop.f32.mrb[23].mxu1 }
 0x300   : > { %v5002_v20 = vadd.f32 %v3681_v12, %v4921_v9  ;;  %v3684_v21 = vadd.f32 %v3683_v19, %v3682_v13  ;;  %1478 = vmatprep.subr.bf16.mxu0 %v1390_v15 }
 0x301   : > { %1479 = vmatpush1.bf16.msra.mxu0 %v1326_v18 }
 0x302   : > { %v5005_v22 = vadd.f32 %v3684_v21, %v4921_v9  ;;  %v1364_v24 = vmul.f32 %v5002_v20, %v5002_v20 }
 0x304   : > { %v3685_v23 = vpop.f32.mrb[24].mxu1  ;;  %v1365_v25 = vmul.f32 %v5005_v22, %v5005_v22  ;;  %v1327_v33 = vpack.c.bf16 %v5005_v22, %v5002_v20 }
 0x305   : > { %v3686_v26 = vpop.f32.mrb[25].mxu1 }
 0x306   : > { %v3687_v28 = vadd.f32 %v3686_v26, %v3685_v23  ;;  %v3688_v30 = vpop.f32.mrb[26].mxu1  ;;  %v1391_v31 = vpack.c.bf16 %v1365_v25, %v1364_v24 }
 0x307   : > { %v3689_v35 = vpop.f32.mrb[27].mxu1 }
 0x308   : > { %v5017_v36 = vadd.f32 %v3687_v28, %v4921_v9  ;;  %v3690_v37 = vadd.f32 %v3689_v35, %v3688_v30  ;;  %1480 = vmatprep.subr.bf16.mxu0 %v1391_v31 }
 0x309   : > { %1481 = vmatpush1.bf16.msra.mxu0 %v1327_v33 }
 0x30a   : > { %v5021_v38 = vadd.f32 %v3690_v37, %v4921_v9  ;;  %v1366_v41 = vmul.f32 %v5017_v36, %v5017_v36 }
 0x30c   : > { %v3691_v40 = vpop.f32.mrb[28].mxu1  ;;  %v1367_v42 = vmul.f32 %v5021_v38, %v5021_v38  ;;  %v1328_v49 = vpack.c.bf16 %v5021_v38, %v5017_v36 }
 0x30d   : > { %v3692_v43 = vpop.f32.mrb[29].mxu1 }
 0x30e   : > { %v3693_v45 = vadd.f32 %v3692_v43, %v3691_v40  ;;  %v3694_v47 = vpop.f32.mrb[30].mxu1  ;;  %v1392_v48 = vpack.c.bf16 %v1367_v42, %v1366_v41 }
 0x30f   : > { %v3695_v50 = vpop.f32.mrb[31].mxu1 }
 0x310   : > { %v5038_v52 = vadd.f32 %v3693_v45, %v4921_v9  ;;  %v3696_v53 = vadd.f32 %v3695_v50, %v3694_v47  ;;  %1482 = vmatprep.subr.bf16.mxu0 %v1392_v48 }
 0x311   : > { %1483 = vmatpush1.bf16.msra.mxu0 %v1328_v49 }
 0x312   : > { %v5042_v54 = vadd.f32 %v3696_v53, %v4921_v9  ;;  %v1368_v57 = vmul.f32 %v5038_v52, %v5038_v52 }
 0x314   : > { %v3697_v55 = vpop.f32.mrb[32].mxu1  ;;  %v1369_v59 = vmul.f32 %v5042_v54, %v5042_v54  ;;  %v1329_v0 = vpack.c.bf16 %v5042_v54, %v5038_v52 }
 0x315   : > { %v3698_v60 = vpop.f32.mrb[33].mxu1 }
 0x316   : > { %v3699_v61 = vadd.f32 %v3698_v60, %v3697_v55  ;;  %v3700_v62 = vpop.f32.mrb[34].mxu1  ;;  %v1393_v63 = vpack.c.bf16 %v1369_v59, %v1368_v57 }
 0x317   : > { %v3701_v1 = vpop.f32.mrb[35].mxu1 }
 0x318   : > { %v5051_v2 = vadd.f32 %v3699_v61, %v4921_v9  ;;  %v3702_v3 = vadd.f32 %v3701_v1, %v3700_v62  ;;  %1484 = vmatprep.subr.bf16.mxu0 %v1393_v63 }
 0x319   : > { %1485 = vmatpush1.bf16.msra.mxu0 %v1329_v0 }
 0x31a   : > { %v5054_v5 = vadd.f32 %v3702_v3, %v4921_v9  ;;  %v1370_v8 = vmul.f32 %v5051_v2, %v5051_v2 }
 0x31c   : > { %v3703_v7 = vpop.f32.mrb[36].mxu1  ;;  %v1371_v10 = vmul.f32 %v5054_v5, %v5054_v5  ;;  %v1330_v18 = vpack.c.bf16 %v5054_v5, %v5051_v2 }
 0x31d   : > { %v3704_v11 = vpop.f32.mrb[37].mxu1 }
 0x31e   : > { %v3705_v12 = vadd.f32 %v3704_v11, %v3703_v7  ;;  %v3706_v13 = vpop.f32.mrb[38].mxu1  ;;  %v1394_v15 = vpack.c.bf16 %v1371_v10, %v1370_v8 }
 0x31f   : > { %v3707_v19 = vpop.f32.mrb[39].mxu1 }
 0x320   : > { %v5063_v21 = vadd.f32 %v3705_v12, %v4921_v9  ;;  %v3708_v23 = vadd.f32 %v3707_v19, %v3706_v13  ;;  %1486 = vmatprep.subr.bf16.mxu0 %v1394_v15 }
 0x321   : > { %1487 = vmatpush1.bf16.msra.mxu0 %v1330_v18 }
 0x322   : > { %v5066_v24 = vadd.f32 %v3708_v23, %v4921_v9  ;;  %v1372_v26 = vmul.f32 %v5063_v21, %v5063_v21 }
 0x324   : > { %v3709_v25 = vpop.f32.mrb[40].mxu1  ;;  %v1373_v28 = vmul.f32 %v5066_v24, %v5066_v24  ;;  %v1331_v37 = vpack.c.bf16 %v5066_v24, %v5063_v21 }
 0x325   : > { %v3710_v30 = vpop.f32.mrb[41].mxu1 }
 0x326   : > { %v3711_v31 = vadd.f32 %v3710_v30, %v3709_v25  ;;  %v3712_v33 = vpop.f32.mrb[42].mxu1  ;;  %v1395_v35 = vpack.c.bf16 %v1373_v28, %v1372_v26 }
 0x327   : > { %v3713_v40 = vpop.f32.mrb[43].mxu1 }
 0x328   : > { %v5075_v41 = vadd.f32 %v3711_v31, %v4921_v9  ;;  %v3714_v42 = vadd.f32 %v3713_v40, %v3712_v33  ;;  %1488 = vmatprep.subr.bf16.mxu0 %v1395_v35 }
 0x329   : > { %1489 = vmatpush1.bf16.msra.mxu0 %v1331_v37 }
 0x32a   : > { %v5078_v43 = vadd.f32 %v3714_v42, %v4921_v9  ;;  %v1374_v47 = vmul.f32 %v5075_v41, %v5075_v41 }
 0x32c   : > { %v3715_v45 = vpop.f32.mrb[44].mxu1  ;;  %v1375_v48 = vmul.f32 %v5078_v43, %v5078_v43  ;;  %v1332_v57 = vpack.c.bf16 %v5078_v43, %v5075_v41 }
 0x32d   : > { %v3716_v49 = vpop.f32.mrb[45].mxu1 }
 0x32e   : > { %v3717_v50 = vadd.f32 %v3716_v49, %v3715_v45  ;;  %v3718_v53 = vpop.f32.mrb[46].mxu1  ;;  %v1396_v55 = vpack.c.bf16 %v1375_v48, %v1374_v47 }
 0x32f   : > { %v3719_v59 = vpop.f32.mrb[47].mxu1 }
 0x330   : > { %v5087_v60 = vadd.f32 %v3717_v50, %v4921_v9  ;;  %v3720_v61 = vadd.f32 %v3719_v59, %v3718_v53  ;;  %1490 = vmatprep.subr.bf16.mxu0 %v1396_v55 }
 0x331   : > { %1491 = vmatpush1.bf16.msra.mxu0 %v1332_v57 }
 0x332   : > { %v5090_v62 = vadd.f32 %v3720_v61, %v4921_v9  ;;  %v1376_v0 = vmul.f32 %v5087_v60, %v5087_v60 }
 0x334   : > { %v3721_v63 = vpop.f32.mrb[48].mxu1  ;;  %v1377_v1 = vmul.f32 %v5090_v62, %v5090_v62  ;;  %v1333_v11 = vpack.c.bf16 %v5090_v62, %v5087_v60 }
 0x335   : > { %v3722_v3 = vpop.f32.mrb[49].mxu1 }
 0x336   : > { %v3723_v7 = vadd.f32 %v3722_v3, %v3721_v63  ;;  %v3724_v8 = vpop.f32.mrb[50].mxu1  ;;  %v1397_v10 = vpack.c.bf16 %v1377_v1, %v1376_v0 }
 0x337   : > { %v3725_v12 = vpop.f32.mrb[51].mxu1 }
 0x338   : > { %v5099_v13 = vadd.f32 %v3723_v7, %v4921_v9  ;;  %v3726_v15 = vadd.f32 %v3725_v12, %v3724_v8  ;;  %1492 = vmatprep.subr.bf16.mxu0 %v1397_v10 }
 0x339   : > { %1493 = vmatpush1.bf16.msra.mxu0 %v1333_v11 }
 0x33a   : > { %v5102_v18 = vadd.f32 %v3726_v15, %v4921_v9  ;;  %v1378_v23 = vmul.f32 %v5099_v13, %v5099_v13 }
 0x33c   : > { %v3727_v19 = vpop.f32.mrb[52].mxu1  ;;  %v1379_v25 = vmul.f32 %v5102_v18, %v5102_v18  ;;  %v1334_v33 = vpack.c.bf16 %v5102_v18, %v5099_v13 }
 0x33d   : > { %v3728_v26 = vpop.f32.mrb[53].mxu1 }
 0x33e   : > { %v3729_v28 = vadd.f32 %v3728_v26, %v3727_v19  ;;  %v3730_v30 = vpop.f32.mrb[54].mxu1  ;;  %v1398_v31 = vpack.c.bf16 %v1379_v25, %v1378_v23 }
 0x33f   : > { %v3731_v35 = vpop.f32.mrb[55].mxu1 }
 0x340   : > { %v5111_v37 = vadd.f32 %v3729_v28, %v4921_v9  ;;  %v3732_v40 = vadd.f32 %v3731_v35, %v3730_v30  ;;  %1494 = vmatprep.subr.bf16.mxu0 %v1398_v31  ;;  %v1551_v35 = vld [vmem:[%s6129_s8] sm:$0x1] }
 0x341   : > { %1495 = vmatpush1.bf16.msra.mxu0 %v1334_v33 }
 0x342   : > { %v5114_v42 = vadd.f32 %v3732_v40, %v4921_v9  ;;  %v1380_v47 = vmul.f32 %v5111_v37, %v5111_v37  ;;  %v1552_v40 = vmul.f32 2.0, %v1551_v35 }
 0x344   : > { %v3733_v45 = vpop.f32.mrb[56].mxu1  ;;  %v1381_v48 = vmul.f32 %v5114_v42, %v5114_v42  ;;  %v1335_v57 = vpack.c.bf16 %v5114_v42, %v5111_v37 }
 0x345   : > { %v3734_v49 = vpop.f32.mrb[57].mxu1 }
 0x346   : > { %v3735_v50 = vadd.f32 %v3734_v49, %v3733_v45  ;;  %v3736_v53 = vpop.f32.mrb[58].mxu1  ;;  %v1399_v55 = vpack.c.bf16 %v1381_v48, %v1380_v47  ;;  %v1553_v45 = vmul.f32 %v1551_v35, %v1551_v35  ;;  %v5153_v48 = vpop.permute.xlu0 %1525 }
 0x347   : > { %v3737_v59 = vpop.f32.mrb[59].mxu1 }
 0x348   : > { %v5123_v61 = vadd.f32 %v3735_v50, %v4921_v9  ;;  %v3738_v63 = vadd.f32 %v3737_v59, %v3736_v53  ;;  %1496 = vmatprep.subr.bf16.mxu0 %v1399_v55  ;;  %v1554_v50 = vsub.f32 %v1552_v40, %v1553_v45 }
 0x349   : > { %1497 = vmatpush1.bf16.msra.mxu0 %v1335_v57 }
 0x34a   : > { %v5126_v0 = vadd.f32 %v3738_v63, %v4921_v9  ;;  %v1382_v3 = vmul.f32 %v5123_v61, %v5123_v61  ;;  %v5157_v53 = vpop.permute.xlu0 %1530 }
 0x34c   : > { %v3739_v1 = vpop.f32.mrb[60].mxu1  ;;  %v1383_v7 = vmul.f32 %v5126_v0, %v5126_v0  ;;  %v1336_v15 = vpack.c.bf16 %v5126_v0, %v5123_v61 }
 0x34d   : > { %v3740_v8 = vpop.f32.mrb[61].mxu1 }
 0x34e   : > { %v3741_v10 = vadd.f32 %v3740_v8, %v3739_v1  ;;  %v3742_v11 = vpop.f32.mrb[62].mxu1  ;;  %v1400_v12 = vpack.c.bf16 %v1383_v7, %v1382_v3 }
 0x34f   : > { %v3743_v19 = vpop.f32.mrb[63].mxu1 }
 0x350   : > { %v5135_v23 = vadd.f32 %v3741_v10, %v4921_v9  ;;  %v3744_v25 = vadd.f32 %v3743_v19, %v3742_v11  ;;  %1498 = vmatprep.subr.bf16.mxu0 %v1400_v12  ;;  %v5164_v11 = vpop.permute.xlu1 %1535 }
 0x351   : > { %1499 = vmatpush1.bf16.msra.mxu0 %v1336_v15 }
 0x352   : > { %v5138_v26 = vadd.f32 %v3744_v25, %v4921_v9  ;;  %v1384_v28 = vmul.f32 %v5135_v23, %v5135_v23  ;;  %v1560_v9 = vlaneseq }
 0x354   : > { %v1385_v30 = vmul.f32 %v5138_v26, %v5138_v26  ;;  %v1337_v33 = vpack.c.bf16 %v5138_v26, %v5135_v23  ;;  %v1561_v47 = vshrl.u32 %v1560_v9, 7 }
 0x356   : > { %v1401_v31 = vpack.c.bf16 %v1385_v30, %v1384_v28  ;;  %v5155_v49 = vsub.s32 0, %v1561_v47 }
 0x358   : > { %1500 = vmatprep.subr.bf16.mxu0 %v1401_v31  ;;  %v1563_v57 = vrot.slane %v1554_v50, %v5155_v49 }
 0x359   : > { %1501 = vmatpush1.bf16.msra.mxu0 %v1337_v33 }
 0x35c   : > { %1503 = vmatmul.mubr.bf16.vlgmr.msra.gmra.mrb[32].mxu0 %v5012_v32 }
 0x35d   : > { %1512 = vmatprep.mubr.bf16.mxu0 %v5035_v51  ;;  %v1589_v51 = vrot.slane %v1551_v35, %v5155_v49 }
 0x364   : > { %1513 = vmatmul.mubr.bf16.gmra.mrb[36].mxu0 %v5024_v39 }
 0x365   : > { %1720 = vmatprep.mubr.bf16.mxu0 %v6147_v34 }
 0x42f   : > { %v1504_v32 = vpop.f32.mrb[32].mxu0 }
 0x430   : > { %v1543_v39 = vmul.f32 %v5153_v48, %v1504_v32  ;;  %v1506_v55 = vpop.f32.mrb[33].mxu0  ;;  %v5168_v32 = vpop.permute.xlu1 %1540 }
 0x431   : > { %v1508_v59 = vpop.f32.mrb[34].mxu0  ;;  %v1547_v7 = vmul.f32 %v5153_v48, %v1506_v55 }
 0x432   : > { %v1555_v63 = vmul.f32 %v1543_v39, %v1543_v39  ;;  %v1544_v1 = vmul.f32 %v5157_v53, %v1508_v59  ;;  %v1510_v3 = vpop.f32.mrb[35].mxu0  ;;  %v1591_v8 = vmul.f32 %v1589_v51, %v1543_v39 }
 0x433   : > { %v1548_v28 = vmul.f32 %v5157_v53, %v1510_v3 }
 0x434   : > { %v1565_v10 = vmul.f32 %v1563_v57, %v1555_v63  ;;  %v1556_v12 = vmul.f32 %v1544_v1, %v1544_v1  ;;  %v1592_v15 = vmul.f32 %v1589_v51, %v1544_v1 }
 0x436   : > { %v1569_v19 = vsub.f32 %v1547_v7, %v1565_v10  ;;  %v1595_v25 = vpack.c.bf16 %v1592_v15, %v1591_v8  ;;  %v1566_v30 = vmul.f32 %v1563_v57, %v1556_v12 }
 0x437   : > { %v1514_v31 = vpop.f32.mrb[36].mxu0 }
 0x438   : > { %v1573_v33 = vmax.f32 %v1569_v19, 0.0  ;;  %v1570_v9 = vsub.f32 %v1548_v28, %v1566_v30  ;;  %v1545_v35 = vmul.f32 %v5164_v11, %v1514_v31  ;;  %v1516_v40 = vpop.f32.mrb[37].mxu0 }
 0x439   : > { %v1518_v45 = vpop.f32.mrb[38].mxu0  ;;  %v1549_v1 = vmul.f32 %v5164_v11, %v1516_v40 }
 0x43a   : > { %v1577_v47 = vadd.f32 1e-06, %v1573_v33  ;;  %v1574_v50 = vmax.f32 %v1570_v9, 0.0  ;;  %v1557_v39 = vmul.f32 %v1545_v35, %v1545_v35  ;;  %v1520_v55 = vpop.f32.mrb[39].mxu0  ;;  %v1546_v59 = vmul.f32 %v5168_v32, %v1518_v45 }
 0x43b   : > { %v1593_v7 = vmul.f32 %v1589_v51, %v1545_v35  ;;  %v1550_v19 = vmul.f32 %v5168_v32, %v1520_v55  ;;  %v5173_v55 = vpop.trf.xlu0 }
 0x43c   : > { %v1578_v63 = vadd.f32 1e-06, %v1574_v50  ;;  %v1567_v3 = vmul.f32 %v1563_v57, %v1557_v39  ;;  %4204 = vrsqrt.f32 %v1577_v47  ;;  %v1558_v8 = vmul.f32 %v1546_v59, %v1546_v59  ;;  %v4189_v47 = vld [vmem:[#allocation10 + $0x8] sm:$0xff]  }
 0x43d   : > { %v1594_v10 = vmul.f32 %v1589_v51, %v1546_v59  ;;  %v4188_v51 = vld [vmem:[#allocation10] sm:$0xff]  }
 0x43e   : > { %4206 = vrsqrt.f32 %v1578_v63  ;;  %v1571_v12 = vsub.f32 %v1549_v1, %v1567_v3  ;;  %v1568_v28 = vmul.f32 %v1563_v57, %v1558_v8  ;;  %3967 = vmatprep.subr.bf16.mxu1 %v4188_v51  ;;  %v4190_v57 = vld [vmem:[#allocation10 + $0x10] sm:$0xff]  }
 0x43f   : > { %v1596_v15 = vpack.c.bf16 %v1594_v10, %v1593_v7  ;;  %3968 = vmatpush3.bf16.msra.mxu1 %v4188_v51 }
 0x440   : > { %v1575_v30 = vmax.f32 %v1571_v12, 0.0  ;;  %v1572_v31 = vsub.f32 %v1550_v19, %v1568_v28  ;;  %3969 = vmatprep.subr.bf16.mxu1 %v4189_v47  ;;  %v5213_v12 = vpop.trf.xlu1  ;;  %v4191_v28 = vld [vmem:[#allocation10 + $0x18] sm:$0xff]  }
 0x442   : > { %v1579_v33 = vadd.f32 1e-06, %v1575_v30  ;;  %v1576_v9 = vmax.f32 %v1572_v31, 0.0  ;;  %v4192_v31 = vld [vmem:[#allocation10 + $0x20] sm:$0xff]  }
 0x443   : > { %3970 = vmatpush3.bf16.msra.mxu1 %v4189_v47 }
 0x444   : > { %v1580_v34 = vadd.f32 1e-06, %v1576_v9  ;;  %4208 = vrsqrt.f32 %v1579_v33  ;;  %3971 = vmatprep.subr.bf16.mxu1 %v4190_v57  ;;  %v4193_v33 = vld [vmem:[#allocation10 + $0x28] sm:$0xff]  }
 0x446   : > { %v4205_v45 = vpop.eup %4204  ;;  %4210 = vrsqrt.f32 %v1580_v34  ;;  %v6262_v34 = vmov 0  }
 0x447   : > { %3972 = vmatpush3.bf16.msra.mxu1 %v4190_v57 }
 0x448   : > { %v4207_v40 = vpop.eup %4206  ;;  %3973 = vmatprep.subr.bf16.mxu1 %v4191_v28 }
 0x449   : > { %v1599_v50 = vpack.c.bf16 %v4207_v40, %v4205_v45  ;;  %v4194_v45 = vld [vmem:[#allocation10 + $0x30] sm:$0xff]   ;;  %v4195_v40 = vld [vmem:[#allocation10 + $0x38] sm:$0xff]  }
 0x44b   : > { %1688 = vmatprep.subr.bf16.mxu0 %v1599_v50  ;;  %3974 = vmatpush3.bf16.msra.mxu1 %v4191_v28 }
 0x44c   : > { %1689 = vmatpush1.bf16.msra.mxu0 %v1595_v25  ;;  %v5178_v25 = vpop.trf.xlu0  ;;  %3975 = vmatprep.subr.bf16.mxu1 %v4192_v31 }
 0x44e   : > { %v4209_v35 = vpop.eup %4208 }
 0x44f   : > { %3976 = vmatpush3.bf16.msra.mxu1 %v4192_v31 }
 0x450   : > { %v4211_v39 = vpop.eup %4210  ;;  %v5183_v63 = vpop.trf.xlu0  ;;  %3977 = vmatprep.subr.bf16.mxu1 %v4193_v33 }
 0x451   : > { %v1600_v59 = vpack.c.bf16 %v4211_v39, %v4209_v35  ;;  %v5256_v39 = vld [vmem:[%s6127_s6] ss:$0 sm:$0xff] }
 0x453   : > { %1690 = vmatprep.subr.bf16.mxu0 %v1600_v59  ;;  %3978 = vmatpush3.bf16.msra.mxu1 %v4193_v33 }
 0x454   : > { %1691 = vmatpush1.bf16.msra.mxu0 %v1596_v15  ;;  %v5188_v1 = vpop.trf.xlu0  ;;  %v5218_v15 = vpop.trf.xlu1  ;;  %3979 = vmatprep.subr.bf16.mxu1 %v4194_v45 }
 0x457   : > { %3545 = vmatmul.mubr.msk.bf16.vlgmr.msra.gmra.mrb[40].mxu0 %vm1639_vm0, %v5173_v55  ;;  %3980 = vmatpush3.bf16.msra.mxu1 %v4194_v45 }
 0x458   : > { %1730 = vmatprep.mubr.bf16.mxu0 %v6262_v34  ;;  %v5193_v3 = vpop.trf.xlu0  ;;  %v5223_v19 = vpop.trf.xlu1  ;;  %3981 = vmatprep.subr.bf16.mxu1 %v4195_v40 }
 0x459   : > { %6263 = vst [vmem:[#allocation21_spill] sm:$0xff] %v5223_v19 }
 0x45b   : > { %3982 = vmatpush3.bf16.msra.mxu1 %v4195_v40  ;;  %v5264_v40 = vld [vmem:[%s6269_s27] ss:$0 sm:$0xff]  ;;  %s652_s27 = scalar_lea.vmem [#allocation13], %s3495_s0 }
 0x45c   : > { %v5198_v7 = vpop.trf.xlu0  ;;  %v5228_v30 = vpop.trf.xlu1  ;;  %s3329_s19 = sshll.u32 %s652_s27, 4  ;;  %s6072_s19 = int_to_ptr.vmem [resolvable:$true] %s3329_s19 }
 0x45d   : > { %6264 = vst [vmem:[#allocation22_spill] sm:$0xff] %v5228_v30 }
 0x45f   : > { %3546 = vmatmul.mubr.msk.bf16.gmra.mrb[44].mxu0 %vm1639_vm0, %v5178_v25 }
 0x460   : > { %1740 = vmatprep.mubr.bf16.mxu0 %v6262_v34  ;;  %v5203_v8 = vpop.trf.xlu0  ;;  %v5233_v9 = vpop.trf.xlu1 }
 0x461   : > { %6265 = vst [vmem:[#allocation23_spill] sm:$0xff] %v5233_v9 }
 0x464   : > { %v5208_v10 = vpop.trf.xlu0  ;;  %v5238_v50 = vpop.trf.xlu1 }
 0x465   : > { %6266 = vst [vmem:[#allocation24_spill] sm:$0xff] %v5238_v50 }
 0x467   : > { %3547 = vmatmul.mubr.msk.bf16.gmra.mrb[48].mxu0 %vm1639_vm0, %v5183_v63 }
 0x468   : > { %1750 = vmatprep.mubr.bf16.mxu0 %v6262_v34  ;;  %v5243_v35 = vpop.trf.xlu1 }
 0x469   : > { %6267 = vst [vmem:[#allocation25_spill] sm:$0xff] %v5243_v35 }
 0x46c   : > { %v5248_v51 = vpop.trf.xlu1 }
 0x46d   : > { %6268 = vst [vmem:[#allocation26_spill] sm:$0xff] %v5248_v51 }
 0x46f   : > { %3548 = vmatmul.mubr.msk.bf16.gmra.mrb[52].mxu0 %vm1639_vm0, %v5188_v1 }
 0x470   : > { %1760 = vmatprep.mubr.bf16.mxu0 %v6262_v34 }
 0x477   : > { %3549 = vmatmul.mubr.msk.bf16.gmra.mrb[56].mxu0 %vm1639_vm0, %v5193_v3 }
 0x478   : > { %1770 = vmatprep.mubr.bf16.mxu0 %v6262_v34 }
 0x47f   : > { %3550 = vmatmul.mubr.msk.bf16.gmra.mrb[60].mxu0 %vm1639_vm0, %v5198_v7 }
 0x480   : > { %1780 = vmatprep.mubr.bf16.mxu0 %v6262_v34 }
 0x487   : > { %3551 = vmatmul.mubr.msk.bf16.gmra.mrb[64].mxu0 %vm1639_vm0, %v5203_v8 }
 0x488   : > { %1790 = vmatprep.mubr.bf16.mxu0 %v6262_v34 }
 0x48f   : > { %3552 = vmatmul.mubr.msk.bf16.gmra.mrb[68].mxu0 %vm1639_vm0, %v5208_v10 }
 0x490   : > { %1800 = vmatprep.mubr.bf16.mxu0 %v6262_v34 }
 0x497   : > { %3553 = vmatmul.mubr.msk.bf16.gmra.mrb[72].mxu0 %vm1639_vm0, %v5213_v12 }
 0x498   : > { %1810 = vmatprep.mubr.bf16.mxu0 %v6262_v34 }
 0x49f   : > { %3554 = vmatmul.mubr.msk.bf16.gmra.mrb[76].mxu0 %vm1639_vm0, %v5218_v15 }
 0x4a0   : > { %1820 = vmatprep.mubr.bf16.mxu0 %v6262_v34 }
 0x4a7   : > { %3555 = vmatmul.mubr.msk.bf16.gmra.mrb[80].mxu0 %vm1639_vm0, %v5223_v19 }
 0x4a8   : > { %1830 = vmatprep.mubr.bf16.mxu0 %v6262_v34 }
 0x4af   : > { %3556 = vmatmul.mubr.msk.bf16.gmra.mrb[84].mxu0 %vm1639_vm0, %v5228_v30 }
 0x4b0   : > { %1840 = vmatprep.mubr.bf16.mxu0 %v6262_v34 }
 0x4b7   : > { %3557 = vmatmul.mubr.msk.bf16.gmra.mrb[88].mxu0 %vm1639_vm0, %v5233_v9 }
 0x4b8   : > { %1850 = vmatprep.mubr.bf16.mxu0 %v6262_v34 }
 0x4bf   : > { %3558 = vmatmul.mubr.msk.bf16.gmra.mrb[92].mxu0 %vm1639_vm0, %v5238_v50 }
 0x4c0   : > { %1860 = vmatprep.mubr.bf16.mxu0 %v6262_v34 }
 0x4c7   : > { %3559 = vmatmul.mubr.msk.bf16.gmra.mrb[96].mxu0 %vm1639_vm0, %v5243_v35 }
 0x4c8   : > { %1870 = vmatprep.mubr.bf16.mxu0 %v6262_v34 }
 0x4cf   : > { %3560 = vmatmul.mubr.msk.bf16.gmra.mrb[100].mxu0 %vm1639_vm0, %v5248_v51 }
 0x4d0   : > { %2640 = vmatprep.mubr.bf16.mxu0 %v4939_v17 }
 0x52a   : > { %v1722_v47 = vpop.f32.mrb[40].mxu0 }
 0x52b   : > { %v1882_v59 = vsub.f32 %v4928_v14, %v1722_v47  ;;  %v1724_v57 = vpop.f32.mrb[41].mxu0 }
 0x52c   : > { %v1726_v28 = vpop.f32.mrb[42].mxu0 }
 0x52d   : > { %v1920_v31 = vmul.f32 %v5256_v39, %v1882_v59  ;;  %v1883_v33 = vsub.f32 %v4936_v16, %v1726_v28  ;;  %v1728_v45 = vpop.f32.mrb[43].mxu0 }
 0x52f   : > { %v1952_v17 = vmul.f32 %v1920_v31, %v1724_v57  ;;  %v1921_v51 = vmul.f32 %v5256_v39, %v1883_v33 }
 0x531   : > { %v5268_v35 = vadd.f32 %v5264_v40, %v1952_v17  ;;  %v1953_v50 = vmul.f32 %v1921_v51, %v1728_v45 }
 0x532   : > { %v1732_v14 = vpop.f32.mrb[44].mxu0 }
 0x533   : > { %v5271_v47 = vadd.f32 %v5264_v40, %v1953_v50  ;;  %v1884_v59 = vsub.f32 %v4949_v27, %v1732_v14  ;;  %v1734_v16 = vpop.f32.mrb[45].mxu0  ;;  %v6156_v9 = vmax.f32 %v5268_v35, 0.0 }
 0x534   : > { %v1736_v28 = vpop.f32.mrb[46].mxu0 }
 0x535   : > { %v6155_v30 = vmax.f32 %v5271_v47, 0.0  ;;  %v1922_v57 = vmul.f32 %v5256_v39, %v1884_v59  ;;  %v1885_v31 = vsub.f32 %v4952_v29, %v1736_v28  ;;  %v1738_v33 = vpop.f32.mrb[47].mxu0 }
 0x537   : > { %v1954_v17 = vmul.f32 %v1922_v57, %v1734_v16  ;;  %v1923_v51 = vmul.f32 %v5256_v39, %v1885_v31  ;;  %v2055_v50 = vpack.c.bf16 %v6155_v30, %v6156_v9 }
 0x539   : > { %v5284_v27 = vadd.f32 %v5264_v40, %v1954_v17  ;;  %v1955_v45 = vmul.f32 %v1923_v51, %v1738_v33  ;;  %3983 = vmatprep.mubr.bf16.mxu1 %v2055_v50 }
 0x53a   : > { %v1742_v14 = vpop.f32.mrb[48].mxu0 }
 0x53b   : > { %6270 = vst [vmem:[#allocation27_spill] sm:$0xff] %v5284_v27  ;;  %v5287_v19 = vadd.f32 %v5264_v40, %v1955_v45  ;;  %v1886_v29 = vsub.f32 %v4966_v44, %v1742_v14  ;;  %v1744_v59 = vpop.f32.mrb[49].mxu0  ;;  %v6185_v28 = vmax.f32 %v5284_v27, 0.0 }
 0x53c   : > { %v1746_v16 = vpop.f32.mrb[50].mxu0 }
 0x53d   : > { %v6158_v57 = vmax.f32 %v5287_v19, 0.0  ;;  %v1924_v31 = vmul.f32 %v5256_v39, %v1886_v29  ;;  %v1887_v30 = vsub.f32 %v4969_v46, %v1746_v16  ;;  %v1748_v17 = vpop.f32.mrb[51].mxu0 }
 0x53f   : > { %v2056_v33 = vpack.c.bf16 %v6158_v57, %v6185_v28  ;;  %v1956_v51 = vmul.f32 %v1924_v31, %v1744_v59  ;;  %v1925_v50 = vmul.f32 %v5256_v39, %v1887_v30 }
 0x541   : > { %v5300_v44 = vadd.f32 %v5264_v40, %v1956_v51  ;;  %v1957_v45 = vmul.f32 %v1925_v50, %v1748_v17  ;;  %3984 = vmatmul.mubr.bf16.vlgmr.msra.gmra.mrb[64].mxu1 %v2056_v33 }
 0x542   : > { %v1752_v14 = vpop.f32.mrb[52].mxu0 }
 0x543   : > { %v5303_v9 = vadd.f32 %v5264_v40, %v1957_v45  ;;  %v1888_v46 = vsub.f32 %v4978_v56, %v1752_v14  ;;  %v1754_v29 = vpop.f32.mrb[53].mxu0  ;;  %v6160_v27 = vmax.f32 %v5300_v44, 0.0 }
 0x544   : > { %v1756_v16 = vpop.f32.mrb[54].mxu0 }
 0x545   : > { %v6159_v57 = vmax.f32 %v5303_v9, 0.0  ;;  %v1926_v59 = vmul.f32 %v5256_v39, %v1888_v46  ;;  %v1889_v30 = vsub.f32 %v4981_v58, %v1756_v16  ;;  %v1758_v31 = vpop.f32.mrb[55].mxu0 }
 0x547   : > { %v1958_v51 = vmul.f32 %v1926_v59, %v1754_v29  ;;  %v1927_v17 = vmul.f32 %v5256_v39, %v1889_v30  ;;  %v2057_v33 = vpack.c.bf16 %v6159_v57, %v6160_v27 }
 0x549   : > { %v5316_v56 = vadd.f32 %v5264_v40, %v1958_v51  ;;  %v1959_v50 = vmul.f32 %v1927_v17, %v1758_v31  ;;  %3987 = vmatprep.mubr.bf16.mxu1 %v2057_v33 }
 0x54a   : > { %v1762_v45 = vpop.f32.mrb[56].mxu0 }
 0x54b   : > { %v5319_v14 = vadd.f32 %v5264_v40, %v1959_v50  ;;  %v1890_v58 = vsub.f32 %v4990_v4, %v1762_v45  ;;  %v1764_v46 = vpop.f32.mrb[57].mxu0  ;;  %v6162_v16 = vmax.f32 %v5316_v56, 0.0 }
 0x54c   : > { %v1766_v29 = vpop.f32.mrb[58].mxu0 }
 0x54d   : > { %v6161_v59 = vmax.f32 %v5319_v14, 0.0  ;;  %v1928_v30 = vmul.f32 %v5256_v39, %v1890_v58  ;;  %v1891_v57 = vsub.f32 %v4993_v6, %v1766_v29  ;;  %v1768_v51 = vpop.f32.mrb[59].mxu0 }
 0x54f   : > { %v1960_v27 = vmul.f32 %v1928_v30, %v1764_v46  ;;  %v1929_v31 = vmul.f32 %v5256_v39, %v1891_v57  ;;  %v2058_v17 = vpack.c.bf16 %v6161_v59, %v6162_v16 }
 0x551   : > { %v5332_v4 = vadd.f32 %v5264_v40, %v1960_v27  ;;  %v1961_v33 = vmul.f32 %v1929_v31, %v1768_v51  ;;  %3988 = vmatmul.mubr.bf16.gmra.mrb[68].mxu1 %v2058_v17 }
 0x552   : > { %v1772_v50 = vpop.f32.mrb[60].mxu0 }
 0x553   : > { %v5335_v45 = vadd.f32 %v5264_v40, %v1961_v33  ;;  %v1892_v6 = vsub.f32 %v5002_v20, %v1772_v50  ;;  %v1774_v58 = vpop.f32.mrb[61].mxu0  ;;  %v6164_v57 = vmax.f32 %v5332_v4, 0.0 }
 0x554   : > { %v1776_v46 = vpop.f32.mrb[62].mxu0 }
 0x555   : > { %v6163_v29 = vmax.f32 %v5335_v45, 0.0  ;;  %v1930_v30 = vmul.f32 %v5256_v39, %v1892_v6  ;;  %v1893_v59 = vsub.f32 %v5005_v22, %v1776_v46  ;;  %v1778_v27 = vpop.f32.mrb[63].mxu0 }
 0x557   : > { %v1962_v16 = vmul.f32 %v1930_v30, %v1774_v58  ;;  %v1931_v51 = vmul.f32 %v5256_v39, %v1893_v59  ;;  %v2059_v31 = vpack.c.bf16 %v6163_v29, %v6164_v57 }
 0x559   : > { %v5348_v20 = vadd.f32 %v5264_v40, %v1962_v16  ;;  %v1963_v17 = vmul.f32 %v1931_v51, %v1778_v27  ;;  %3991 = vmatprep.mubr.bf16.mxu1 %v2059_v31 }
 0x55a   : > { %v1782_v33 = vpop.f32.mrb[64].mxu0 }
 0x55b   : > { %v5351_v50 = vadd.f32 %v5264_v40, %v1963_v17  ;;  %v1894_v22 = vsub.f32 %v5017_v36, %v1782_v33  ;;  %v1784_v6 = vpop.f32.mrb[65].mxu0  ;;  %v6166_v59 = vmax.f32 %v5348_v20, 0.0 }
 0x55c   : > { %v1786_v58 = vpop.f32.mrb[66].mxu0 }
 0x55d   : > { %6271 = vst [vmem:[#allocation28_spill] sm:$0xff] %v5351_v50  ;;  %v6165_v46 = vmax.f32 %v5351_v50, 0.0  ;;  %v1932_v30 = vmul.f32 %v5256_v39, %v1894_v22  ;;  %v1895_v29 = vsub.f32 %v5021_v38, %v1786_v58  ;;  %v1788_v16 = vpop.f32.mrb[67].mxu0 }
 0x55f   : > { %v1964_v57 = vmul.f32 %v1932_v30, %v1784_v6  ;;  %v1933_v27 = vmul.f32 %v5256_v39, %v1895_v29  ;;  %v2060_v51 = vpack.c.bf16 %v6165_v46, %v6166_v59 }
 0x561   : > { %v5364_v36 = vadd.f32 %v5264_v40, %v1964_v57  ;;  %v1965_v31 = vmul.f32 %v1933_v27, %v1788_v16  ;;  %3992 = vmatmul.mubr.bf16.gmra.mrb[72].mxu1 %v2060_v51 }
 0x562   : > { %v1792_v17 = vpop.f32.mrb[68].mxu0 }
 0x563   : > { %6272 = vst [vmem:[#allocation29_spill] sm:$0xff] %v5364_v36  ;;  %v5367_v33 = vadd.f32 %v5264_v40, %v1965_v31  ;;  %v1896_v38 = vsub.f32 %v5038_v52, %v1792_v17  ;;  %v1794_v22 = vpop.f32.mrb[69].mxu0  ;;  %v6168_v29 = vmax.f32 %v5364_v36, 0.0 }
 0x564   : > { %v1796_v6 = vpop.f32.mrb[70].mxu0 }
 0x565   : > { %6273 = vst [vmem:[#allocation30_spill] sm:$0xff] %v5367_v33  ;;  %v6167_v58 = vmax.f32 %v5367_v33, 0.0  ;;  %v1934_v30 = vmul.f32 %v5256_v39, %v1896_v38  ;;  %v1897_v46 = vsub.f32 %v5042_v54, %v1796_v6  ;;  %v1798_v57 = vpop.f32.mrb[71].mxu0 }
 0x567   : > { %v1966_v59 = vmul.f32 %v1934_v30, %v1794_v22  ;;  %v1935_v16 = vmul.f32 %v5256_v39, %v1897_v46  ;;  %v2061_v27 = vpack.c.bf16 %v6167_v58, %v6168_v29 }
 0x569   : > { %v5380_v52 = vadd.f32 %v5264_v40, %v1966_v59  ;;  %v1967_v51 = vmul.f32 %v1935_v16, %v1798_v57  ;;  %3995 = vmatprep.mubr.bf16.mxu1 %v2061_v27 }
 0x56a   : > { %v1802_v31 = vpop.f32.mrb[72].mxu0 }
 0x56b   : > { %6274 = vst [vmem:[#allocation31_spill] sm:$0xff] %v5380_v52  ;;  %v5383_v17 = vadd.f32 %v5264_v40, %v1967_v51  ;;  %v1898_v54 = vsub.f32 %v5051_v2, %v1802_v31  ;;  %v1804_v38 = vpop.f32.mrb[73].mxu0  ;;  %v6170_v46 = vmax.f32 %v5380_v52, 0.0 }
 0x56c   : > { %v1806_v22 = vpop.f32.mrb[74].mxu0 }
 0x56d   : > { %6275 = vst [vmem:[#allocation32_spill] sm:$0xff] %v5383_v17  ;;  %v6169_v6 = vmax.f32 %v5383_v17, 0.0  ;;  %v1936_v30 = vmul.f32 %v5256_v39, %v1898_v54  ;;  %v1899_v58 = vsub.f32 %v5054_v5, %v1806_v22  ;;  %v1808_v59 = vpop.f32.mrb[75].mxu0 }
 0x56f   : > { %v1968_v29 = vmul.f32 %v1936_v30, %v1804_v38  ;;  %v1937_v57 = vmul.f32 %v5256_v39, %v1899_v58  ;;  %v2062_v16 = vpack.c.bf16 %v6169_v6, %v6170_v46 }
 0x571   : > { %v5396_v2 = vadd.f32 %v5264_v40, %v1968_v29  ;;  %v1969_v27 = vmul.f32 %v1937_v57, %v1808_v59  ;;  %3996 = vmatmul.mubr.bf16.gmra.mrb[76].mxu1 %v2062_v16 }
 0x572   : > { %v1812_v51 = vpop.f32.mrb[76].mxu0 }
 0x573   : > { %6276 = vst [vmem:[#allocation33_spill] sm:$0xff] %v5396_v2  ;;  %v5399_v31 = vadd.f32 %v5264_v40, %v1969_v27  ;;  %v1900_v5 = vsub.f32 %v5063_v21, %v1812_v51  ;;  %v1814_v54 = vpop.f32.mrb[77].mxu0  ;;  %v6172_v58 = vmax.f32 %v5396_v2, 0.0 }
 0x574   : > { %v1816_v38 = vpop.f32.mrb[78].mxu0 }
 0x575   : > { %6277 = vst [vmem:[#allocation34_spill] sm:$0xff] %v5399_v31  ;;  %v6171_v22 = vmax.f32 %v5399_v31, 0.0  ;;  %v1938_v30 = vmul.f32 %v5256_v39, %v1900_v5  ;;  %v1901_v6 = vsub.f32 %v5066_v24, %v1816_v38  ;;  %v1818_v29 = vpop.f32.mrb[79].mxu0 }
 0x577   : > { %v1970_v46 = vmul.f32 %v1938_v30, %v1814_v54  ;;  %v1939_v59 = vmul.f32 %v5256_v39, %v1901_v6  ;;  %v2063_v57 = vpack.c.bf16 %v6171_v22, %v6172_v58 }
 0x579   : > { %v5412_v21 = vadd.f32 %v5264_v40, %v1970_v46  ;;  %v1971_v16 = vmul.f32 %v1939_v59, %v1818_v29  ;;  %3999 = vmatprep.mubr.bf16.mxu1 %v2063_v57 }
 0x57a   : > { %v1822_v27 = vpop.f32.mrb[80].mxu0 }
 0x57b   : > { %6278 = vst [vmem:[#allocation35_spill] sm:$0xff] %v5412_v21  ;;  %v5415_v51 = vadd.f32 %v5264_v40, %v1971_v16  ;;  %v1902_v24 = vsub.f32 %v5075_v41, %v1822_v27  ;;  %v1824_v5 = vpop.f32.mrb[81].mxu0  ;;  %v6174_v6 = vmax.f32 %v5412_v21, 0.0 }
 0x57c   : > { %v1826_v54 = vpop.f32.mrb[82].mxu0 }
 0x57d   : > { %6279 = vst [vmem:[#allocation36_spill] sm:$0xff] %v5415_v51  ;;  %v6173_v38 = vmax.f32 %v5415_v51, 0.0  ;;  %v1940_v30 = vmul.f32 %v5256_v39, %v1902_v24  ;;  %v1903_v22 = vsub.f32 %v5078_v43, %v1826_v54  ;;  %v1828_v46 = vpop.f32.mrb[83].mxu0 }
 0x57f   : > { %v1972_v58 = vmul.f32 %v1940_v30, %v1824_v5  ;;  %v1941_v29 = vmul.f32 %v5256_v39, %v1903_v22  ;;  %v2064_v59 = vpack.c.bf16 %v6173_v38, %v6174_v6 }
 0x581   : > { %v5428_v41 = vadd.f32 %v5264_v40, %v1972_v58  ;;  %v1973_v57 = vmul.f32 %v1941_v29, %v1828_v46  ;;  %4000 = vmatmul.mubr.bf16.gmra.mrb[80].mxu1 %v2064_v59 }
 0x582   : > { %v1832_v16 = vpop.f32.mrb[84].mxu0 }
 0x583   : > { %6280 = vst [vmem:[#allocation37_spill] sm:$0xff] %v5428_v41  ;;  %v5431_v27 = vadd.f32 %v5264_v40, %v1973_v57  ;;  %v1904_v43 = vsub.f32 %v5087_v60, %v1832_v16  ;;  %v1834_v24 = vpop.f32.mrb[85].mxu0  ;;  %v6176_v22 = vmax.f32 %v5428_v41, 0.0 }
 0x584   : > { %v1836_v5 = vpop.f32.mrb[86].mxu0 }
 0x585   : > { %6281 = vst [vmem:[#allocation38_spill] sm:$0xff] %v5431_v27  ;;  %v6175_v54 = vmax.f32 %v5431_v27, 0.0  ;;  %v1942_v30 = vmul.f32 %v5256_v39, %v1904_v43  ;;  %v1905_v38 = vsub.f32 %v5090_v62, %v1836_v5  ;;  %v1838_v58 = vpop.f32.mrb[87].mxu0 }
 0x587   : > { %v1974_v6 = vmul.f32 %v1942_v30, %v1834_v24  ;;  %v1943_v46 = vmul.f32 %v5256_v39, %v1905_v38  ;;  %v2065_v29 = vpack.c.bf16 %v6175_v54, %v6176_v22 }
 0x589   : > { %v5444_v60 = vadd.f32 %v5264_v40, %v1974_v6  ;;  %v1975_v59 = vmul.f32 %v1943_v46, %v1838_v58  ;;  %4003 = vmatprep.mubr.bf16.mxu1 %v2065_v29 }
 0x58a   : > { %v1842_v57 = vpop.f32.mrb[88].mxu0 }
 0x58b   : > { %6282 = vst [vmem:[#allocation39_spill] sm:$0xff] %v5444_v60  ;;  %v5447_v16 = vadd.f32 %v5264_v40, %v1975_v59  ;;  %v1906_v62 = vsub.f32 %v5099_v13, %v1842_v57  ;;  %v1844_v43 = vpop.f32.mrb[89].mxu0  ;;  %v6178_v38 = vmax.f32 %v5444_v60, 0.0 }
 0x58c   : > { %v1846_v24 = vpop.f32.mrb[90].mxu0 }
 0x58d   : > { %6283 = vst [vmem:[#allocation40_spill] sm:$0xff] %v5447_v16  ;;  %v6177_v5 = vmax.f32 %v5447_v16, 0.0  ;;  %v1944_v30 = vmul.f32 %v5256_v39, %v1906_v62  ;;  %v1907_v54 = vsub.f32 %v5102_v18, %v1846_v24  ;;  %v1848_v6 = vpop.f32.mrb[91].mxu0 }
 0x58f   : > { %v1976_v22 = vmul.f32 %v1944_v30, %v1844_v43  ;;  %v1945_v58 = vmul.f32 %v5256_v39, %v1907_v54  ;;  %v2066_v46 = vpack.c.bf16 %v6177_v5, %v6178_v38 }
 0x591   : > { %v5460_v13 = vadd.f32 %v5264_v40, %v1976_v22  ;;  %v1977_v29 = vmul.f32 %v1945_v58, %v1848_v6  ;;  %4004 = vmatmul.mubr.bf16.gmra.mrb[84].mxu1 %v2066_v46 }
 0x592   : > { %v1852_v59 = vpop.f32.mrb[92].mxu0 }
 0x593   : > { %6284 = vst [vmem:[#allocation41_spill] sm:$0xff] %v5460_v13  ;;  %v5463_v57 = vadd.f32 %v5264_v40, %v1977_v29  ;;  %v1908_v18 = vsub.f32 %v5111_v37, %v1852_v59  ;;  %v1854_v62 = vpop.f32.mrb[93].mxu0  ;;  %v6180_v54 = vmax.f32 %v5460_v13, 0.0 }
 0x594   : > { %v1856_v43 = vpop.f32.mrb[94].mxu0 }
 0x595   : > { %6285 = vst [vmem:[#allocation42_spill] sm:$0xff] %v5463_v57  ;;  %v6179_v24 = vmax.f32 %v5463_v57, 0.0  ;;  %v1946_v30 = vmul.f32 %v5256_v39, %v1908_v18  ;;  %v1909_v5 = vsub.f32 %v5114_v42, %v1856_v43  ;;  %v1858_v22 = vpop.f32.mrb[95].mxu0 }
 0x597   : > { %v1978_v38 = vmul.f32 %v1946_v30, %v1854_v62  ;;  %v1947_v6 = vmul.f32 %v5256_v39, %v1909_v5  ;;  %v2067_v58 = vpack.c.bf16 %v6179_v24, %v6180_v54 }
 0x599   : > { %v5476_v37 = vadd.f32 %v5264_v40, %v1978_v38  ;;  %v1979_v46 = vmul.f32 %v1947_v6, %v1858_v22  ;;  %4007 = vmatprep.mubr.bf16.mxu1 %v2067_v58 }
 0x59a   : > { %v1862_v29 = vpop.f32.mrb[96].mxu0 }
 0x59b   : > { %6286 = vst [vmem:[#allocation43_spill] sm:$0xff] %v5476_v37  ;;  %v5479_v59 = vadd.f32 %v5264_v40, %v1979_v46  ;;  %v1910_v42 = vsub.f32 %v5123_v61, %v1862_v29  ;;  %v1864_v18 = vpop.f32.mrb[97].mxu0  ;;  %v6184_v5 = vmax.f32 %v5476_v37, 0.0 }
 0x59c   : > { %v1866_v62 = vpop.f32.mrb[98].mxu0 }
 0x59d   : > { %6287 = vst [vmem:[#allocation44_spill] sm:$0xff] %v5479_v59  ;;  %v6181_v43 = vmax.f32 %v5479_v59, 0.0  ;;  %v1948_v30 = vmul.f32 %v5256_v39, %v1910_v42  ;;  %v1911_v24 = vsub.f32 %v5126_v0, %v1866_v62  ;;  %v1868_v38 = vpop.f32.mrb[99].mxu0 }
 0x59f   : > { %v1980_v54 = vmul.f32 %v1948_v30, %v1864_v18  ;;  %v1949_v22 = vmul.f32 %v5256_v39, %v1911_v24  ;;  %v2068_v6 = vpack.c.bf16 %v6181_v43, %v6184_v5 }
 0x5a1   : > { %v5492_v61 = vadd.f32 %v5264_v40, %v1980_v54  ;;  %v1981_v58 = vmul.f32 %v1949_v22, %v1868_v38  ;;  %4008 = vmatmul.mubr.bf16.gmra.mrb[88].mxu1 %v2068_v6 }
 0x5a2   : > { %v1872_v46 = vpop.f32.mrb[100].mxu0 }
 0x5a3   : > { %6288 = vst [vmem:[#allocation45_spill] sm:$0xff] %v5492_v61  ;;  %v5495_v29 = vadd.f32 %v5264_v40, %v1981_v58  ;;  %v1912_v0 = vsub.f32 %v5135_v23, %v1872_v46  ;;  %v1874_v42 = vpop.f32.mrb[101].mxu0  ;;  %v6183_v24 = vmax.f32 %v5492_v61, 0.0 }
 0x5a4   : > { %v1876_v18 = vpop.f32.mrb[102].mxu0 }
 0x5a5   : > { %6289 = vst [vmem:[#allocation46_spill] sm:$0xff] %v5495_v29  ;;  %v6182_v62 = vmax.f32 %v5495_v29, 0.0  ;;  %v1950_v30 = vmul.f32 %v5256_v39, %v1912_v0  ;;  %v1913_v54 = vsub.f32 %v5138_v26, %v1876_v18  ;;  %v1878_v43 = vpop.f32.mrb[103].mxu0 }
 0x5a7   : > { %v1982_v38 = vmul.f32 %v1950_v30, %v1874_v42  ;;  %v1951_v22 = vmul.f32 %v5256_v39, %v1913_v54  ;;  %v2069_v23 = vpack.c.bf16 %v6182_v62, %v6183_v24  ;;  %v4220_v42 = vld [vmem:[%s4832_s7 + $0x4] ss:$8 sps:$4 sm:$0xff]  }
 0x5a9   : > { %v5508_v6 = vadd.f32 %v5264_v40, %v1982_v38  ;;  %v1983_v58 = vmul.f32 %v1951_v22, %v1878_v43  ;;  %4011 = vmatprep.mubr.bf16.mxu1 %v2069_v23 }
 0x5ab   : > { %6290 = vst [vmem:[#allocation47_spill] sm:$0xff] %v5508_v6  ;;  %v5511_v46 = vadd.f32 %v5264_v40, %v1983_v58  ;;  %v6190_v0 = vmax.f32 %v5508_v6, 0.0 }
 0x5ad   : > { %6291 = vst [vmem:[#allocation48_spill] sm:$0xff] %v5511_v46  ;;  %v6189_v26 = vmax.f32 %v5511_v46, 0.0 }
 0x5af   : > { %v2070_v39 = vpack.c.bf16 %v6189_v26, %v6190_v0 }
 0x5b1   : > { %4012 = vmatmul.mubr.bf16.gmra.mrb[92].mxu1 %v2070_v39 }
 0x5b2   : > { %2351 = vmatprep.mubr.bf16.mxu1 %v4220_v42 }
 0x614   : > { %v3985_v18 = vpop.f32.mrb[64].mxu1 }
 0x615   : > { %v2169_v30 = vpop.f32.mrb[65].mxu1 }
 0x616   : > { %v3986_v54 = vpop.f32.mrb[66].mxu1 }
 0x617   : > { %v2297_v43 = vpack.c.bf16 %v3986_v54, %v3985_v18  ;;  %v2172_v38 = vpop.f32.mrb[67].mxu1 }
 0x618   : > { %v2296_v22 = vpack.c.bf16 %v2172_v38, %v2169_v30 }
 0x624   : > { %v3989_v40 = vpop.f32.mrb[68].mxu1 }
 0x625   : > { %v2185_v23 = vpop.f32.mrb[69].mxu1 }
 0x626   : > { %v3990_v58 = vpop.f32.mrb[70].mxu1 }
 0x627   : > { %v2299_v62 = vpack.c.bf16 %v3990_v58, %v3989_v40  ;;  %v2188_v24 = vpop.f32.mrb[71].mxu1 }
 0x628   : > { %v2298_v5 = vpack.c.bf16 %v2188_v24, %v2185_v23 }
 0x634   : > { %v3993_v28 = vpop.f32.mrb[72].mxu1 }
 0x635   : > { %v2201_v6 = vpop.f32.mrb[73].mxu1 }
 0x636   : > { %v3994_v29 = vpop.f32.mrb[74].mxu1 }
 0x637   : > { %v2301_v46 = vpack.c.bf16 %v3994_v29, %v3993_v28  ;;  %v2204_v26 = vpop.f32.mrb[75].mxu1 }
 0x638   : > { %v2300_v39 = vpack.c.bf16 %v2204_v26, %v2201_v6 }
 0x644   : > { %v3997_v0 = vpop.f32.mrb[76].mxu1 }
 0x645   : > { %v2217_v42 = vpop.f32.mrb[77].mxu1 }
 0x646   : > { %v3998_v61 = vpop.f32.mrb[78].mxu1 }
 0x647   : > { %v2303_v59 = vpack.c.bf16 %v3998_v61, %v3997_v0  ;;  %v2220_v37 = vpop.f32.mrb[79].mxu1 }
 0x648   : > { %v2302_v18 = vpack.c.bf16 %v2220_v37, %v2217_v42 }
 0x654   : > { %v4001_v54 = vpop.f32.mrb[80].mxu1 }
 0x655   : > { %v2233_v30 = vpop.f32.mrb[81].mxu1 }
 0x656   : > { %v4002_v38 = vpop.f32.mrb[82].mxu1 }
 0x657   : > { %v2305_v57 = vpack.c.bf16 %v4002_v38, %v4001_v54  ;;  %v2236_v13 = vpop.f32.mrb[83].mxu1  ;;  %v4224_v38 = vld [vmem:[%s4832_s7 + $0x24] ss:$8 sps:$4 sm:$0xff]  }
 0x658   : > { %v2304_v40 = vpack.c.bf16 %v2236_v13, %v2233_v30  ;;  %v4221_v30 = vld [vmem:[%s4832_s7] ss:$8 sps:$4 sm:$0xff]  }
 0x65a   : > { %3769 = vmatprep.subr.bf16.mxu1 %v2304_v40  ;;  %v4225_v40 = vld [vmem:[%s4832_s7 + $0x20] ss:$8 sps:$4 sm:$0xff]  }
 0x65b   : > { %3770 = vmatpush3.bf16.msra.mxu1 %v2296_v22 }
 0x65c   : > { %3771 = vmatprep.subr.bf16.mxu1 %v2305_v57 }
 0x65f   : > { %3772 = vmatpush3.bf16.msra.mxu1 %v2297_v43 }
 0x664   : > { %v4005_v24 = vpop.f32.mrb[84].mxu1 }
 0x665   : > { %v2249_v28 = vpop.f32.mrb[85].mxu1 }
 0x666   : > { %v4006_v29 = vpop.f32.mrb[86].mxu1 }
 0x667   : > { %v2307_v6 = vpack.c.bf16 %v4006_v29, %v4005_v24  ;;  %v2252_v26 = vpop.f32.mrb[87].mxu1  ;;  %v4226_v24 = vld [vmem:[%s4832_s7 + $0x34] ss:$8 sps:$4 sm:$0xff]  }
 0x668   : > { %v2306_v23 = vpack.c.bf16 %v2252_v26, %v2249_v28  ;;  %v4229_v28 = vld [vmem:[%s4832_s7 + $0x40] ss:$8 sps:$4 sm:$0xff]   ;;  %v4230_v29 = vld [vmem:[%s4832_s7 + $0x54] ss:$8 sps:$4 sm:$0xff]   ;;  %v4232_v26 = vld [vmem:[%s4832_s7 + $0x64] ss:$8 sps:$4 sm:$0xff]  }
 0x66a   : > { %3773 = vmatprep.subr.bf16.mxu1 %v2306_v23  ;;  %v4233_v23 = vld [vmem:[%s4832_s7 + $0x60] ss:$8 sps:$4 sm:$0xff]  }
 0x66b   : > { %3774 = vmatpush3.bf16.msra.mxu1 %v2298_v5 }
 0x66c   : > { %3775 = vmatprep.subr.bf16.mxu1 %v2307_v6  ;;  %v4231_v6 = vld [vmem:[%s4832_s7 + $0x50] ss:$8 sps:$4 sm:$0xff]  }
 0x66f   : > { %3776 = vmatpush3.bf16.msra.mxu1 %v2299_v62 }
 0x674   : > { %v4009_v37 = vpop.f32.mrb[88].mxu1 }
 0x675   : > { %v2265_v61 = vpop.f32.mrb[89].mxu1 }
 0x676   : > { %v4010_v0 = vpop.f32.mrb[90].mxu1 }
 0x677   : > { %v2309_v58 = vpack.c.bf16 %v4010_v0, %v4009_v37  ;;  %v2268_v42 = vpop.f32.mrb[91].mxu1  ;;  %v4234_v37 = vld [vmem:[%s4832_s7 + $0x74] ss:$8 sps:$4 sm:$0xff]   ;;  %v4236_v0 = vld [vmem:[%s4832_s7 + $0x84] ss:$8 sps:$4 sm:$0xff]  }
 0x678   : > { %v2308_v13 = vpack.c.bf16 %v2268_v42, %v2265_v61  ;;  %v4235_v61 = vld [vmem:[%s4832_s7 + $0x70] ss:$8 sps:$4 sm:$0xff]   ;;  %v4238_v42 = vld [vmem:[%s4832_s7 + $0x94] ss:$8 sps:$4 sm:$0xff]  }
 0x67a   : > { %3777 = vmatprep.subr.bf16.mxu1 %v2308_v13  ;;  %v4239_v13 = vld [vmem:[%s4832_s7 + $0x90] ss:$8 sps:$4 sm:$0xff]  }
 0x67b   : > { %3778 = vmatpush3.bf16.msra.mxu1 %v2300_v39  ;;  %v4222_v39 = vld [vmem:[%s4832_s7 + $0x14] ss:$8 sps:$4 sm:$0xff]  }
 0x67c   : > { %3779 = vmatprep.subr.bf16.mxu1 %v2309_v58  ;;  %v4237_v58 = vld [vmem:[%s4832_s7 + $0x80] ss:$8 sps:$4 sm:$0xff]  }
 0x67f   : > { %3780 = vmatpush3.bf16.msra.mxu1 %v2301_v46  ;;  %v4223_v46 = vld [vmem:[%s4832_s7 + $0x10] ss:$8 sps:$4 sm:$0xff]  }
 0x684   : > { %v4013_v57 = vpop.f32.mrb[92].mxu1 }
 0x685   : > { %v2281_v43 = vpop.f32.mrb[93].mxu1 }
 0x686   : > { %v4014_v22 = vpop.f32.mrb[94].mxu1 }
 0x687   : > { %v2311_v5 = vpack.c.bf16 %v4014_v22, %v4013_v57  ;;  %v2284_v62 = vpop.f32.mrb[95].mxu1  ;;  %v4240_v57 = vld [vmem:[%s4832_s7 + $0xa4] ss:$8 sps:$4 sm:$0xff]   ;;  %v4242_v22 = vld [vmem:[%s4832_s7 + $0xb4] ss:$8 sps:$4 sm:$0xff]  }
 0x688   : > { %v2310_v54 = vpack.c.bf16 %v2284_v62, %v2281_v43  ;;  %v4241_v43 = vld [vmem:[%s4832_s7 + $0xa0] ss:$8 sps:$4 sm:$0xff]   ;;  %v4244_v62 = vld [vmem:[%s4832_s7 + $0xc4] ss:$8 sps:$4 sm:$0xff]  }
 0x68a   : > { %3781 = vmatprep.subr.bf16.mxu1 %v2310_v54  ;;  %v4245_v54 = vld [vmem:[%s4832_s7 + $0xc0] ss:$8 sps:$4 sm:$0xff]  }
 0x68b   : > { %3782 = vmatpush3.bf16.msra.mxu1 %v2302_v18  ;;  %v4227_v18 = vld [vmem:[%s4832_s7 + $0x30] ss:$8 sps:$4 sm:$0xff]  }
 0x68c   : > { %3783 = vmatprep.subr.bf16.mxu1 %v2311_v5  ;;  %v4243_v5 = vld [vmem:[%s4832_s7 + $0xb0] ss:$8 sps:$4 sm:$0xff]  }
 0x68f   : > { %3784 = vmatpush3.bf16.msra.mxu1 %v2303_v59  ;;  %v4228_v59 = vld [vmem:[%s4832_s7 + $0x44] ss:$8 sps:$4 sm:$0xff]  }
 0x692   : > { %2352 = vmatmul.mubr.bf16.vlgmr.msra.gmra.mrb[96].mxu1 %v4221_v30  ;;  %v4246_v30 = vld [vmem:[%s4832_s7 + $0xd4] ss:$8 sps:$4 sm:$0xff]  }
 0x693   : > { %2359 = vmatprep.mubr.bf16.mxu1 %v4222_v39  ;;  %v4247_v39 = vld [vmem:[%s4832_s7 + $0xd0] ss:$8 sps:$4 sm:$0xff]  }
 0x69a   : > { %2360 = vmatmul.mubr.bf16.gmra.mrb[100].mxu1 %v4223_v46  ;;  %v4248_v46 = vld [vmem:[%s4832_s7 + $0xe4] ss:$8 sps:$4 sm:$0xff]  }
 0x69b   : > { %2367 = vmatprep.mubr.bf16.mxu1 %v4224_v38  ;;  %v4249_v38 = vld [vmem:[%s4832_s7 + $0xe0] ss:$8 sps:$4 sm:$0xff]  }
 0x6a2   : > { %2368 = vmatmul.mubr.bf16.gmra.mrb[104].mxu1 %v4225_v40  ;;  %v4250_v40 = vld [vmem:[%s4832_s7 + $0xf4] ss:$8 sps:$4 sm:$0xff]  }
 0x6a3   : > { %2375 = vmatprep.mubr.bf16.mxu1 %v4226_v24  ;;  %v4251_v24 = vld [vmem:[%s4832_s7 + $0xf0] ss:$8 sps:$4 sm:$0xff]  }
 0x6aa   : > { %2376 = vmatmul.mubr.bf16.gmra.mrb[108].mxu1 %v4227_v18  ;;  %v4252_v18 = vld [vmem:[%s4933_s28 + $0x4] ss:$8 sps:$4 sm:$0xff]  }
 0x6ab   : > { %2383 = vmatprep.mubr.bf16.mxu1 %v4228_v59 }
 0x6b2   : > { %2384 = vmatmul.mubr.bf16.gmra.mrb[112].mxu1 %v4229_v28  ;;  %v5555_v28 = vld [vmem:[%s6292_s21] ss:$0 sm:$0xff] }
 0x6b3   : > { %2391 = vmatprep.mubr.bf16.mxu1 %v4230_v29 }
 0x6ba   : > { %2392 = vmatmul.mubr.bf16.gmra.mrb[116].mxu1 %v4231_v6 }
 0x6bb   : > { %2399 = vmatprep.mubr.bf16.mxu1 %v4232_v26 }
 0x6c2   : > { %2400 = vmatmul.mubr.bf16.gmra.mrb[120].mxu1 %v4233_v23 }
 0x6c3   : > { %2407 = vmatprep.mubr.bf16.mxu1 %v4234_v37 }
 0x6ca   : > { %2408 = vmatmul.mubr.bf16.gmra.mrb[124].mxu1 %v4235_v61 }
 0x6cb   : > { %2415 = vmatprep.mubr.bf16.mxu1 %v4236_v0 }
 0x6d2   : > { %2416 = vmatmul.mubr.bf16.gmra.mrb[128].mxu1 %v4237_v58 }
 0x6d3   : > { %2423 = vmatprep.mubr.bf16.mxu1 %v4238_v42 }
 0x6da   : > { %2424 = vmatmul.mubr.bf16.gmra.mrb[132].mxu1 %v4239_v13 }
 0x6db   : > { %2431 = vmatprep.mubr.bf16.mxu1 %v4240_v57 }
 0x6e2   : > { %2432 = vmatmul.mubr.bf16.gmra.mrb[136].mxu1 %v4241_v43 }
 0x6e3   : > { %2439 = vmatprep.mubr.bf16.mxu1 %v4242_v22 }
 0x6ea   : > { %2440 = vmatmul.mubr.bf16.gmra.mrb[140].mxu1 %v4243_v5 }
 0x6eb   : > { %2447 = vmatprep.mubr.bf16.mxu1 %v4244_v62 }
 0x6f2   : > { %2448 = vmatmul.mubr.bf16.gmra.mrb[144].mxu1 %v4245_v54 }
 0x6f3   : > { %2455 = vmatprep.mubr.bf16.mxu1 %v4246_v30 }
 0x6fa   : > { %2456 = vmatmul.mubr.bf16.gmra.mrb[148].mxu1 %v4247_v39 }
 0x6fb   : > { %2463 = vmatprep.mubr.bf16.mxu1 %v4248_v46 }
 0x702   : > { %2464 = vmatmul.mubr.bf16.gmra.mrb[152].mxu1 %v4249_v38 }
 0x703   : > { %2471 = vmatprep.mubr.bf16.mxu1 %v4250_v40 }
 0x70a   : > { %2472 = vmatmul.mubr.bf16.gmra.mrb[156].mxu1 %v4251_v24 }
 0x70b   : > { %3172 = vmatprep.mubr.bf16.mxu1 %v4252_v18 }
 0x765   : > { %v3785_v59 = vpop.f32.mrb[96].mxu1 }
 0x766   : > { %v3786_v29 = vpop.f32.mrb[97].mxu1 }
 0x767   : > { %v3787_v6 = vadd.f32 %v3786_v29, %v3785_v59  ;;  %v3788_v26 = vpop.f32.mrb[98].mxu1 }
 0x768   : > { %v3789_v23 = vpop.f32.mrb[99].mxu1 }
 0x769   : > { %v5558_v37 = vadd.f32 %v3787_v6, %v5555_v28  ;;  %v3790_v61 = vadd.f32 %v3789_v23, %v3788_v26 }
 0x76b   : > { %v5561_v0 = vadd.f32 %v3790_v61, %v5555_v28  ;;  %v2512_v42 = vmul.f32 %v5558_v37, %v5558_v37 }
 0x76d   : > { %v3791_v58 = vpop.f32.mrb[100].mxu1  ;;  %v2513_v13 = vmul.f32 %v5561_v0, %v5561_v0  ;;  %v2480_v62 = vpack.c.bf16 %v5561_v0, %v5558_v37 }
 0x76e   : > { %v3792_v57 = vpop.f32.mrb[101].mxu1 }
 0x76f   : > { %v3793_v43 = vadd.f32 %v3792_v57, %v3791_v58  ;;  %v3794_v22 = vpop.f32.mrb[102].mxu1  ;;  %v2544_v5 = vpack.c.bf16 %v2513_v13, %v2512_v42 }
 0x770   : > { %v3795_v54 = vpop.f32.mrb[103].mxu1 }
 0x771   : > { %v5570_v30 = vadd.f32 %v3793_v43, %v5555_v28  ;;  %v3796_v39 = vadd.f32 %v3795_v54, %v3794_v22  ;;  %2608 = vmatprep.subr.bf16.mxu0 %v2544_v5 }
 0x772   : > { %2609 = vmatpush1.bf16.msra.mxu0 %v2480_v62 }
 0x773   : > { %v5573_v46 = vadd.f32 %v3796_v39, %v5555_v28  ;;  %v2514_v40 = vmul.f32 %v5570_v30, %v5570_v30 }
 0x775   : > { %v3797_v38 = vpop.f32.mrb[104].mxu1  ;;  %v2515_v24 = vmul.f32 %v5573_v46, %v5573_v46  ;;  %v2481_v26 = vpack.c.bf16 %v5573_v46, %v5570_v30 }
 0x776   : > { %v3798_v18 = vpop.f32.mrb[105].mxu1 }
 0x777   : > { %v3799_v59 = vadd.f32 %v3798_v18, %v3797_v38  ;;  %v3800_v29 = vpop.f32.mrb[106].mxu1  ;;  %v2545_v6 = vpack.c.bf16 %v2515_v24, %v2514_v40 }
 0x778   : > { %v3801_v23 = vpop.f32.mrb[107].mxu1 }
 0x779   : > { %v5582_v61 = vadd.f32 %v3799_v59, %v5555_v28  ;;  %v3802_v58 = vadd.f32 %v3801_v23, %v3800_v29  ;;  %2610 = vmatprep.subr.bf16.mxu0 %v2545_v6 }
 0x77a   : > { %2611 = vmatpush1.bf16.msra.mxu0 %v2481_v26 }
 0x77b   : > { %v5585_v42 = vadd.f32 %v3802_v58, %v5555_v28  ;;  %v2516_v57 = vmul.f32 %v5582_v61, %v5582_v61 }
 0x77d   : > { %v3803_v13 = vpop.f32.mrb[108].mxu1  ;;  %v2517_v43 = vmul.f32 %v5585_v42, %v5585_v42  ;;  %v2482_v39 = vpack.c.bf16 %v5585_v42, %v5582_v61 }
 0x77e   : > { %v3804_v22 = vpop.f32.mrb[109].mxu1 }
 0x77f   : > { %v3805_v5 = vadd.f32 %v3804_v22, %v3803_v13  ;;  %v3806_v62 = vpop.f32.mrb[110].mxu1  ;;  %v2546_v54 = vpack.c.bf16 %v2517_v43, %v2516_v57 }
 0x780   : > { %v3807_v38 = vpop.f32.mrb[111].mxu1 }
 0x781   : > { %v5594_v40 = vadd.f32 %v3805_v5, %v5555_v28  ;;  %v3808_v24 = vadd.f32 %v3807_v38, %v3806_v62  ;;  %2612 = vmatprep.subr.bf16.mxu0 %v2546_v54 }
 0x782   : > { %2613 = vmatpush1.bf16.msra.mxu0 %v2482_v39 }
 0x783   : > { %v5597_v18 = vadd.f32 %v3808_v24, %v5555_v28  ;;  %v2518_v29 = vmul.f32 %v5594_v40, %v5594_v40 }
 0x785   : > { %v3809_v59 = vpop.f32.mrb[112].mxu1  ;;  %v2519_v6 = vmul.f32 %v5597_v18, %v5597_v18  ;;  %v2483_v57 = vpack.c.bf16 %v5597_v18, %v5594_v40 }
 0x786   : > { %v3810_v26 = vpop.f32.mrb[113].mxu1 }
 0x787   : > { %v3811_v23 = vadd.f32 %v3810_v26, %v3809_v59  ;;  %v3812_v58 = vpop.f32.mrb[114].mxu1  ;;  %v2547_v13 = vpack.c.bf16 %v2519_v6, %v2518_v29 }
 0x788   : > { %v3813_v43 = vpop.f32.mrb[115].mxu1 }
 0x789   : > { %v5606_v22 = vadd.f32 %v3811_v23, %v5555_v28  ;;  %v3814_v5 = vadd.f32 %v3813_v43, %v3812_v58  ;;  %2614 = vmatprep.subr.bf16.mxu0 %v2547_v13 }
 0x78a   : > { %2615 = vmatpush1.bf16.msra.mxu0 %v2483_v57 }
 0x78b   : > { %v5609_v62 = vadd.f32 %v3814_v5, %v5555_v28  ;;  %v2520_v39 = vmul.f32 %v5606_v22, %v5606_v22 }
 0x78d   : > { %v3815_v54 = vpop.f32.mrb[116].mxu1  ;;  %v2521_v38 = vmul.f32 %v5609_v62, %v5609_v62  ;;  %v2484_v26 = vpack.c.bf16 %v5609_v62, %v5606_v22 }
 0x78e   : > { %v3816_v24 = vpop.f32.mrb[117].mxu1 }
 0x78f   : > { %v3817_v59 = vadd.f32 %v3816_v24, %v3815_v54  ;;  %v3818_v29 = vpop.f32.mrb[118].mxu1  ;;  %v2548_v6 = vpack.c.bf16 %v2521_v38, %v2520_v39 }
 0x790   : > { %v3819_v23 = vpop.f32.mrb[119].mxu1 }
 0x791   : > { %v5618_v58 = vadd.f32 %v3817_v59, %v5555_v28  ;;  %v3820_v13 = vadd.f32 %v3819_v23, %v3818_v29  ;;  %2616 = vmatprep.subr.bf16.mxu0 %v2548_v6 }
 0x792   : > { %2617 = vmatpush1.bf16.msra.mxu0 %v2484_v26 }
 0x793   : > { %v5621_v57 = vadd.f32 %v3820_v13, %v5555_v28  ;;  %v2522_v5 = vmul.f32 %v5618_v58, %v5618_v58 }
 0x795   : > { %v3821_v43 = vpop.f32.mrb[120].mxu1  ;;  %v2523_v54 = vmul.f32 %v5621_v57, %v5621_v57  ;;  %v2485_v59 = vpack.c.bf16 %v5621_v57, %v5618_v58 }
 0x796   : > { %v3822_v39 = vpop.f32.mrb[121].mxu1 }
 0x797   : > { %v3823_v38 = vadd.f32 %v3822_v39, %v3821_v43  ;;  %v3824_v24 = vpop.f32.mrb[122].mxu1  ;;  %v2549_v16 = vpack.c.bf16 %v2523_v54, %v2522_v5 }
 0x798   : > { %v3825_v29 = vpop.f32.mrb[123].mxu1 }
 0x799   : > { %v5630_v6 = vadd.f32 %v3823_v38, %v5555_v28  ;;  %v3826_v26 = vadd.f32 %v3825_v29, %v3824_v24  ;;  %2618 = vmatprep.subr.bf16.mxu0 %v2549_v16 }
 0x79a   : > { %2619 = vmatpush1.bf16.msra.mxu0 %v2485_v59 }
 0x79b   : > { %v5633_v23 = vadd.f32 %v3826_v26, %v5555_v28  ;;  %v2524_v60 = vmul.f32 %v5630_v6, %v5630_v6 }
 0x79d   : > { %v3827_v13 = vpop.f32.mrb[124].mxu1  ;;  %v2525_v43 = vmul.f32 %v5633_v23, %v5633_v23  ;;  %v2486_v38 = vpack.c.bf16 %v5633_v23, %v5630_v6 }
 0x79e   : > { %v3828_v5 = vpop.f32.mrb[125].mxu1 }
 0x79f   : > { %v3829_v54 = vadd.f32 %v3828_v5, %v3827_v13  ;;  %v3830_v39 = vpop.f32.mrb[126].mxu1  ;;  %v2550_v27 = vpack.c.bf16 %v2525_v43, %v2524_v60 }
 0x7a0   : > { %v3831_v24 = vpop.f32.mrb[127].mxu1 }
 0x7a1   : > { %v5642_v16 = vadd.f32 %v3829_v54, %v5555_v28  ;;  %v3832_v59 = vadd.f32 %v3831_v24, %v3830_v39  ;;  %2620 = vmatprep.subr.bf16.mxu0 %v2550_v27 }
 0x7a2   : > { %2621 = vmatpush1.bf16.msra.mxu0 %v2486_v38 }
 0x7a3   : > { %6293 = vst [vmem:[#allocation49_spill] sm:$0xff] %v5642_v16  ;;  %v5645_v29 = vadd.f32 %v3832_v59, %v5555_v28  ;;  %v2526_v41 = vmul.f32 %v5642_v16, %v5642_v16 }
 0x7a5   : > { %6294 = vst [vmem:[#allocation50_spill] sm:$0xff] %v5645_v29  ;;  %v3833_v26 = vpop.f32.mrb[128].mxu1  ;;  %v2527_v60 = vmul.f32 %v5645_v29, %v5645_v29  ;;  %v2487_v54 = vpack.c.bf16 %v5645_v29, %v5642_v16 }
 0x7a6   : > { %v3834_v13 = vpop.f32.mrb[129].mxu1 }
 0x7a7   : > { %v3835_v43 = vadd.f32 %v3834_v13, %v3833_v26  ;;  %v3836_v5 = vpop.f32.mrb[130].mxu1  ;;  %v2551_v51 = vpack.c.bf16 %v2527_v60, %v2526_v41 }
 0x7a8   : > { %v3837_v39 = vpop.f32.mrb[131].mxu1 }
 0x7a9   : > { %v5654_v27 = vadd.f32 %v3835_v43, %v5555_v28  ;;  %v3838_v38 = vadd.f32 %v3837_v39, %v3836_v5  ;;  %2622 = vmatprep.subr.bf16.mxu0 %v2551_v51 }
 0x7aa   : > { %2623 = vmatpush1.bf16.msra.mxu0 %v2487_v54 }
 0x7ab   : > { %6295 = vst [vmem:[#allocation51_spill] sm:$0xff] %v5654_v27  ;;  %v5657_v24 = vadd.f32 %v3838_v38, %v5555_v28  ;;  %v2528_v21 = vmul.f32 %v5654_v27, %v5654_v27 }
 0x7ad   : > { %6296 = vst [vmem:[#allocation52_spill] sm:$0xff] %v5657_v24  ;;  %v3839_v59 = vpop.f32.mrb[132].mxu1  ;;  %v2529_v41 = vmul.f32 %v5657_v24, %v5657_v24  ;;  %v2488_v43 = vpack.c.bf16 %v5657_v24, %v5654_v27 }
 0x7ae   : > { %v3840_v26 = vpop.f32.mrb[133].mxu1 }
 0x7af   : > { %v3841_v60 = vadd.f32 %v3840_v26, %v3839_v59  ;;  %v3842_v13 = vpop.f32.mrb[134].mxu1  ;;  %v2552_v31 = vpack.c.bf16 %v2529_v41, %v2528_v21 }
 0x7b0   : > { %v3843_v5 = vpop.f32.mrb[135].mxu1 }
 0x7b1   : > { %v5666_v51 = vadd.f32 %v3841_v60, %v5555_v28  ;;  %v3844_v54 = vadd.f32 %v3843_v5, %v3842_v13  ;;  %2624 = vmatprep.subr.bf16.mxu0 %v2552_v31 }
 0x7b2   : > { %2625 = vmatpush1.bf16.msra.mxu0 %v2488_v43 }
 0x7b3   : > { %6297 = vst [vmem:[#allocation53_spill] sm:$0xff] %v5666_v51  ;;  %v5669_v39 = vadd.f32 %v3844_v54, %v5555_v28  ;;  %v2530_v2 = vmul.f32 %v5666_v51, %v5666_v51 }
 0x7b5   : > { %6298 = vst [vmem:[#allocation54_spill] sm:$0xff] %v5669_v39  ;;  %v3845_v38 = vpop.f32.mrb[136].mxu1  ;;  %v2531_v21 = vmul.f32 %v5669_v39, %v5669_v39  ;;  %v2489_v60 = vpack.c.bf16 %v5669_v39, %v5666_v51 }
 0x7b6   : > { %v3846_v59 = vpop.f32.mrb[137].mxu1 }
 0x7b7   : > { %v3847_v41 = vadd.f32 %v3846_v59, %v3845_v38  ;;  %v3848_v26 = vpop.f32.mrb[138].mxu1  ;;  %v2553_v17 = vpack.c.bf16 %v2531_v21, %v2530_v2 }
 0x7b8   : > { %v3849_v13 = vpop.f32.mrb[139].mxu1 }
 0x7b9   : > { %v5678_v31 = vadd.f32 %v3847_v41, %v5555_v28  ;;  %v3850_v43 = vadd.f32 %v3849_v13, %v3848_v26  ;;  %2626 = vmatprep.subr.bf16.mxu0 %v2553_v17 }
 0x7ba   : > { %2627 = vmatpush1.bf16.msra.mxu0 %v2489_v60 }
 0x7bb   : > { %6299 = vst [vmem:[#allocation55_spill] sm:$0xff] %v5678_v31  ;;  %v5681_v5 = vadd.f32 %v3850_v43, %v5555_v28  ;;  %v2532_v52 = vmul.f32 %v5678_v31, %v5678_v31 }
 0x7bd   : > { %6300 = vst [vmem:[#allocation56_spill] sm:$0xff] %v5681_v5  ;;  %v3851_v54 = vpop.f32.mrb[140].mxu1  ;;  %v2533_v2 = vmul.f32 %v5681_v5, %v5681_v5  ;;  %v2490_v41 = vpack.c.bf16 %v5681_v5, %v5678_v31 }
 0x7be   : > { %v3852_v38 = vpop.f32.mrb[141].mxu1 }
 0x7bf   : > { %v3853_v21 = vadd.f32 %v3852_v38, %v3851_v54  ;;  %v3854_v59 = vpop.f32.mrb[142].mxu1  ;;  %v2554_v39 = vpack.c.bf16 %v2533_v2, %v2532_v52 }
 0x7c0   : > { %v3855_v26 = vpop.f32.mrb[143].mxu1 }
 0x7c1   : > { %v5690_v17 = vadd.f32 %v3853_v21, %v5555_v28  ;;  %v3856_v60 = vadd.f32 %v3855_v26, %v3854_v59  ;;  %2628 = vmatprep.subr.bf16.mxu0 %v2554_v39 }
 0x7c2   : > { %2629 = vmatpush1.bf16.msra.mxu0 %v2490_v41 }
 0x7c3   : > { %6301 = vst [vmem:[#allocation57_spill] sm:$0xff] %v5690_v17  ;;  %v5693_v13 = vadd.f32 %v3856_v60, %v5555_v28  ;;  %v2534_v51 = vmul.f32 %v5690_v17, %v5690_v17 }
 0x7c5   : > { %6302 = vst [vmem:[#allocation58_spill] sm:$0xff] %v5693_v13  ;;  %v3857_v43 = vpop.f32.mrb[144].mxu1  ;;  %v2535_v52 = vmul.f32 %v5693_v13, %v5693_v13  ;;  %v2491_v21 = vpack.c.bf16 %v5693_v13, %v5690_v17 }
 0x7c6   : > { %v3858_v54 = vpop.f32.mrb[145].mxu1 }
 0x7c7   : > { %v3859_v2 = vadd.f32 %v3858_v54, %v3857_v43  ;;  %v3860_v38 = vpop.f32.mrb[146].mxu1  ;;  %v2555_v5 = vpack.c.bf16 %v2535_v52, %v2534_v51 }
 0x7c8   : > { %v3861_v59 = vpop.f32.mrb[147].mxu1 }
 0x7c9   : > { %v5702_v39 = vadd.f32 %v3859_v2, %v5555_v28  ;;  %v3862_v41 = vadd.f32 %v3861_v59, %v3860_v38  ;;  %2630 = vmatprep.subr.bf16.mxu0 %v2555_v5 }
 0x7ca   : > { %2631 = vmatpush1.bf16.msra.mxu0 %v2491_v21 }
 0x7cb   : > { %6303 = vst [vmem:[#allocation59_spill] sm:$0xff] %v5702_v39  ;;  %v5705_v26 = vadd.f32 %v3862_v41, %v5555_v28  ;;  %v2536_v31 = vmul.f32 %v5702_v39, %v5702_v39 }
 0x7cd   : > { %6304 = vst [vmem:[#allocation60_spill] sm:$0xff] %v5705_v26  ;;  %v3863_v60 = vpop.f32.mrb[148].mxu1  ;;  %v2537_v51 = vmul.f32 %v5705_v26, %v5705_v26  ;;  %v2492_v2 = vpack.c.bf16 %v5705_v26, %v5702_v39 }
 0x7ce   : > { %v3864_v43 = vpop.f32.mrb[149].mxu1 }
 0x7cf   : > { %v3865_v52 = vadd.f32 %v3864_v43, %v3863_v60  ;;  %v3866_v54 = vpop.f32.mrb[150].mxu1  ;;  %v2556_v13 = vpack.c.bf16 %v2537_v51, %v2536_v31 }
 0x7d0   : > { %v3867_v38 = vpop.f32.mrb[151].mxu1 }
 0x7d1   : > { %v5714_v5 = vadd.f32 %v3865_v52, %v5555_v28  ;;  %v3868_v21 = vadd.f32 %v3867_v38, %v3866_v54  ;;  %2632 = vmatprep.subr.bf16.mxu0 %v2556_v13 }
 0x7d2   : > { %2633 = vmatpush1.bf16.msra.mxu0 %v2492_v2 }
 0x7d3   : > { %6305 = vst [vmem:[#allocation61_spill] sm:$0xff] %v5714_v5  ;;  %v5717_v59 = vadd.f32 %v3868_v21, %v5555_v28  ;;  %v2538_v17 = vmul.f32 %v5714_v5, %v5714_v5 }
 0x7d5   : > { %6306 = vst [vmem:[#allocation62_spill] sm:$0xff] %v5717_v59  ;;  %v3869_v41 = vpop.f32.mrb[152].mxu1  ;;  %v2539_v31 = vmul.f32 %v5717_v59, %v5717_v59  ;;  %v2493_v52 = vpack.c.bf16 %v5717_v59, %v5714_v5 }
 0x7d6   : > { %v3870_v60 = vpop.f32.mrb[153].mxu1 }
 0x7d7   : > { %v3871_v51 = vadd.f32 %v3870_v60, %v3869_v41  ;;  %v3872_v43 = vpop.f32.mrb[154].mxu1  ;;  %v2557_v26 = vpack.c.bf16 %v2539_v31, %v2538_v17 }
 0x7d8   : > { %v3873_v54 = vpop.f32.mrb[155].mxu1 }
 0x7d9   : > { %v5726_v13 = vadd.f32 %v3871_v51, %v5555_v28  ;;  %v3874_v2 = vadd.f32 %v3873_v54, %v3872_v43  ;;  %2634 = vmatprep.subr.bf16.mxu0 %v2557_v26 }
 0x7da   : > { %2635 = vmatpush1.bf16.msra.mxu0 %v2493_v52 }
 0x7db   : > { %6307 = vst [vmem:[#allocation63_spill] sm:$0xff] %v5726_v13  ;;  %v5729_v38 = vadd.f32 %v3874_v2, %v5555_v28  ;;  %v2540_v39 = vmul.f32 %v5726_v13, %v5726_v13 }
 0x7dd   : > { %6308 = vst [vmem:[#allocation64_spill] sm:$0xff] %v5729_v38  ;;  %v3875_v21 = vpop.f32.mrb[156].mxu1  ;;  %v2541_v17 = vmul.f32 %v5729_v38, %v5729_v38  ;;  %v2494_v26 = vpack.c.bf16 %v5729_v38, %v5726_v13 }
 0x7de   : > { %v3876_v41 = vpop.f32.mrb[157].mxu1 }
 0x7df   : > { %v3877_v31 = vadd.f32 %v3876_v41, %v3875_v21  ;;  %v3878_v60 = vpop.f32.mrb[158].mxu1  ;;  %v2558_v59 = vpack.c.bf16 %v2541_v17, %v2540_v39  ;;  %v5750_v41 = vld [vmem:[%s4933_s28] ss:$8 sps:$4 sm:$0xff]  }
 0x7e0   : > { %v3879_v51 = vpop.f32.mrb[159].mxu1  ;;  %6311 = vst [vmem:[#allocation67_spill] sm:$0xff] %v5750_v41 }
 0x7e1   : > { %v5738_v43 = vadd.f32 %v3877_v31, %v5555_v28  ;;  %v3880_v52 = vadd.f32 %v3879_v51, %v3878_v60  ;;  %2636 = vmatprep.subr.bf16.mxu0 %v2558_v59  ;;  %v5754_v59 = vld [vmem:[%s4933_s28 + $0x14] ss:$8 sps:$4 sm:$0xff]   ;;  %v2669_v31 = vld [vmem:[%s6314_s15] sm:$0x1]  ;;  %s6077_s15 = scalar_lea.hbm %s6399_s16, %s3608_s17 }
 0x7e2   : > { %2637 = vmatpush1.bf16.msra.mxu0 %v2494_v26  ;;  %6312 = vst [vmem:[#allocation68_spill] sm:$0xff] %v5754_v59  ;;  %v2670_v60 = vmul.f32 2.0, %v2669_v31  ;;  %v2671_v26 = vmul.f32 %v2669_v31, %v2669_v31 }
 0x7e3   : > { %6309 = vst [vmem:[#allocation65_spill] sm:$0xff] %v5738_v43  ;;  %v5741_v54 = vadd.f32 %v3880_v52, %v5555_v28  ;;  %v2542_v2 = vmul.f32 %v5738_v43, %v5738_v43  ;;  %v5758_v28 = vld [vmem:[%s4933_s28 + $0x10] ss:$8 sps:$4 sm:$0xff]   ;;  %s4400_s28 = scalar_lea.vmem %s6072_s19, 512 }
 0x7e4   : > { %6313 = vst [vmem:[#allocation69_spill] sm:$0xff] %v5758_v28  ;;  %v2672_v51 = vsub.f32 %v2670_v60, %v2671_v26  ;;  %p4401_p4 = scmp.ne.s32.totalorder %s6072_s19, %s4400_s28 }
 0x7e5   : > { %6310 = vst [vmem:[#allocation66_spill] sm:$0xff] %v5741_v54  ;;  %v2543_v39 = vmul.f32 %v5741_v54, %v5741_v54  ;;  %v2495_v17 = vpack.c.bf16 %v5741_v54, %v5738_v43 }
 0x7e6   : > { %p4402_p0 = pnand %p4401_p4, %p4732_p5 }
 0x7e7   : > { %v2559_v21 = vpack.c.bf16 %v2543_v39, %v2542_v2  ;;  %v2707_v39 = vrot.slane %v2669_v31, %v5155_v49 }
 0x7e8   : > { %p4403_p8 = pneg %p4402_p0 }
 0x7e9   : > { %2638 = vmatprep.subr.bf16.mxu0 %v2559_v21 }
 0x7ea   : > { %2639 = vmatpush1.bf16.msra.mxu0 %v2495_v17  ;;  %v2681_v17 = vrot.slane %v2672_v51, %v5155_v49 }
 0x7ed   : > { %2641 = vmatmul.mubr.bf16.vlgmr.msra.gmra.mrb[104].mxu0 %v5750_v41 }
 0x7ee   : > { %2650 = vmatprep.mubr.bf16.mxu0 %v5754_v59 }
 0x7f5   : > { %2651 = vmatmul.mubr.bf16.gmra.mrb[108].mxu0 %v5758_v28 }
 0x7f6   : > { %2757 = vmatprep.mubr.bf16.mxu0 %v6262_v34 }
 0x8c0   : > { %v2642_v52 = vpop.f32.mrb[104].mxu0 }
 0x8c1   : > { %v2661_v2 = vmul.f32 %v2642_v52, %v5153_v48  ;;  %v2644_v21 = vpop.f32.mrb[105].mxu0 }
 0x8c2   : > { %v2646_v59 = vpop.f32.mrb[106].mxu0  ;;  %v2665_v43 = vmul.f32 %v2644_v21, %v5153_v48 }
 0x8c3   : > { %v2673_v41 = vmul.f32 %v2661_v2, %v2661_v2  ;;  %v2662_v28 = vmul.f32 %v2646_v59, %v5157_v53  ;;  %v2648_v54 = vpop.f32.mrb[107].mxu0  ;;  %v2709_v38 = vmul.f32 %v2707_v39, %v2661_v2 }
 0x8c4   : > { %v2666_v52 = vmul.f32 %v2648_v54, %v5157_v53 }
 0x8c5   : > { %v2683_v13 = vmul.f32 %v2681_v17, %v2673_v41  ;;  %v2674_v5 = vmul.f32 %v2662_v28, %v2662_v28  ;;  %v2710_v24 = vmul.f32 %v2707_v39, %v2662_v28 }
 0x8c7   : > { %v2687_v60 = vsub.f32 %v2665_v43, %v2683_v13  ;;  %v2713_v26 = vpack.c.bf16 %v2710_v24, %v2709_v38  ;;  %v2684_v27 = vmul.f32 %v2681_v17, %v2674_v5 }
 0x8c8   : > { %v2652_v31 = vpop.f32.mrb[108].mxu0 }
 0x8c9   : > { %v2691_v33 = vmax.f32 %v2687_v60, 0.0  ;;  %v2688_v36 = vsub.f32 %v2666_v52, %v2684_v27  ;;  %v2663_v49 = vmul.f32 %v2652_v31, %v5164_v11  ;;  %v2654_v51 = vpop.f32.mrb[109].mxu0 }
 0x8ca   : > { %v2656_v29 = vpop.f32.mrb[110].mxu0  ;;  %v2667_v13 = vmul.f32 %v2654_v51, %v5164_v11 }
 0x8cb   : > { %v2695_v59 = vadd.f32 1e-06, %v2691_v33  ;;  %v2692_v16 = vmax.f32 %v2688_v36, 0.0  ;;  %v2675_v50 = vmul.f32 %v2663_v49, %v2663_v49  ;;  %v2658_v48 = vpop.f32.mrb[111].mxu0  ;;  %v2664_v41 = vmul.f32 %v2656_v29, %v5168_v32 }
 0x8cc   : > { %v2711_v53 = vmul.f32 %v2707_v39, %v2663_v49  ;;  %v2668_v54 = vmul.f32 %v2658_v48, %v5168_v32  ;;  %v6315_v32 = vld [vmem:[#allocation21_spill] sm:$0xff] }
 0x8cd   : > { %v2696_v2 = vadd.f32 1e-06, %v2692_v16  ;;  %v2685_v24 = vmul.f32 %v2681_v17, %v2675_v50  ;;  %4212 = vrsqrt.f32 %v2695_v59  ;;  %v2676_v5 = vmul.f32 %v2664_v41, %v2664_v41 }
 0x8ce   : > { %v2712_v38 = vmul.f32 %v2707_v39, %v2664_v41 }
 0x8cf   : > { %4214 = vrsqrt.f32 %v2696_v2  ;;  %v2689_v27 = vsub.f32 %v2667_v13, %v2685_v24  ;;  %v2686_v28 = vmul.f32 %v2681_v17, %v2676_v5 }
 0x8d0   : > { %v2714_v43 = vpack.c.bf16 %v2712_v38, %v2711_v53 }
 0x8d1   : > { %v2693_v33 = vmax.f32 %v2689_v27, 0.0  ;;  %v2690_v36 = vsub.f32 %v2668_v54, %v2686_v28  ;;  %v6323_v54 = vmax.f32 %v5268_v35, 0.0 }
 0x8d3   : > { %v2697_v21 = vadd.f32 1e-06, %v2693_v33  ;;  %v2694_v60 = vmax.f32 %v2690_v36, 0.0  ;;  %v6324_v33 = vmax.f32 %v5271_v47, 0.0 }
 0x8d5   : > { %v2698_v52 = vadd.f32 1e-06, %v2694_v60  ;;  %4216 = vrsqrt.f32 %v2697_v21 }
 0x8d7   : > { %v4213_v16 = vpop.eup %4212  ;;  %4218 = vrsqrt.f32 %v2698_v52 }
 0x8d9   : > { %v4215_v11 = vpop.eup %4214 }
 0x8da   : > { %v2717_v50 = vpack.c.bf16 %v4215_v11, %v4213_v16 }
 0x8dc   : > { %2725 = vmatprep.subr.bf16.mxu0 %v2717_v50 }
 0x8dd   : > { %2726 = vmatpush1.bf16.msra.mxu0 %v2713_v26 }
 0x8df   : > { %v4217_v29 = vpop.eup %4216 }
 0x8e1   : > { %v4219_v39 = vpop.eup %4218 }
 0x8e2   : > { %v2718_v31 = vpack.c.bf16 %v4219_v39, %v4217_v29 }
 0x8e4   : > { %2727 = vmatprep.subr.bf16.mxu0 %v2718_v31 }
 0x8e5   : > { %2728 = vmatpush1.bf16.msra.mxu0 %v2714_v43 }
 0x8e8   : > { %3572 = vmatmul.mubr.msk.bf16.vlgmr.msra.gmra.mrb[112].mxu0 %vm1639_vm0, %v5173_v55  ;;  %v6316_v55 = vld [vmem:[#allocation22_spill] sm:$0xff] }
 0x8e9   : > { %2767 = vmatprep.mubr.bf16.mxu0 %v6262_v34 }
 0x8f0   : > { %3573 = vmatmul.mubr.msk.bf16.gmra.mrb[116].mxu0 %vm1639_vm0, %v5178_v25  ;;  %v6317_v25 = vld [vmem:[#allocation23_spill] sm:$0xff] }
 0x8f1   : > { %2777 = vmatprep.mubr.bf16.mxu0 %v6262_v34 }
 0x8f8   : > { %3574 = vmatmul.mubr.msk.bf16.gmra.mrb[120].mxu0 %vm1639_vm0, %v5183_v63  ;;  %v6318_v63 = vld [vmem:[#allocation24_spill] sm:$0xff] }
 0x8f9   : > { %2787 = vmatprep.mubr.bf16.mxu0 %v6262_v34 }
 0x900   : > { %3575 = vmatmul.mubr.msk.bf16.gmra.mrb[124].mxu0 %vm1639_vm0, %v5188_v1  ;;  %v6319_v1 = vld [vmem:[#allocation25_spill] sm:$0xff] }
 0x901   : > { %2797 = vmatprep.mubr.bf16.mxu0 %v6262_v34 }
 0x908   : > { %3576 = vmatmul.mubr.msk.bf16.gmra.mrb[128].mxu0 %vm1639_vm0, %v5193_v3  ;;  %v6320_v3 = vld [vmem:[#allocation26_spill] sm:$0xff] }
 0x909   : > { %2807 = vmatprep.mubr.bf16.mxu0 %v6262_v34 }
 0x910   : > { %3577 = vmatmul.mubr.msk.bf16.gmra.mrb[132].mxu0 %vm1639_vm0, %v5198_v7 }
 0x911   : > { %2817 = vmatprep.mubr.bf16.mxu0 %v6262_v34 }
 0x918   : > { %3578 = vmatmul.mubr.msk.bf16.gmra.mrb[136].mxu0 %vm1639_vm0, %v5203_v8  ;;  %v5825_v8 = vld [vmem:[%s6321_s26] ss:$0 sm:$0xff]  ;;  %s4404_s26 = sshll.u32 %s4490_s9, 4  ;;  %s4405_s26 = int_to_ptr.vmem [resolvable:$false] %s4404_s26 }
 0x919   : > { %2827 = vmatprep.mubr.bf16.mxu0 %v6262_v34  ;;  %s4406_s10 = scalar_lea.vmem %s4405_s26, 1024  ;;  %p4407_p6 = scmp.lt.s32.totalorder %s6072_s19, %s4405_s26 }
 0x91a   : > { %p4408_p10 = scmp.lt.s32.totalorder %s4406_s10, %s4400_s28 }
 0x91c   : > { %p4409_p3 = por %p4408_p10, %p4407_p6 }
 0x91e   : > { %p4410_p9 = pnand %p4409_p3, %p4403_p8 }
 0x920   : > { %3579 = vmatmul.mubr.msk.bf16.gmra.mrb[140].mxu0 %vm1639_vm0, %v5208_v10 }
 0x921   : > { %2837 = vmatprep.mubr.bf16.mxu0 %v6262_v34 }
 0x928   : > { %3580 = vmatmul.mubr.msk.bf16.gmra.mrb[144].mxu0 %vm1639_vm0, %v5213_v12 }
 0x929   : > { %2847 = vmatprep.mubr.bf16.mxu0 %v6262_v34 }
 0x930   : > { %3581 = vmatmul.mubr.msk.bf16.gmra.mrb[148].mxu0 %vm1639_vm0, %v5218_v15 }
 0x931   : > { %2857 = vmatprep.mubr.bf16.mxu0 %v6262_v34 }
 0x938   : > { %3582 = vmatmul.mubr.msk.bf16.gmra.mrb[152].mxu0 %vm1639_vm0, %v6315_v32 }
 0x939   : > { %2867 = vmatprep.mubr.bf16.mxu0 %v6262_v34 }
 0x940   : > { %3583 = vmatmul.mubr.msk.bf16.gmra.mrb[156].mxu0 %vm1639_vm0, %v6316_v55 }
 0x941   : > { %2877 = vmatprep.mubr.bf16.mxu0 %v6262_v34 }
 0x948   : > { %3584 = vmatmul.mubr.msk.bf16.gmra.mrb[160].mxu0 %vm1639_vm0, %v6317_v25  ;;  %v6325_v25 = vld [vmem:[#allocation27_spill] sm:$0xff] }
 0x949   : > { %2887 = vmatprep.mubr.bf16.mxu0 %v6262_v34 }
 0x950   : > { %3585 = vmatmul.mubr.msk.bf16.gmra.mrb[164].mxu0 %vm1639_vm0, %v6318_v63  ;;  %v6326_v63 = vmax.f32 %v6325_v25, 0.0 }
 0x951   : > { %2897 = vmatprep.mubr.bf16.mxu0 %v6262_v34 }
 0x958   : > { %3586 = vmatmul.mubr.msk.bf16.gmra.mrb[168].mxu0 %vm1639_vm0, %v6319_v1 }
 0x959   : > { %2907 = vmatprep.mubr.bf16.mxu0 %v6262_v34  ;;  %v5833_v34 = vld [vmem:[%s6322_s20] ss:$0 sm:$0xff] }
 0x960   : > { %3587 = vmatmul.mubr.msk.bf16.gmra.mrb[172].mxu0 %vm1639_vm0, %v6320_v3  ;;  %v6327_v3 = vmax.f32 %v5287_v19, 0.0 }
 0x9bb   : > { %v2759_v7 = vpop.f32.mrb[112].mxu0 }
 0x9bc   : > { %v2919_v10 = vsub.f32 %v5558_v37, %v2759_v7  ;;  %v2761_v12 = vpop.f32.mrb[113].mxu0 }
 0x9bd   : > { %v2763_v15 = vpop.f32.mrb[114].mxu0 }
 0x9be   : > { %v2957_v17 = vmul.f32 %v5825_v8, %v2919_v10  ;;  %v2920_v26 = vsub.f32 %v5561_v0, %v2763_v15  ;;  %v2765_v49 = vpop.f32.mrb[115].mxu0  ;;  %v4197_v15 = vld [vmem:[#allocation12 + $0x8] sm:$0xff]  }
 0x9c0   : > { %v2989_v51 = vmul.f32 %v2957_v17, %v2761_v12  ;;  %v2958_v59 = vmul.f32 %v5825_v8, %v2920_v26 }
 0x9c2   : > { %v3028_v48 = vadd.f32 %v5833_v34, %v2989_v51  ;;  %v2990_v41 = vmul.f32 %v2958_v59, %v2765_v49 }
 0x9c3   : > { %v2769_v2 = vpop.f32.mrb[116].mxu0 }
 0x9c4   : > { %v3060_v37 = vmax.f32 %v3028_v48, 0.0  ;;  %v3029_v13 = vadd.f32 %v5833_v34, %v2990_v41  ;;  %v2921_v24 = vsub.f32 %v5570_v30, %v2769_v2  ;;  %v2771_v53 = vpop.f32.mrb[117].mxu0  ;;  %v4198_v41 = vld [vmem:[#allocation12 + $0x10] sm:$0xff]  }
 0x9c5   : > { %v2773_v0 = vpop.f32.mrb[118].mxu0 }
 0x9c6   : > { %v3061_v5 = vmax.f32 %v3029_v13, 0.0  ;;  %v2959_v38 = vmul.f32 %v5825_v8, %v2921_v24  ;;  %v2922_v27 = vsub.f32 %v5573_v46, %v2773_v0  ;;  %v2775_v43 = vpop.f32.mrb[119].mxu0  ;;  %v5843_v28 = vadd.f32 %v3060_v37, %v6323_v54  ;;  %v4199_v54 = vld [vmem:[#allocation12 + $0x18] sm:$0xff]  }
 0x9c7   : > { %v6328_v0 = vmax.f32 %v5300_v44, 0.0 }
 0x9c8   : > { %v5847_v36 = vadd.f32 %v3061_v5, %v6324_v33  ;;  %v2991_v21 = vmul.f32 %v2959_v38, %v2771_v53  ;;  %v2960_v60 = vmul.f32 %v5825_v8, %v2922_v27  ;;  %v6329_v38 = vmax.f32 %v5303_v9, 0.0 }
 0x9ca   : > { %v3124_v30 = vpack.c.bf16 %v5847_v36, %v5843_v28  ;;  %v3030_v52 = vadd.f32 %v5833_v34, %v2991_v21  ;;  %v2992_v16 = vmul.f32 %v2960_v60, %v2775_v43 }
 0x9cb   : > { %v2779_v11 = vpop.f32.mrb[120].mxu0 }
 0x9cc   : > { %v3062_v46 = vmax.f32 %v3030_v52, 0.0  ;;  %v3031_v50 = vadd.f32 %v5833_v34, %v2992_v16  ;;  %v2923_v35 = vsub.f32 %v5582_v61, %v2779_v11  ;;  %v2781_v29 = vpop.f32.mrb[121].mxu0  ;;  %v4196_v61 = vld [vmem:[#allocation12] sm:$0xff]  }
 0x9cd   : > { %v2783_v39 = vpop.f32.mrb[122].mxu0  ;;  %4015 = vmatprep.subr.bf16.mxu0 %v4196_v61  ;;  %v4200_v11 = vld [vmem:[#allocation12 + $0x20] sm:$0xff]  }
 0x9ce   : > { %v3063_v47 = vmax.f32 %v3031_v50, 0.0  ;;  %v2961_v31 = vmul.f32 %v5825_v8, %v2923_v35  ;;  %v2924_v32 = vsub.f32 %v5585_v42, %v2783_v39  ;;  %v2785_v55 = vpop.f32.mrb[123].mxu0  ;;  %v5859_v1 = vadd.f32 %v3062_v46, %v6326_v63  ;;  %4016 = vmatpush3.bf16.msra.mxu0 %v4196_v61  ;;  %v4201_v63 = vld [vmem:[#allocation12 + $0x28] sm:$0xff]  }
 0x9cf   : > { %4017 = vmatprep.subr.bf16.mxu0 %v4197_v15 }
 0x9d0   : > { %v5863_v7 = vadd.f32 %v3063_v47, %v6327_v3  ;;  %v2993_v10 = vmul.f32 %v2961_v31, %v2781_v29  ;;  %v2962_v12 = vmul.f32 %v5825_v8, %v2924_v32  ;;  %v6330_v47 = vmax.f32 %v5316_v56, 0.0 }
 0x9d1   : > { %v6331_v32 = vmax.f32 %v5319_v14, 0.0 }
 0x9d2   : > { %v3125_v17 = vpack.c.bf16 %v5863_v7, %v5859_v1  ;;  %v3032_v26 = vadd.f32 %v5833_v34, %v2993_v10  ;;  %v2994_v42 = vmul.f32 %v2962_v12, %v2785_v55  ;;  %4018 = vmatpush3.bf16.msra.mxu0 %v4197_v15 }
 0x9d3   : > { %v2789_v49 = vpop.f32.mrb[124].mxu0  ;;  %4019 = vmatprep.subr.bf16.mxu0 %v4198_v41 }
 0x9d4   : > { %v3064_v51 = vmax.f32 %v3032_v26, 0.0  ;;  %v3033_v59 = vadd.f32 %v5833_v34, %v2994_v42  ;;  %v2925_v19 = vsub.f32 %v5594_v40, %v2789_v49  ;;  %v2791_v48 = vpop.f32.mrb[125].mxu0  ;;  %v4202_v26 = vld [vmem:[#allocation12 + $0x30] sm:$0xff]  }
 0x9d5   : > { %v2793_v2 = vpop.f32.mrb[126].mxu0 }
 0x9d6   : > { %v3065_v37 = vmax.f32 %v3033_v59, 0.0  ;;  %v2963_v13 = vmul.f32 %v5825_v8, %v2925_v19  ;;  %v2926_v24 = vsub.f32 %v5597_v18, %v2793_v2  ;;  %v2795_v53 = vpop.f32.mrb[127].mxu0  ;;  %v5875_v5 = vadd.f32 %v3064_v51, %v6328_v0  ;;  %4020 = vmatpush3.bf16.msra.mxu0 %v4198_v41 }
 0x9d7   : > { %4021 = vmatprep.subr.bf16.mxu0 %v4199_v54  ;;  %v6333_v2 = vmax.f32 %v5335_v45, 0.0 }
 0x9d8   : > { %v5879_v27 = vadd.f32 %v3065_v37, %v6329_v38  ;;  %v2995_v40 = vmul.f32 %v2963_v13, %v2791_v48  ;;  %v2964_v43 = vmul.f32 %v5825_v8, %v2926_v24  ;;  %v6332_v48 = vmax.f32 %v5332_v4, 0.0 }
 0x9da   : > { %v3126_v33 = vpack.c.bf16 %v5879_v27, %v5875_v5  ;;  %v3034_v18 = vadd.f32 %v5833_v34, %v2995_v40  ;;  %v2996_v21 = vmul.f32 %v2964_v43, %v2795_v53  ;;  %4022 = vmatpush3.bf16.msra.mxu0 %v4199_v54 }
 0x9db   : > { %v2799_v60 = vpop.f32.mrb[128].mxu0  ;;  %4023 = vmatprep.subr.bf16.mxu0 %v4200_v11 }
 0x9dc   : > { %v3066_v44 = vmax.f32 %v3034_v18, 0.0  ;;  %v3035_v52 = vadd.f32 %v5833_v34, %v2996_v21  ;;  %v2927_v9 = vsub.f32 %v5606_v22, %v2799_v60  ;;  %v2801_v16 = vpop.f32.mrb[129].mxu0 }
 0x9dd   : > { %v2803_v46 = vpop.f32.mrb[130].mxu0 }
 0x9de   : > { %v3067_v50 = vmax.f32 %v3035_v52, 0.0  ;;  %v2965_v35 = vmul.f32 %v5825_v8, %v2927_v9  ;;  %v2928_v29 = vsub.f32 %v5609_v62, %v2803_v46  ;;  %v2805_v39 = vpop.f32.mrb[131].mxu0  ;;  %v5891_v31 = vadd.f32 %v3066_v44, %v6330_v47  ;;  %4024 = vmatpush3.bf16.msra.mxu0 %v4200_v11  ;;  %v6335_v9 = vld [vmem:[#allocation28_spill] sm:$0xff] }
 0x9df   : > { %4025 = vmatprep.subr.bf16.mxu0 %v4201_v63  ;;  %v6334_v44 = vmax.f32 %v5348_v20, 0.0  ;;  %v6337_v20 = vld [vmem:[#allocation49_spill] sm:$0xff] }
 0x9e0   : > { %v5895_v55 = vadd.f32 %v3067_v50, %v6331_v32  ;;  %v2997_v22 = vmul.f32 %v2965_v35, %v2801_v16  ;;  %v2966_v25 = vmul.f32 %v5825_v8, %v2928_v29  ;;  %v6336_v16 = vmax.f32 %v6335_v9, 0.0  ;;  %v6347_v9 = vld [vmem:[#allocation32_spill] sm:$0xff] }
 0x9e2   : > { %v3127_v3 = vpack.c.bf16 %v5895_v55, %v5891_v31  ;;  %v3036_v62 = vadd.f32 %v5833_v34, %v2997_v22  ;;  %v2998_v10 = vmul.f32 %v2966_v25, %v2805_v39  ;;  %4026 = vmatpush3.bf16.msra.mxu0 %v4201_v63 }
 0x9e3   : > { %v2809_v12 = vpop.f32.mrb[132].mxu0  ;;  %4027 = vmatprep.subr.bf16.mxu0 %v4202_v26 }
 0x9e4   : > { %v3068_v56 = vmax.f32 %v3036_v62, 0.0  ;;  %v3037_v61 = vadd.f32 %v5833_v34, %v2998_v10  ;;  %v2929_v14 = vsub.f32 %v5618_v58, %v2809_v12  ;;  %v2811_v15 = vpop.f32.mrb[133].mxu0  ;;  %v6338_v10 = vld [vmem:[#allocation50_spill] sm:$0xff] }
 0x9e5   : > { %v2813_v42 = vpop.f32.mrb[134].mxu0 }
 0x9e6   : > { %v3069_v49 = vmax.f32 %v3037_v61, 0.0  ;;  %v2967_v51 = vmul.f32 %v5825_v8, %v2929_v14  ;;  %v2930_v59 = vsub.f32 %v5621_v57, %v2813_v42  ;;  %v2815_v19 = vpop.f32.mrb[135].mxu0  ;;  %v5907_v41 = vadd.f32 %v3068_v56, %v6332_v48  ;;  %4028 = vmatpush3.bf16.msra.mxu0 %v4202_v26  ;;  %v6339_v61 = vld [vmem:[#allocation29_spill] sm:$0xff]  ;;  %v6341_v26 = vld [vmem:[#allocation30_spill] sm:$0xff] }
 0x9e7   : > { %v6340_v14 = vmax.f32 %v6339_v61, 0.0  ;;  %v6342_v42 = vmax.f32 %v6341_v26, 0.0  ;;  %v6351_v26 = vld [vmem:[#allocation33_spill] sm:$0xff] }
 0x9e8   : > { %v5911_v37 = vadd.f32 %v3069_v49, %v6333_v2  ;;  %v2999_v58 = vmul.f32 %v2967_v51, %v2811_v15  ;;  %v2968_v13 = vmul.f32 %v5825_v8, %v2930_v59 }
 0x9ea   : > { %v3128_v24 = vpack.c.bf16 %v5911_v37, %v5907_v41  ;;  %v3038_v53 = vadd.f32 %v5833_v34, %v2999_v58  ;;  %v3000_v57 = vmul.f32 %v2968_v13, %v2815_v19 }
 0x9eb   : > { %v2819_v0 = vpop.f32.mrb[136].mxu0 }
 0x9ec   : > { %v3070_v38 = vmax.f32 %v3038_v53, 0.0  ;;  %v3039_v4 = vadd.f32 %v5833_v34, %v3000_v57  ;;  %v2931_v40 = vsub.f32 %v5630_v6, %v2819_v0  ;;  %v2821_v45 = vpop.f32.mrb[137].mxu0  ;;  %v6343_v57 = vld [vmem:[#allocation51_spill] sm:$0xff] }
 0x9ed   : > { %v2823_v43 = vpop.f32.mrb[138].mxu0 }
 0x9ee   : > { %v3071_v54 = vmax.f32 %v3039_v4, 0.0  ;;  %v2969_v18 = vmul.f32 %v5825_v8, %v2931_v40  ;;  %v2932_v21 = vsub.f32 %v5633_v23, %v2823_v43  ;;  %v2825_v60 = vpop.f32.mrb[139].mxu0  ;;  %v5923_v52 = vadd.f32 %v3070_v38, %v6334_v44  ;;  %v6344_v43 = vld [vmem:[#allocation52_spill] sm:$0xff] }
 0x9f0   : > { %v5927_v11 = vadd.f32 %v3071_v54, %v6336_v16  ;;  %v3001_v46 = vmul.f32 %v2969_v18, %v2821_v45  ;;  %v2970_v50 = vmul.f32 %v5825_v8, %v2932_v21  ;;  %v6345_v21 = vld [vmem:[#allocation31_spill] sm:$0xff]  ;;  %v6348_v16 = vmax.f32 %v6347_v9, 0.0  ;;  %v6356_v9 = vld [vmem:[#allocation56_spill] sm:$0xff] }
 0x9f2   : > { %v3129_v6 = vpack.c.bf16 %v5927_v11, %v5923_v52  ;;  %v3040_v35 = vadd.f32 %v5833_v34, %v3001_v46  ;;  %v3002_v29 = vmul.f32 %v2970_v50, %v2825_v60  ;;  %v6346_v60 = vmax.f32 %v6345_v21, 0.0 }
 0x9f3   : > { %v2829_v39 = vpop.f32.mrb[140].mxu0 }
 0x9f4   : > { %v3072_v23 = vmax.f32 %v3040_v35, 0.0  ;;  %v3041_v47 = vadd.f32 %v5833_v34, %v3002_v29  ;;  %v2933_v32 = vsub.f32 %v6337_v20, %v2829_v39  ;;  %v2831_v22 = vpop.f32.mrb[141].mxu0 }
 0x9f5   : > { %v2833_v25 = vpop.f32.mrb[142].mxu0 }
 0x9f6   : > { %v3073_v63 = vmax.f32 %v3041_v47, 0.0  ;;  %v2971_v62 = vmul.f32 %v5825_v8, %v2933_v32  ;;  %v2934_v12 = vsub.f32 %v6338_v10, %v2833_v25  ;;  %v2835_v56 = vpop.f32.mrb[143].mxu0  ;;  %v5939_v15 = vadd.f32 %v3072_v23, %v6340_v14 }
 0x9f8   : > { %v5943_v49 = vadd.f32 %v3073_v63, %v6342_v42  ;;  %v3003_v51 = vmul.f32 %v2971_v62, %v2831_v22  ;;  %v2972_v59 = vmul.f32 %v5825_v8, %v2934_v12  ;;  %v6349_v22 = vld [vmem:[#allocation53_spill] sm:$0xff]  ;;  %v6352_v42 = vmax.f32 %v6351_v26, 0.0 }
 0x9fa   : > { %v3130_v19 = vpack.c.bf16 %v5943_v49, %v5939_v15  ;;  %v3042_v48 = vadd.f32 %v5833_v34, %v3003_v51  ;;  %v3004_v2 = vmul.f32 %v2972_v59, %v2835_v56  ;;  %v6350_v56 = vld [vmem:[#allocation54_spill] sm:$0xff]  ;;  %v4203_v15 = vld [vmem:[#allocation12 + $0x38] sm:$0xff]  }
 0x9fb   : > { %v2839_v58 = vpop.f32.mrb[144].mxu0  ;;  %v6353_v59 = vld [vmem:[#allocation34_spill] sm:$0xff]  ;;  %4029 = vmatprep.subr.bf16.mxu0 %v4203_v15 }
 0x9fc   : > { %v3074_v13 = vmax.f32 %v3042_v48, 0.0  ;;  %v3043_v53 = vadd.f32 %v5833_v34, %v3004_v2  ;;  %v2935_v0 = vsub.f32 %v6343_v57, %v2839_v58  ;;  %v2841_v38 = vpop.f32.mrb[145].mxu0  ;;  %v6354_v48 = vmax.f32 %v6353_v59, 0.0  ;;  %4030 = vmatpush3.bf16.msra.mxu0 %v4203_v15 }
 0x9fd   : > { %v2843_v4 = vpop.f32.mrb[146].mxu0 }
 0x9fe   : > { %v3075_v40 = vmax.f32 %v3043_v53, 0.0  ;;  %v2973_v45 = vmul.f32 %v5825_v8, %v2935_v0  ;;  %v2936_v54 = vsub.f32 %v6344_v43, %v2843_v4  ;;  %v2845_v18 = vpop.f32.mrb[147].mxu0  ;;  %v5955_v44 = vadd.f32 %v3074_v13, %v6346_v60 }
 0xa00   : > { %v5959_v46 = vadd.f32 %v3075_v40, %v6348_v16  ;;  %v3005_v50 = vmul.f32 %v2973_v45, %v2841_v38  ;;  %v2974_v35 = vmul.f32 %v5825_v8, %v2936_v54  ;;  %v6355_v45 = vld [vmem:[#allocation55_spill] sm:$0xff] }
 0xa02   : > { %v3131_v29 = vpack.c.bf16 %v5959_v46, %v5955_v44  ;;  %v3044_v39 = vadd.f32 %v5833_v34, %v3005_v50  ;;  %v3006_v23 = vmul.f32 %v2974_v35, %v2845_v18  ;;  %v6357_v35 = vld [vmem:[#allocation35_spill] sm:$0xff] }
 0xa03   : > { %v2849_v47 = vpop.f32.mrb[148].mxu0 }
 0xa04   : > { %v3076_v20 = vmax.f32 %v3044_v39, 0.0  ;;  %v3045_v32 = vadd.f32 %v5833_v34, %v3006_v23  ;;  %v2937_v25 = vsub.f32 %v6349_v22, %v2849_v47  ;;  %v2851_v63 = vpop.f32.mrb[149].mxu0  ;;  %v6358_v39 = vmax.f32 %v6357_v35, 0.0  ;;  %v6359_v47 = vld [vmem:[#allocation36_spill] sm:$0xff] }
 0xa05   : > { %v2853_v62 = vpop.f32.mrb[150].mxu0 }
 0xa06   : > { %v3077_v10 = vmax.f32 %v3045_v32, 0.0  ;;  %v2975_v12 = vmul.f32 %v5825_v8, %v2937_v25  ;;  %v2938_v61 = vsub.f32 %v6350_v56, %v2853_v62  ;;  %v2855_v14 = vpop.f32.mrb[151].mxu0  ;;  %v3108_v51 = vadd.f32 %v3076_v20, %v6352_v42 }
 0xa07   : > { %v6360_v20 = vmax.f32 %v6359_v47, 0.0 }
 0xa08   : > { %v3109_v2 = vadd.f32 %v3077_v10, %v6354_v48  ;;  %v3007_v58 = vmul.f32 %v2975_v12, %v2851_v63  ;;  %v2976_v13 = vmul.f32 %v5825_v8, %v2938_v61  ;;  %v6361_v12 = vld [vmem:[#allocation57_spill] sm:$0xff] }
 0xa0a   : > { %v3046_v53 = vadd.f32 %v5833_v34, %v3007_v58  ;;  %v3008_v57 = vmul.f32 %v2976_v13, %v2855_v14  ;;  %v3132_v0 = vpack.c.bf16 %v3109_v2, %v3108_v51  ;;  %v6362_v51 = vld [vmem:[#allocation58_spill] sm:$0xff]  ;;  %v6363_v2 = vld [vmem:[#allocation37_spill] sm:$0xff] }
 0xa0b   : > { %v2859_v38 = vpop.f32.mrb[152].mxu0  ;;  %v6364_v58 = vmax.f32 %v6363_v2, 0.0 }
 0xa0c   : > { %v3078_v4 = vmax.f32 %v3046_v53, 0.0  ;;  %v3047_v40 = vadd.f32 %v5833_v34, %v3008_v57  ;;  %v2939_v43 = vsub.f32 %v6355_v45, %v2859_v38  ;;  %v2861_v54 = vpop.f32.mrb[153].mxu0  ;;  %3881 = vmatprep.subr.bf16.mxu1 %v3132_v0  ;;  %v6365_v53 = vld [vmem:[#allocation38_spill] sm:$0xff] }
 0xa0d   : > { %v2863_v18 = vpop.f32.mrb[154].mxu0  ;;  %3882 = vmatpush3.bf16.msra.mxu1 %v3124_v30  ;;  %v6366_v57 = vmax.f32 %v6365_v53, 0.0 }
 0xa0e   : > { %v3079_v21 = vmax.f32 %v3047_v40, 0.0  ;;  %v2977_v60 = vmul.f32 %v5825_v8, %v2939_v43  ;;  %v2940_v16 = vsub.f32 %v6356_v9, %v2863_v18  ;;  %v2865_v50 = vpop.f32.mrb[155].mxu0  ;;  %v3110_v23 = vadd.f32 %v3078_v4, %v6358_v39 }
 0xa10   : > { %v3111_v32 = vadd.f32 %v3079_v21, %v6360_v20  ;;  %v3009_v22 = vmul.f32 %v2977_v60, %v2861_v54  ;;  %v2978_v25 = vmul.f32 %v5825_v8, %v2940_v16  ;;  %v6367_v54 = vld [vmem:[#allocation59_spill] sm:$0xff] }
 0xa12   : > { %v3048_v63 = vadd.f32 %v5833_v34, %v3009_v22  ;;  %v3010_v62 = vmul.f32 %v2978_v25, %v2865_v50  ;;  %v3133_v28 = vpack.c.bf16 %v3111_v32, %v3110_v23  ;;  %v6368_v50 = vld [vmem:[#allocation60_spill] sm:$0xff]  ;;  %v6369_v23 = vld [vmem:[#allocation39_spill] sm:$0xff] }
 0xa13   : > { %v2869_v36 = vpop.f32.mrb[156].mxu0  ;;  %v6370_v47 = vmax.f32 %v6369_v23, 0.0  ;;  %v6371_v32 = vld [vmem:[#allocation40_spill] sm:$0xff] }
 0xa14   : > { %v3080_v30 = vmax.f32 %v3048_v63, 0.0  ;;  %v3049_v10 = vadd.f32 %v5833_v34, %v3010_v62  ;;  %v2941_v56 = vsub.f32 %v6361_v12, %v2869_v36  ;;  %v2871_v61 = vpop.f32.mrb[157].mxu0  ;;  %3883 = vmatprep.subr.bf16.mxu1 %v3133_v28  ;;  %v6372_v22 = vmax.f32 %v6371_v32, 0.0 }
 0xa15   : > { %v2873_v14 = vpop.f32.mrb[158].mxu0  ;;  %3884 = vmatpush3.bf16.msra.mxu1 %v3125_v17 }
 0xa16   : > { %v3081_v26 = vmax.f32 %v3049_v10, 0.0  ;;  %v2979_v42 = vmul.f32 %v5825_v8, %v2941_v56  ;;  %v2942_v59 = vsub.f32 %v6362_v51, %v2873_v14  ;;  %v2875_v48 = vpop.f32.mrb[159].mxu0  ;;  %v3112_v13 = vadd.f32 %v3080_v30, %v6364_v58  ;;  %v6373_v10 = vld [vmem:[#allocation61_spill] sm:$0xff] }
 0xa18   : > { %v3113_v0 = vadd.f32 %v3081_v26, %v6366_v57  ;;  %v3011_v38 = vmul.f32 %v2979_v42, %v2871_v61  ;;  %v2980_v4 = vmul.f32 %v5825_v8, %v2942_v59  ;;  %v6374_v42 = vld [vmem:[#allocation62_spill] sm:$0xff] }
 0xa1a   : > { %v3050_v40 = vadd.f32 %v5833_v34, %v3011_v38  ;;  %v3012_v45 = vmul.f32 %v2980_v4, %v2875_v48  ;;  %v3134_v1 = vpack.c.bf16 %v3113_v0, %v3112_v13  ;;  %v6375_v48 = vld [vmem:[#allocation41_spill] sm:$0xff]  ;;  %v6377_v13 = vld [vmem:[#allocation42_spill] sm:$0xff] }
 0xa1b   : > { %v2879_v7 = vpop.f32.mrb[160].mxu0  ;;  %v6376_v2 = vmax.f32 %v6375_v48, 0.0  ;;  %v6378_v53 = vmax.f32 %v6377_v13, 0.0 }
 0xa1c   : > { %v3082_v17 = vmax.f32 %v3050_v40, 0.0  ;;  %v3051_v43 = vadd.f32 %v5833_v34, %v3012_v45  ;;  %v2943_v18 = vsub.f32 %v6367_v54, %v2879_v7  ;;  %v2881_v21 = vpop.f32.mrb[161].mxu0  ;;  %3885 = vmatprep.subr.bf16.mxu1 %v3134_v1  ;;  %v6379_v1 = vld [vmem:[#allocation63_spill] sm:$0xff] }
 0xa1d   : > { %v2883_v60 = vpop.f32.mrb[162].mxu0  ;;  %3886 = vmatpush3.bf16.msra.mxu1 %v3126_v33 }
 0xa1e   : > { %v3083_v9 = vmax.f32 %v3051_v43, 0.0  ;;  %v2981_v16 = vmul.f32 %v5825_v8, %v2943_v18  ;;  %v2944_v35 = vsub.f32 %v6368_v50, %v2883_v60  ;;  %v2885_v39 = vpop.f32.mrb[163].mxu0  ;;  %v3114_v20 = vadd.f32 %v3082_v17, %v6370_v47 }
 0xa20   : > { %v3115_v25 = vadd.f32 %v3083_v9, %v6372_v22  ;;  %v3013_v63 = vmul.f32 %v2981_v16, %v2881_v21  ;;  %v2982_v62 = vmul.f32 %v5825_v8, %v2944_v35  ;;  %v6380_v21 = vld [vmem:[#allocation64_spill] sm:$0xff]  ;;  %v6381_v16 = vld [vmem:[#allocation43_spill] sm:$0xff] }
 0xa21   : > { %v6382_v50 = vmax.f32 %v6381_v16, 0.0 }
 0xa22   : > { %v3052_v28 = vadd.f32 %v5833_v34, %v3013_v63  ;;  %v3014_v36 = vmul.f32 %v2982_v62, %v2885_v39  ;;  %v3135_v5 = vpack.c.bf16 %v3115_v25, %v3114_v20  ;;  %v6383_v39 = vld [vmem:[#allocation44_spill] sm:$0xff]  ;;  %v6385_v62 = vld [vmem:[#allocation65_spill] sm:$0xff] }
 0xa23   : > { %v2889_v27 = vpop.f32.mrb[164].mxu0  ;;  %v6384_v23 = vmax.f32 %v6383_v39, 0.0 }
 0xa24   : > { %v3084_v33 = vmax.f32 %v3052_v28, 0.0  ;;  %v3053_v30 = vadd.f32 %v5833_v34, %v3014_v36  ;;  %v2945_v12 = vsub.f32 %v6373_v10, %v2889_v27  ;;  %v2891_v56 = vpop.f32.mrb[165].mxu0  ;;  %3887 = vmatprep.subr.bf16.mxu1 %v3135_v5 }
 0xa25   : > { %v2893_v61 = vpop.f32.mrb[166].mxu0  ;;  %3888 = vmatpush3.bf16.msra.mxu1 %v3127_v3 }
 0xa26   : > { %v3085_v14 = vmax.f32 %v3053_v30, 0.0  ;;  %v2983_v26 = vmul.f32 %v5825_v8, %v2945_v12  ;;  %v2946_v51 = vsub.f32 %v6374_v42, %v2893_v61  ;;  %v2895_v59 = vpop.f32.mrb[167].mxu0  ;;  %v3116_v58 = vadd.f32 %v3084_v33, %v6376_v2  ;;  %v6386_v30 = vld [vmem:[#allocation66_spill] sm:$0xff] }
 0xa28   : > { %v3117_v57 = vadd.f32 %v3085_v14, %v6378_v53  ;;  %v3015_v0 = vmul.f32 %v2983_v26, %v2891_v56  ;;  %v2984_v38 = vmul.f32 %v5825_v8, %v2946_v51  ;;  %v6387_v56 = vld [vmem:[#allocation45_spill] sm:$0xff]  ;;  %v6389_v26 = vld [vmem:[#allocation46_spill] sm:$0xff]  ;;  %v6391_v53 = vld [vmem:[#allocation47_spill] sm:$0xff] }
 0xa29   : > { %v6388_v61 = vmax.f32 %v6387_v56, 0.0  ;;  %v6390_v42 = vmax.f32 %v6389_v26, 0.0 }
 0xa2a   : > { %v3054_v4 = vadd.f32 %v5833_v34, %v3015_v0  ;;  %v3016_v40 = vmul.f32 %v2984_v38, %v2895_v59  ;;  %v3136_v31 = vpack.c.bf16 %v3117_v57, %v3116_v58  ;;  %v6392_v57 = vmax.f32 %v6391_v53, 0.0  ;;  %v6393_v38 = vld [vmem:[#allocation48_spill] sm:$0xff] }
 0xa2b   : > { %v2899_v55 = vpop.f32.mrb[168].mxu0 }
 0xa2c   : > { %v3086_v3 = vmax.f32 %v3054_v4, 0.0  ;;  %v3055_v45 = vadd.f32 %v5833_v34, %v3016_v40  ;;  %v2947_v7 = vsub.f32 %v6379_v1, %v2899_v55  ;;  %v2901_v17 = vpop.f32.mrb[169].mxu0  ;;  %3889 = vmatprep.subr.bf16.mxu1 %v3136_v31  ;;  %v6394_v4 = vmax.f32 %v6393_v38, 0.0  ;;  %v6395_v31 = vld [vmem:[#allocation67_spill] sm:$0xff]  ;;  %v6397_v55 = vld [vmem:[#allocation69_spill] sm:$0xff] }
 0xa2d   : > { %v2903_v43 = vpop.f32.mrb[170].mxu0  ;;  %3890 = vmatpush3.bf16.msra.mxu1 %v3128_v24 }
 0xa2e   : > { %v3087_v54 = vmax.f32 %v3055_v45, 0.0  ;;  %v2985_v18 = vmul.f32 %v5825_v8, %v2947_v7  ;;  %v2948_v60 = vsub.f32 %v6380_v21, %v2903_v43  ;;  %v2905_v9 = vpop.f32.mrb[171].mxu0  ;;  %v3118_v35 = vadd.f32 %v3086_v3, %v6382_v50 }
 0xa30   : > { %v3119_v47 = vadd.f32 %v3087_v54, %v6384_v23  ;;  %v3017_v20 = vmul.f32 %v2985_v18, %v2901_v17  ;;  %v2986_v32 = vmul.f32 %v5825_v8, %v2948_v60  ;;  %v3590_v60 = vld [vmem:[%s6398_s29] ss:$0 sm:$0xff] }
 0xa32   : > { %v3056_v22 = vadd.f32 %v5833_v34, %v3017_v20  ;;  %v3018_v25 = vmul.f32 %v2986_v32, %v2905_v9  ;;  %v3137_v41 = vpack.c.bf16 %v3119_v47, %v3118_v35 }
 0xa33   : > { %v2909_v37 = vpop.f32.mrb[172].mxu0 }
 0xa34   : > { %v3088_v24 = vmax.f32 %v3056_v22, 0.0  ;;  %v3057_v63 = vadd.f32 %v5833_v34, %v3018_v25  ;;  %v2949_v28 = vsub.f32 %v6385_v62, %v2909_v37  ;;  %v2911_v36 = vpop.f32.mrb[173].mxu0  ;;  %3891 = vmatprep.subr.bf16.mxu1 %v3137_v41 }
 0xa35   : > { %v2913_v5 = vpop.f32.mrb[174].mxu0  ;;  %3892 = vmatpush3.bf16.msra.mxu1 %v3129_v6 }
 0xa36   : > { %v3089_v27 = vmax.f32 %v3057_v63, 0.0  ;;  %v2987_v33 = vmul.f32 %v5825_v8, %v2949_v28  ;;  %v2950_v10 = vsub.f32 %v6386_v30, %v2913_v5  ;;  %v2915_v12 = vpop.f32.mrb[175].mxu0  ;;  %v3120_v14 = vadd.f32 %v3088_v24, %v6388_v61 }
 0xa38   : > { %v3121_v51 = vadd.f32 %v3089_v27, %v6390_v42  ;;  %v3019_v59 = vmul.f32 %v2987_v33, %v2911_v36  ;;  %v2988_v48 = vmul.f32 %v5825_v8, %v2950_v10 }
 0xa3a   : > { %v3058_v2 = vadd.f32 %v5833_v34, %v3019_v59  ;;  %v3020_v58 = vmul.f32 %v2988_v48, %v2915_v12  ;;  %v3138_v52 = vpack.c.bf16 %v3121_v51, %v3120_v14 }
 0xa3c   : > { %v3090_v11 = vmax.f32 %v3058_v2, 0.0  ;;  %v3059_v6 = vadd.f32 %v5833_v34, %v3020_v58  ;;  %3893 = vmatprep.subr.bf16.mxu1 %v3138_v52  ;;  %v6396_v34 = vld [vmem:[#allocation68_spill] sm:$0xff] }
 0xa3d   : > { %3894 = vmatpush3.bf16.msra.mxu1 %v3130_v19 }
 0xa3e   : > { %v3091_v13 = vmax.f32 %v3059_v6, 0.0  ;;  %v3122_v0 = vadd.f32 %v3090_v11, %v6392_v57 }
 0xa40   : > { %v3123_v40 = vadd.f32 %v3091_v13, %v6394_v4 }
 0xa42   : > { %v3139_v8 = vpack.c.bf16 %v3123_v40, %v3122_v0 }
 0xa44   : > { %3895 = vmatprep.subr.bf16.mxu1 %v3139_v8 }
 0xa45   : > { %3896 = vmatpush3.bf16.msra.mxu1 %v3131_v29 }
 0xa48   : > { %3173 = vmatmul.mubr.bf16.vlgmr.msra.gmra.mrb[160].mxu1 %v6395_v31 }
 0xa49   : > { %3180 = vmatprep.mubr.bf16.mxu1 %v6396_v34 }
 0xa50   : > { %3181 = vmatmul.mubr.bf16.gmra.mrb[164].mxu1 %v6397_v55 }
 0xb1b   : > { %v3897_v49 = vpop.f32.mrb[160].mxu1 }
 0xb1c   : > { %v3898_v19 = vpop.f32.mrb[161].mxu1 }
 0xb1d   : > { %v3899_v3 = vadd.f32 %v3898_v19, %v3897_v49  ;;  %v3900_v45 = vpop.f32.mrb[162].mxu1 }
 0xb1e   : > { %v3901_v1 = vpop.f32.mrb[163].mxu1 }
 0xb1f   : > { %v3902_v7 = vadd.f32 %v3901_v1, %v3900_v45 }
 0xb21   : > { %v3189_v17 = vpack.c.bf16 %v3902_v7, %v3899_v3 }
 0xb23   : > { %v3903_v44 = vpop.f32.mrb[164].mxu1  ;;  %4031 = vmatprep.mubr.bf16.mxu0 %v3189_v17 }
 0xb24   : > { %v3904_v46 = vpop.f32.mrb[165].mxu1 }
 0xb25   : > { %v3905_v29 = vadd.f32 %v3904_v46, %v3903_v44  ;;  %v3906_v43 = vpop.f32.mrb[166].mxu1 }
 0xb26   : > { %v3907_v54 = vpop.f32.mrb[167].mxu1 }
 0xb27   : > { %v3908_v18 = vadd.f32 %v3907_v54, %v3906_v43 }
 0xb29   : > { %v3190_v21 = vpack.c.bf16 %v3908_v18, %v3905_v29 }
 0xb2b   : > { %4032 = vmatmul.mubr.bf16.vlgmr.msra.gmra.mrb[176].mxu0 %v3190_v21 }
 0xbfe   : > { %v4033_v9 = vpop.f32.mrb[176].mxu0 }
 0xbff   : > { %v3305_v16 = vadd.f32 %v4033_v9, %v3590_v60  ;;  %v3296_v50 = vpop.f32.mrb[177].mxu0 }
 0xc00   : > { %v3297_v35 = vadd.f32 %v3590_v60, %v3296_v50  ;;  %v4034_v39 = vpop.f32.mrb[178].mxu0 }
 0xc01   : > { %3313 = vst [vmem:[%s652_s27 + $0x10] sm:$0xff] %v3305_v16  ;;  %v3308_v23 = vadd.f32 %v4034_v39, %v3590_v60  ;;  %v3299_v47 = vpop.f32.mrb[179].mxu0 }
 0xc02   : > { %3311 = vst [vmem:[%s652_s27] sm:$0xff] %v3297_v35  ;;  %v3300_v20 = vadd.f32 %v3590_v60, %v3299_v47 }
 0xc03   : > { %3314 = vst [vmem:[%s652_s27 + $0x18] sm:$0xff] %v3308_v23 }
 0xc04   : > { %3312 = vst [vmem:[%s652_s27 + $0x8] sm:$0xff] %v3300_v20 }
 0xc05   : > { %4413 = shalt.err (!%p4410_p9)
}
 0xc06   : > { %s4414_s30 = scalar_lea.hbm %s6077_s15, 512  ;;  %s4418_s4 = scalar_lea.hbm %s6399_s16, 1024 }
 0xc07   : > { %p4415_p13 = scmp.ne.s32.totalorder %s6077_s15, %s4414_s30  ;;  %p4419_p12 = scmp.lt.u32.totalorder %s6077_s15, %s6399_s16 }
 0xc08   : > { %p4420_p1 = scmp.lt.u32.totalorder %s4418_s4, %s4414_s30  ;;  %p4422_p4 = scmp.lt.u32.totalorder %s4414_s30, %s6077_s15 }
 0xc09   : > { %p4416_p11 = pnand %p4415_p13, %p4732_p5 }
 0xc0a   : > { %p4421_p2 = por %p4420_p1, %p4419_p12 }
 0xc0b   : > { %p4417_p7 = pneg %p4416_p11 }
 0xc0c   : > { %p4423_p0 = por %p4422_p4, %p4421_p2 }
 0xc0e   : > { %p4424_p8 = pnand %p4423_p0, %p4417_p7 }
 0xc10   : > { %4427 = shalt.err (!%p4424_p8)
}
 0xc11   : > { %s4491_s27 = smov 128   ;;  %s4492_s17 = smov 8  }
 0xc12   : > { %4051 = dma.vmem_to_hbm [thread:$0]  (%p4732_p5), %s6072_s19, 512, %s6077_s15, %s3316_s25, %s4491_s27, %s4491_s27, %s4492_s17  }
 0xc13 PF: > { %s6400_s21 = sld [smem:[#allocation19_spill]]  ;;  %s6401_s7 = sld [smem:[#allocation20_spill]] }
 0xc14   : > { %p6403_p10 = scmp.ge.s32.totalorder %s4478_s24, 2 }
 0xc19   : > { %s3344_s28 = sand.u32 1, %s6400_s21   ;;  %p6402_p6 = scmp.ne.s32.totalorder %s6401_s7, 0 }
 0xc1a   : > { %s3345_s9 = scalar_lea.sflag [#allocation6], %s3344_s28 }
 0xc1b   : > { %p4071_p3 = pnand %p6403_p10, %p6402_p6 }
 0xc1d   : > { %4461 = dma.done.wait (!%p4071_p3), %s3345_s9, 512  }
 0xc1e   : > { %4463 = vsyncadd (!%p4071_p3), %s3345_s9, 4294966784  ;;  %p33_p9 = scmp.ge.s32.totalorder %s4718_s12, 4   ;;  %s6404_s21 = smov %s4470_s22 }
 0xc1f   : > { %s6405_s22 = smov %s4474_s23  ;;  %s6406_s23 = smov %s4728_s11 }
 0xc20   : > { %s6407_s24 = smov %s4718_s12  ;;  %35 = sbr.rel (!%p33_p9) target bundleno = 20 (0x14), region = 160 }
 0xc27   :  { %3350 = vsyncpa [#allocation5], 1 }
 0xc28   :  { %3352 = vsyncpa [#allocation5 + $0x1], 1 }
 0xc29   :  { %3353 = vsyncpa [#allocation8], 1 }
 0xc2a   :  { %3355 = vsyncpa [#allocation8 + $0x1], 1 }
 0xc2b   :  { %3356 = vsyncpa [#allocation11], 1 }
 0xc2c   :  { %3357 = vsyncpa [#allocation6], 1 }
 0xc2d   :  { %3359 = vsyncpa [#allocation6 + $0x1], 1 }

</bundles_post_ra>
